<compile_context>
chip_gen: v6e
topology: v6e:2x2x1
jax: 0.10.0
libtpu: 0.0.40
codegen_flags: <defaults>
</compile_context>

<pallas_src>
import functools

import jax
import jax.numpy as jnp
from jax.experimental import pallas as pl
from jax.experimental.pallas import tpu as pltpu

EXPANSION = 4
BN_EPS = 1e-5
_LPAD = 8  # left halo pad for the 3x3 conv scratch (sublane-aligned store)


def _win(start, size, stride):
    """Static window into a ref, optionally strided (stride-2 conv taps)."""
    return pl.ds(start, size) if stride == 1 else pl.ds(start, size, stride)


# ----------------------------------------------------------------------------
# Fused kernel: one grid step == one image
# ----------------------------------------------------------------------------
def _bottleneck_kernel(x_ref, w1_ref, s1_ref, b1_ref,
                       w2_ref, s2_ref, b2_ref,
                       w3_ref, s3_ref, b3_ref,
                       *rest, stride, has_shortcut):
    """Fully fused Bottleneck forward for one image.

    x_ref : (1, H, W, Cin) f32
    w1    : (Cin, P) bf16   w2: (3, 3, P, P) bf16   w3: (P, 4P) bf16
    s*/b* : (1, C) f32 folded BN scale / bias
    rest  : [wsc_ref, ssc_ref, bsc_ref,] o_ref, xpad_ref(scratch)
    """
    if has_shortcut:
        wsc_ref, ssc_ref, bsc_ref, o_ref, xpad_ref = rest
    else:
        o_ref, xpad_ref = rest

    _, H, W, Cin = x_ref.shape
    planes = w1_ref.shape[1]
    _, Ho, Wo, Cout = o_ref.shape

    # ---- conv1 (1x1) + bn1 + relu ------------------------------------------
    x2d = x_ref[...].reshape(H * W, Cin).astype(jnp.bfloat16)
    h1 = jnp.dot(x2d, w1_ref[...], preferred_element_type=jnp.float32)
    h1 = jnp.maximum(h1 * s1_ref[...] + b1_ref[...], 0.0)

    # ---- conv2 (3x3, stride, pad=1) + bn2 + relu ----------------------------
    # Zero-padded halo built in VMEM (f32; left pad of 8 columns keeps the
    # interior store sublane-aligned). No HBM round trip for h1.
    xpad_ref[...] = jnp.zeros_like(xpad_ref)
    xpad_ref[pl.ds(1, H), pl.ds(_LPAD, W), :] = h1.reshape(H, W, planes)

    acc = jnp.zeros((Ho * Wo, planes), jnp.float32)
    for ky in range(3):
        for kx in range(3):
            patch = xpad_ref[_win(ky, Ho, stride),
                             _win(kx + _LPAD - 1, Wo, stride), :]
            acc = acc + jnp.dot(
                patch.reshape(Ho * Wo, planes).astype(jnp.bfloat16),
                w2_ref[ky, kx], preferred_element_type=jnp.float32)
    h2 = jnp.maximum(acc * s2_ref[...] + b2_ref[...], 0.0).astype(jnp.bfloat16)

    # ---- conv3 (1x1) + bn3 + shortcut + add + relu --------------------------
    y = jnp.dot(h2, w3_ref[...], preferred_element_type=jnp.float32)
    y = y * s3_ref[...] + b3_ref[...]

    if has_shortcut:
        if stride == 1:
            xs2d = x2d                       # reuse the bf16 cast of x
        else:
            xs = x_ref[pl.ds(0, 1), _win(0, Ho, stride), _win(0, Wo, stride), :]
            xs2d = xs.reshape(Ho * Wo, Cin).astype(jnp.bfloat16)
        sc = jnp.dot(xs2d, wsc_ref[...], preferred_element_type=jnp.float32)
        sc = sc * ssc_ref[...] + bsc_ref[...]
    else:
        sc = x_ref[...].reshape(Ho * Wo, Cout)   # identity residual (f32)

    out = jnp.maximum(y + sc, 0.0)
    o_ref[...] = out.reshape(1, Ho, Wo, Cout).astype(o_ref.dtype)


# ----------------------------------------------------------------------------
# pallas_call wrapper (NHWC)
# ----------------------------------------------------------------------------
def bottleneck_fused_nhwc(x, p):
    n, h, w, cin = x.shape
    planes = p["w1"].shape[1]
    cout = p["w3"].shape[1]
    stride = p["stride"]
    has_sc = p["has_shortcut"]
    ho = (h + 2 - 3) // stride + 1
    wo = (w + 2 - 3) // stride + 1

    img_in = pl.BlockSpec((1, h, w, cin), lambda i: (i, 0, 0, 0))
    img_out = pl.BlockSpec((1, ho, wo, cout), lambda i: (i, 0, 0, 0))
    c2 = lambda i: (0, 0)
    c4 = lambda i: (0, 0, 0, 0)

    def vec(a):
        return a.reshape(1, -1).astype(jnp.float32)

    in_specs = [
        img_in,
        pl.BlockSpec((cin, planes), c2),
        pl.BlockSpec((1, planes), c2),
        pl.BlockSpec((1, planes), c2),
        pl.BlockSpec((3, 3, planes, planes), c4),
        pl.BlockSpec((1, planes), c2),
        pl.BlockSpec((1, planes), c2),
        pl.BlockSpec((planes, cout), c2),
        pl.BlockSpec((1, cout), c2),
        pl.BlockSpec((1, cout), c2),
    ]
    args = [
        x.astype(jnp.float32),
        p["w1"].astype(jnp.bfloat16), vec(p["s1"]), vec(p["b1"]),
        p["w2"].astype(jnp.bfloat16), vec(p["s2"]), vec(p["b2"]),
        p["w3"].astype(jnp.bfloat16), vec(p["s3"]), vec(p["b3"]),
    ]
    if has_sc:
        in_specs += [pl.BlockSpec((cin, cout), c2),
                     pl.BlockSpec((1, cout), c2),
                     pl.BlockSpec((1, cout), c2)]
        args += [p["wsc"].astype(jnp.bfloat16), vec(p["ssc"]), vec(p["bsc"])]

    return pl.pallas_call(
        functools.partial(_bottleneck_kernel, stride=stride,
                          has_shortcut=has_sc),
        out_shape=jax.ShapeDtypeStruct((n, ho, wo, cout), jnp.float32),
        grid=(n,),
        in_specs=in_specs,
        out_specs=img_out,
        scratch_shapes=[
            pltpu.VMEM((h + 2, w + _LPAD + 1, planes), jnp.float32),
        ],
        compiler_params=pltpu.CompilerParams(dimension_semantics=("parallel",)),
    )(*args)


# ----------------------------------------------------------------------------
# Parameter construction + module forward (NCHW boundary like PyTorch)
# ----------------------------------------------------------------------------
def _fold_bn(gamma, beta, mean, var):
    scale = gamma * jax.lax.rsqrt(var + BN_EPS)
    bias = beta - mean * scale
    return scale, bias


def make_bottleneck_params(key, in_planes, planes, stride=1):
    out_planes = EXPANSION * planes
    ks = list(jax.random.split(key, 8))

    def bn(k, c):
        k1, k2, k3, k4 = jax.random.split(k, 4)
        gamma = jax.random.uniform(k1, (c,), minval=0.5, maxval=1.5)
        beta = 0.1 * jax.random.normal(k2, (c,))
        mean = 0.1 * jax.random.normal(k3, (c,))
        var = jax.random.uniform(k4, (c,), minval=0.5, maxval=1.5)
        return _fold_bn(gamma, beta, mean, var)

    p = {}
    # conv weights stored channels-last: 1x1 -> (Cin, Cout); 3x3 -> (3,3,Cin,Cout)
    p["w1"] = 0.2 * jax.random.normal(ks[0], (in_planes, planes), jnp.float32)
    p["s1"], p["b1"] = bn(ks[1], planes)
    p["w2"] = 0.2 * jax.random.normal(ks[2], (3, 3, planes, planes), jnp.float32)
    p["s2"], p["b2"] = bn(ks[3], planes)
    p["w3"] = 0.2 * jax.random.normal(ks[4], (planes, out_planes), jnp.float32)
    p["s3"], p["b3"] = bn(ks[5], out_planes)
    p["has_shortcut"] = (stride != 1) or (in_planes != out_planes)
    if p["has_shortcut"]:
        p["wsc"] = 0.2 * jax.random.normal(ks[6], (in_planes, out_planes),
                                           jnp.float32)
        p["ssc"], p["bsc"] = bn(ks[7], out_planes)
    p["stride"] = stride
    return p


def bottleneck_forward(x_nchw, p):
    """Forward of the PyTorch Bottleneck block. Input/output are NCHW f32."""
    x = jnp.transpose(x_nchw, (0, 2, 3, 1)).astype(jnp.float32)  # NHWC
    out = bottleneck_fused_nhwc(x, p)
    return jnp.transpose(out, (0, 3, 1, 2))  # back to NCHW


# ----------------------------------------------------------------------------
# Pure-JAX reference (mirrors the kernel's bf16 MXU inputs / f32 accumulation)
# ----------------------------------------------------------------------------
def bottleneck_reference(x_nchw, p):
    stride = p["stride"]
    x = jnp.transpose(x_nchw, (0, 2, 3, 1)).astype(jnp.float32)

    def pw(h, wmat, s, b):
        y = jnp.einsum("nhwc,cd->nhwd",
                       h.astype(jnp.bfloat16), wmat.astype(jnp.bfloat16),
                       preferred_element_type=jnp.float32)
        return y * s + b

    o = jax.nn.relu(pw(x, p["w1"], p["s1"], p["b1"]))
    o = jax.lax.conv_general_dilated(
        o.astype(jnp.bfloat16), p["w2"].astype(jnp.bfloat16),
        window_strides=(stride, stride), padding=[(1, 1), (1, 1)],
        dimension_numbers=("NHWC", "HWIO", "NHWC"),
        preferred_element_type=jnp.float32)
    o = jax.nn.relu(o * p["s2"] + p["b2"])
    y = pw(o, p["w3"], p["s3"], p["b3"])
    if p["has_shortcut"]:
        sc = pw(x[:, ::stride, ::stride, :], p["wsc"], p["ssc"], p["bsc"])
    else:
        sc = x
    o = jax.nn.relu(y + sc)
    return jnp.transpose(o, (0, 3, 1, 2))


# ----------------------------------------------------------------------------
if __name__ == "__main__":
    key = jax.random.PRNGKey(0)

    # Config A: projection-shortcut path (in_planes != expansion*planes).
    # Config B: identity-shortcut path   (in_planes == expansion*planes).
    configs = [
        dict(n=2, in_planes=4, planes=4, hw=16, stride=1),
        dict(n=2, in_planes=16, planes=4, hw=16, stride=1),
    ]

    for i, cfg in enumerate(configs):
        k_x, k_p = jax.random.split(jax.random.fold_in(key, i))
        x = jax.random.normal(
            k_x, (cfg["n"], cfg["in_planes"], cfg["hw"], cfg["hw"]), jnp.float32)
        params = make_bottleneck_params(
            k_p, cfg["in_planes"], cfg["planes"], cfg["stride"])

        out = jax.block_until_ready(bottleneck_forward(x, params))
        ref = jax.block_until_ready(bottleneck_reference(x, params))

        expect = (cfg["n"], EXPANSION * cfg["planes"],
                  cfg["hw"] // cfg["stride"], cfg["hw"] // cfg["stride"])
        assert out.shape == expect, f"bad shape for config {i}: {out.shape}"
        assert jnp.allclose(out, ref, rtol=2e-2, atol=2e-2), \
            f"mismatch vs reference for config {i}"

    print("KERNEL_OK")
</pallas_src>

<mosaic_0001>
module attributes {stable_mosaic.version = 11 : i64} {
  func.func @_bottleneck_kernel(%arg0: i32, %arg1: memref<1x16x16x4xf32, #tpu.memory_space<vmem>>, %arg2: memref<4x4xbf16, #tpu.memory_space<vmem>>, %arg3: memref<1x4xf32, #tpu.memory_space<vmem>>, %arg4: memref<1x4xf32, #tpu.memory_space<vmem>>, %arg5: memref<3x3x4x4xbf16, #tpu.memory_space<vmem>>, %arg6: memref<1x4xf32, #tpu.memory_space<vmem>>, %arg7: memref<1x4xf32, #tpu.memory_space<vmem>>, %arg8: memref<4x16xbf16, #tpu.memory_space<vmem>>, %arg9: memref<1x16xf32, #tpu.memory_space<vmem>>, %arg10: memref<1x16xf32, #tpu.memory_space<vmem>>, %arg11: memref<4x16xbf16, #tpu.memory_space<vmem>>, %arg12: memref<1x16xf32, #tpu.memory_space<vmem>>, %arg13: memref<1x16xf32, #tpu.memory_space<vmem>>, %arg14: memref<1x16x16x16xf32, #tpu.memory_space<vmem>>, %arg15: memref<18x25x4xf32, #tpu.memory_space<vmem>>) attributes {dimension_semantics = [#tpu.dimension_semantics<parallel>], iteration_bounds = array<i64: 2>, scalar_prefetch = 0 : i64, scratch_operands = 1 : i64, tpu.core_type = #tpu.core_type<tc>, window_params = [{transform_indices = @transform_0, window_bounds = array<i64: 1, 16, 16, 4>}, {pipeline_mode = #tpu.pipeline_mode<synchronous>, transform_indices = @transform_1, window_bounds = array<i64: 4, 4>}, {pipeline_mode = #tpu.pipeline_mode<synchronous>, transform_indices = @transform_2, window_bounds = array<i64: 1, 4>}, {pipeline_mode = #tpu.pipeline_mode<synchronous>, transform_indices = @transform_3, window_bounds = array<i64: 1, 4>}, {pipeline_mode = #tpu.pipeline_mode<synchronous>, transform_indices = @transform_4, window_bounds = array<i64: 3, 3, 4, 4>}, {pipeline_mode = #tpu.pipeline_mode<synchronous>, transform_indices = @transform_5, window_bounds = array<i64: 1, 4>}, {pipeline_mode = #tpu.pipeline_mode<synchronous>, transform_indices = @transform_6, window_bounds = array<i64: 1, 4>}, {pipeline_mode = #tpu.pipeline_mode<synchronous>, transform_indices = @transform_7, window_bounds = array<i64: 4, 16>}, {pipeline_mode = #tpu.pipeline_mode<synchronous>, transform_indices = @transform_8, window_bounds = array<i64: 1, 16>}, {pipeline_mode = #tpu.pipeline_mode<synchronous>, transform_indices = @transform_9, window_bounds = array<i64: 1, 16>}, {pipeline_mode = #tpu.pipeline_mode<synchronous>, transform_indices = @transform_10, window_bounds = array<i64: 4, 16>}, {pipeline_mode = #tpu.pipeline_mode<synchronous>, transform_indices = @transform_11, window_bounds = array<i64: 1, 16>}, {pipeline_mode = #tpu.pipeline_mode<synchronous>, transform_indices = @transform_12, window_bounds = array<i64: 1, 16>}, {transform_indices = @transform_13, window_bounds = array<i64: 1, 16, 16, 16>}]} {
    %c0 = arith.constant 0 : index
    %c0_0 = arith.constant 0 : index
    %c0_1 = arith.constant 0 : index
    %c0_2 = arith.constant 0 : index
    %0 = vector.load %arg1[%c0, %c0_0, %c0_1, %c0_2] : memref<1x16x16x4xf32, #tpu.memory_space<vmem>>, vector<1x16x16x4xf32>
    %1 = vector.shape_cast %0 : vector<1x16x16x4xf32> to vector<256x4xf32>
    %2 = arith.truncf %1 : vector<256x4xf32> to vector<256x4xbf16>
    %c0_3 = arith.constant 0 : index
    %c0_4 = arith.constant 0 : index
    %3 = vector.load %arg2[%c0_3, %c0_4] : memref<4x4xbf16, #tpu.memory_space<vmem>>, vector<4x4xbf16>
    %cst = arith.constant dense<0.000000e+00> : vector<256x4xf32>
    %4 = tpu.matmul %2, %3, %cst {dimension_numbers = #tpu.dot_dimension_numbers<[1], [0], [0], [1], [0, 0, 1, 1], [], []>} : vector<256x4xbf16>, vector<4x4xbf16>, vector<256x4xf32> -> vector<256x4xf32>
    %c0_5 = arith.constant 0 : index
    %c0_6 = arith.constant 0 : index
    %5 = vector.load %arg3[%c0_5, %c0_6] : memref<1x4xf32, #tpu.memory_space<vmem>>, vector<1x4xf32>
    %6 = vector.broadcast %5 : vector<1x4xf32> to vector<256x4xf32>
    %7 = arith.mulf %4, %6 : vector<256x4xf32>
    %c0_7 = arith.constant 0 : index
    %c0_8 = arith.constant 0 : index
    %8 = vector.load %arg4[%c0_7, %c0_8] : memref<1x4xf32, #tpu.memory_space<vmem>>, vector<1x4xf32>
    %9 = vector.broadcast %8 : vector<1x4xf32> to vector<256x4xf32>
    %10 = arith.addf %7, %9 : vector<256x4xf32>
    %cst_9 = arith.constant 0.000000e+00 : f32
    %11 = vector.broadcast %cst_9 : f32 to vector<256x4xf32>
    %12 = arith.maximumf %10, %11 : vector<256x4xf32>
    %cst_10 = arith.constant 0.000000e+00 : f32
    %13 = vector.broadcast %cst_10 : f32 to vector<18x25x4xf32>
    %c0_11 = arith.constant 0 : index
    %c0_12 = arith.constant 0 : index
    %c0_13 = arith.constant 0 : index
    %14 = vector.load %arg15[%c0_11, %c0_12, %c0_13] : memref<18x25x4xf32, #tpu.memory_space<vmem>>, vector<18x25x4xf32>
    tpu.vector_store %arg15[%c0_11, %c0_12, %c0_13], %13 {strides = array<i32>} : memref<18x25x4xf32, #tpu.memory_space<vmem>>, vector<18x25x4xf32>,
    %15 = vector.shape_cast %12 : vector<256x4xf32> to vector<16x16x4xf32>
    %c1 = arith.constant 1 : index
    %c8 = arith.constant 8 : index
    %c0_14 = arith.constant 0 : index
    %16 = vector.load %arg15[%c1, %c8, %c0_14] : memref<18x25x4xf32, #tpu.memory_space<vmem>>, vector<16x16x4xf32>
    tpu.vector_store %arg15[%c1, %c8, %c0_14], %15 {strides = array<i32>} : memref<18x25x4xf32, #tpu.memory_space<vmem>>, vector<16x16x4xf32>,
    %cst_15 = arith.constant 0.000000e+00 : f32
    %17 = vector.broadcast %cst_15 : f32 to vector<256x4xf32>
    %c0_16 = arith.constant 0 : index
    %c7 = arith.constant 7 : index
    %c0_17 = arith.constant 0 : index
    %18 = vector.load %arg15[%c0_16, %c7, %c0_17] : memref<18x25x4xf32, #tpu.memory_space<vmem>>, vector<16x16x4xf32>
    %19 = vector.shape_cast %18 : vector<16x16x4xf32> to vector<256x4xf32>
    %20 = arith.truncf %19 : vector<256x4xf32> to vector<256x4xbf16>
    %c0_18 = arith.constant 0 : index
    %c0_19 = arith.constant 0 : index
    %c0_20 = arith.constant 0 : index
    %c0_21 = arith.constant 0 : index
    %21 = vector.load %arg5[%c0_18, %c0_19, %c0_20, %c0_21] : memref<3x3x4x4xbf16, #tpu.memory_space<vmem>>, vector<1x1x4x4xbf16>
    %22 = vector.shape_cast %21 : vector<1x1x4x4xbf16> to vector<4x4xbf16>
    %cst_22 = arith.constant dense<0.000000e+00> : vector<256x4xf32>
    %23 = tpu.matmul %20, %22, %cst_22 {dimension_numbers = #tpu.dot_dimension_numbers<[1], [0], [0], [1], [0, 0, 1, 1], [], []>} : vector<256x4xbf16>, vector<4x4xbf16>, vector<256x4xf32> -> vector<256x4xf32>
    %24 = arith.addf %17, %23 : vector<256x4xf32>
    %c0_23 = arith.constant 0 : index
    %c8_24 = arith.constant 8 : index
    %c0_25 = arith.constant 0 : index
    %25 = vector.load %arg15[%c0_23, %c8_24, %c0_25] : memref<18x25x4xf32, #tpu.memory_space<vmem>>, vector<16x16x4xf32>
    %26 = vector.shape_cast %25 : vector<16x16x4xf32> to vector<256x4xf32>
    %27 = arith.truncf %26 : vector<256x4xf32> to vector<256x4xbf16>
    %c0_26 = arith.constant 0 : index
    %c1_27 = arith.constant 1 : index
    %c0_28 = arith.constant 0 : index
    %c0_29 = arith.constant 0 : index
    %28 = vector.load %arg5[%c0_26, %c1_27, %c0_28, %c0_29] : memref<3x3x4x4xbf16, #tpu.memory_space<vmem>>, vector<1x1x4x4xbf16>
    %29 = vector.shape_cast %28 : vector<1x1x4x4xbf16> to vector<4x4xbf16>
    %cst_30 = arith.constant dense<0.000000e+00> : vector<256x4xf32>
    %30 = tpu.matmul %27, %29, %cst_30 {dimension_numbers = #tpu.dot_dimension_numbers<[1], [0], [0], [1], [0, 0, 1, 1], [], []>} : vector<256x4xbf16>, vector<4x4xbf16>, vector<256x4xf32> -> vector<256x4xf32>
    %31 = arith.addf %24, %30 : vector<256x4xf32>
    %c0_31 = arith.constant 0 : index
    %c9 = arith.constant 9 : index
    %c0_32 = arith.constant 0 : index
    %32 = vector.load %arg15[%c0_31, %c9, %c0_32] : memref<18x25x4xf32, #tpu.memory_space<vmem>>, vector<16x16x4xf32>
    %33 = vector.shape_cast %32 : vector<16x16x4xf32> to vector<256x4xf32>
    %34 = arith.truncf %33 : vector<256x4xf32> to vector<256x4xbf16>
    %c0_33 = arith.constant 0 : index
    %c2 = arith.constant 2 : index
    %c0_34 = arith.constant 0 : index
    %c0_35 = arith.constant 0 : index
    %35 = vector.load %arg5[%c0_33, %c2, %c0_34, %c0_35] : memref<3x3x4x4xbf16, #tpu.memory_space<vmem>>, vector<1x1x4x4xbf16>
    %36 = vector.shape_cast %35 : vector<1x1x4x4xbf16> to vector<4x4xbf16>
    %cst_36 = arith.constant dense<0.000000e+00> : vector<256x4xf32>
    %37 = tpu.matmul %34, %36, %cst_36 {dimension_numbers = #tpu.dot_dimension_numbers<[1], [0], [0], [1], [0, 0, 1, 1], [], []>} : vector<256x4xbf16>, vector<4x4xbf16>, vector<256x4xf32> -> vector<256x4xf32>
    %38 = arith.addf %31, %37 : vector<256x4xf32>
    %c1_37 = arith.constant 1 : index
    %c7_38 = arith.constant 7 : index
    %c0_39 = arith.constant 0 : index
    %39 = vector.load %arg15[%c1_37, %c7_38, %c0_39] : memref<18x25x4xf32, #tpu.memory_space<vmem>>, vector<16x16x4xf32>
    %40 = vector.shape_cast %39 : vector<16x16x4xf32> to vector<256x4xf32>
    %41 = arith.truncf %40 : vector<256x4xf32> to vector<256x4xbf16>
    %c1_40 = arith.constant 1 : index
    %c0_41 = arith.constant 0 : index
    %c0_42 = arith.constant 0 : index
    %c0_43 = arith.constant 0 : index
    %42 = vector.load %arg5[%c1_40, %c0_41, %c0_42, %c0_43] : memref<3x3x4x4xbf16, #tpu.memory_space<vmem>>, vector<1x1x4x4xbf16>
    %43 = vector.shape_cast %42 : vector<1x1x4x4xbf16> to vector<4x4xbf16>
    %cst_44 = arith.constant dense<0.000000e+00> : vector<256x4xf32>
    %44 = tpu.matmul %41, %43, %cst_44 {dimension_numbers = #tpu.dot_dimension_numbers<[1], [0], [0], [1], [0, 0, 1, 1], [], []>} : vector<256x4xbf16>, vector<4x4xbf16>, vector<256x4xf32> -> vector<256x4xf32>
    %45 = arith.addf %38, %44 : vector<256x4xf32>
    %c1_45 = arith.constant 1 : index
    %c8_46 = arith.constant 8 : index
    %c0_47 = arith.constant 0 : index
    %46 = vector.load %arg15[%c1_45, %c8_46, %c0_47] : memref<18x25x4xf32, #tpu.memory_space<vmem>>, vector<16x16x4xf32>
    %47 = vector.shape_cast %46 : vector<16x16x4xf32> to vector<256x4xf32>
    %48 = arith.truncf %47 : vector<256x4xf32> to vector<256x4xbf16>
    %c1_48 = arith.constant 1 : index
    %c1_49 = arith.constant 1 : index
    %c0_50 = arith.constant 0 : index
    %c0_51 = arith.constant 0 : index
    %49 = vector.load %arg5[%c1_48, %c1_49, %c0_50, %c0_51] : memref<3x3x4x4xbf16, #tpu.memory_space<vmem>>, vector<1x1x4x4xbf16>
    %50 = vector.shape_cast %49 : vector<1x1x4x4xbf16> to vector<4x4xbf16>
    %cst_52 = arith.constant dense<0.000000e+00> : vector<256x4xf32>
    %51 = tpu.matmul %48, %50, %cst_52 {dimension_numbers = #tpu.dot_dimension_numbers<[1], [0], [0], [1], [0, 0, 1, 1], [], []>} : vector<256x4xbf16>, vector<4x4xbf16>, vector<256x4xf32> -> vector<256x4xf32>
    %52 = arith.addf %45, %51 : vector<256x4xf32>
    %c1_53 = arith.constant 1 : index
    %c9_54 = arith.constant 9 : index
    %c0_55 = arith.constant 0 : index
    %53 = vector.load %arg15[%c1_53, %c9_54, %c0_55] : memref<18x25x4xf32, #tpu.memory_space<vmem>>, vector<16x16x4xf32>
    %54 = vector.shape_cast %53 : vector<16x16x4xf32> to vector<256x4xf32>
    %55 = arith.truncf %54 : vector<256x4xf32> to vector<256x4xbf16>
    %c1_56 = arith.constant 1 : index
    %c2_57 = arith.constant 2 : index
    %c0_58 = arith.constant 0 : index
    %c0_59 = arith.constant 0 : index
    %56 = vector.load %arg5[%c1_56, %c2_57, %c0_58, %c0_59] : memref<3x3x4x4xbf16, #tpu.memory_space<vmem>>, vector<1x1x4x4xbf16>
    %57 = vector.shape_cast %56 : vector<1x1x4x4xbf16> to vector<4x4xbf16>
    %cst_60 = arith.constant dense<0.000000e+00> : vector<256x4xf32>
    %58 = tpu.matmul %55, %57, %cst_60 {dimension_numbers = #tpu.dot_dimension_numbers<[1], [0], [0], [1], [0, 0, 1, 1], [], []>} : vector<256x4xbf16>, vector<4x4xbf16>, vector<256x4xf32> -> vector<256x4xf32>
    %59 = arith.addf %52, %58 : vector<256x4xf32>
    %c2_61 = arith.constant 2 : index
    %c7_62 = arith.constant 7 : index
    %c0_63 = arith.constant 0 : index
    %60 = vector.load %arg15[%c2_61, %c7_62, %c0_63] : memref<18x25x4xf32, #tpu.memory_space<vmem>>, vector<16x16x4xf32>
    %61 = vector.shape_cast %60 : vector<16x16x4xf32> to vector<256x4xf32>
    %62 = arith.truncf %61 : vector<256x4xf32> to vector<256x4xbf16>
    %c2_64 = arith.constant 2 : index
    %c0_65 = arith.constant 0 : index
    %c0_66 = arith.constant 0 : index
    %c0_67 = arith.constant 0 : index
    %63 = vector.load %arg5[%c2_64, %c0_65, %c0_66, %c0_67] : memref<3x3x4x4xbf16, #tpu.memory_space<vmem>>, vector<1x1x4x4xbf16>
    %64 = vector.shape_cast %63 : vector<1x1x4x4xbf16> to vector<4x4xbf16>
    %cst_68 = arith.constant dense<0.000000e+00> : vector<256x4xf32>
    %65 = tpu.matmul %62, %64, %cst_68 {dimension_numbers = #tpu.dot_dimension_numbers<[1], [0], [0], [1], [0, 0, 1, 1], [], []>} : vector<256x4xbf16>, vector<4x4xbf16>, vector<256x4xf32> -> vector<256x4xf32>
    %66 = arith.addf %59, %65 : vector<256x4xf32>
    %c2_69 = arith.constant 2 : index
    %c8_70 = arith.constant 8 : index
    %c0_71 = arith.constant 0 : index
    %67 = vector.load %arg15[%c2_69, %c8_70, %c0_71] : memref<18x25x4xf32, #tpu.memory_space<vmem>>, vector<16x16x4xf32>
    %68 = vector.shape_cast %67 : vector<16x16x4xf32> to vector<256x4xf32>
    %69 = arith.truncf %68 : vector<256x4xf32> to vector<256x4xbf16>
    %c2_72 = arith.constant 2 : index
    %c1_73 = arith.constant 1 : index
    %c0_74 = arith.constant 0 : index
    %c0_75 = arith.constant 0 : index
    %70 = vector.load %arg5[%c2_72, %c1_73, %c0_74, %c0_75] : memref<3x3x4x4xbf16, #tpu.memory_space<vmem>>, vector<1x1x4x4xbf16>
    %71 = vector.shape_cast %70 : vector<1x1x4x4xbf16> to vector<4x4xbf16>
    %cst_76 = arith.constant dense<0.000000e+00> : vector<256x4xf32>
    %72 = tpu.matmul %69, %71, %cst_76 {dimension_numbers = #tpu.dot_dimension_numbers<[1], [0], [0], [1], [0, 0, 1, 1], [], []>} : vector<256x4xbf16>, vector<4x4xbf16>, vector<256x4xf32> -> vector<256x4xf32>
    %73 = arith.addf %66, %72 : vector<256x4xf32>
    %c2_77 = arith.constant 2 : index
    %c9_78 = arith.constant 9 : index
    %c0_79 = arith.constant 0 : index
    %74 = vector.load %arg15[%c2_77, %c9_78, %c0_79] : memref<18x25x4xf32, #tpu.memory_space<vmem>>, vector<16x16x4xf32>
    %75 = vector.shape_cast %74 : vector<16x16x4xf32> to vector<256x4xf32>
    %76 = arith.truncf %75 : vector<256x4xf32> to vector<256x4xbf16>
    %c2_80 = arith.constant 2 : index
    %c2_81 = arith.constant 2 : index
    %c0_82 = arith.constant 0 : index
    %c0_83 = arith.constant 0 : index
    %77 = vector.load %arg5[%c2_80, %c2_81, %c0_82, %c0_83] : memref<3x3x4x4xbf16, #tpu.memory_space<vmem>>, vector<1x1x4x4xbf16>
    %78 = vector.shape_cast %77 : vector<1x1x4x4xbf16> to vector<4x4xbf16>
    %cst_84 = arith.constant dense<0.000000e+00> : vector<256x4xf32>
    %79 = tpu.matmul %76, %78, %cst_84 {dimension_numbers = #tpu.dot_dimension_numbers<[1], [0], [0], [1], [0, 0, 1, 1], [], []>} : vector<256x4xbf16>, vector<4x4xbf16>, vector<256x4xf32> -> vector<256x4xf32>
    %80 = arith.addf %73, %79 : vector<256x4xf32>
    %c0_85 = arith.constant 0 : index
    %c0_86 = arith.constant 0 : index
    %81 = vector.load %arg6[%c0_85, %c0_86] : memref<1x4xf32, #tpu.memory_space<vmem>>, vector<1x4xf32>
    %82 = vector.broadcast %81 : vector<1x4xf32> to vector<256x4xf32>
    %83 = arith.mulf %80, %82 : vector<256x4xf32>
    %c0_87 = arith.constant 0 : index
    %c0_88 = arith.constant 0 : index
    %84 = vector.load %arg7[%c0_87, %c0_88] : memref<1x4xf32, #tpu.memory_space<vmem>>, vector<1x4xf32>
    %85 = vector.broadcast %84 : vector<1x4xf32> to vector<256x4xf32>
    %86 = arith.addf %83, %85 : vector<256x4xf32>
    %cst_89 = arith.constant 0.000000e+00 : f32
    %87 = vector.broadcast %cst_89 : f32 to vector<256x4xf32>
    %88 = arith.maximumf %86, %87 : vector<256x4xf32>
    %89 = arith.truncf %88 : vector<256x4xf32> to vector<256x4xbf16>
    %c0_90 = arith.constant 0 : index
    %c0_91 = arith.constant 0 : index
    %90 = vector.load %arg8[%c0_90, %c0_91] : memref<4x16xbf16, #tpu.memory_space<vmem>>, vector<4x16xbf16>
    %cst_92 = arith.constant dense<0.000000e+00> : vector<256x16xf32>
    %91 = tpu.matmul %89, %90, %cst_92 {dimension_numbers = #tpu.dot_dimension_numbers<[1], [0], [0], [1], [0, 0, 1, 1], [], []>} : vector<256x4xbf16>, vector<4x16xbf16>, vector<256x16xf32> -> vector<256x16xf32>
    %c0_93 = arith.constant 0 : index
    %c0_94 = arith.constant 0 : index
    %92 = vector.load %arg9[%c0_93, %c0_94] : memref<1x16xf32, #tpu.memory_space<vmem>>, vector<1x16xf32>
    %93 = vector.broadcast %92 : vector<1x16xf32> to vector<256x16xf32>
    %94 = arith.mulf %91, %93 : vector<256x16xf32>
    %c0_95 = arith.constant 0 : index
    %c0_96 = arith.constant 0 : index
    %95 = vector.load %arg10[%c0_95, %c0_96] : memref<1x16xf32, #tpu.memory_space<vmem>>, vector<1x16xf32>
    %96 = vector.broadcast %95 : vector<1x16xf32> to vector<256x16xf32>
    %97 = arith.addf %94, %96 : vector<256x16xf32>
    %c0_97 = arith.constant 0 : index
    %c0_98 = arith.constant 0 : index
    %98 = vector.load %arg11[%c0_97, %c0_98] : memref<4x16xbf16, #tpu.memory_space<vmem>>, vector<4x16xbf16>
    %cst_99 = arith.constant dense<0.000000e+00> : vector<256x16xf32>
    %99 = tpu.matmul %2, %98, %cst_99 {dimension_numbers = #tpu.dot_dimension_numbers<[1], [0], [0], [1], [0, 0, 1, 1], [], []>} : vector<256x4xbf16>, vector<4x16xbf16>, vector<256x16xf32> -> vector<256x16xf32>
    %c0_100 = arith.constant 0 : index
    %c0_101 = arith.constant 0 : index
    %100 = vector.load %arg12[%c0_100, %c0_101] : memref<1x16xf32, #tpu.memory_space<vmem>>, vector<1x16xf32>
    %101 = vector.broadcast %100 : vector<1x16xf32> to vector<256x16xf32>
    %102 = arith.mulf %99, %101 : vector<256x16xf32>
    %c0_102 = arith.constant 0 : index
    %c0_103 = arith.constant 0 : index
    %103 = vector.load %arg13[%c0_102, %c0_103] : memref<1x16xf32, #tpu.memory_space<vmem>>, vector<1x16xf32>
    %104 = vector.broadcast %103 : vector<1x16xf32> to vector<256x16xf32>
    %105 = arith.addf %102, %104 : vector<256x16xf32>
    %106 = arith.addf %97, %105 : vector<256x16xf32>
    %cst_104 = arith.constant 0.000000e+00 : f32
    %107 = vector.broadcast %cst_104 : f32 to vector<256x16xf32>
    %108 = arith.maximumf %106, %107 : vector<256x16xf32>
    %109 = vector.shape_cast %108 : vector<256x16xf32> to vector<1x16x16x16xf32>
    %c0_105 = arith.constant 0 : index
    %c0_106 = arith.constant 0 : index
    %c0_107 = arith.constant 0 : index
    %c0_108 = arith.constant 0 : index
    %110 = vector.load %arg14[%c0_105, %c0_106, %c0_107, %c0_108] : memref<1x16x16x16xf32, #tpu.memory_space<vmem>>, vector<1x16x16x16xf32>
    tpu.vector_store %arg14[%c0_105, %c0_106, %c0_107, %c0_108], %109 {strides = array<i32>} : memref<1x16x16x16xf32, #tpu.memory_space<vmem>>, vector<1x16x16x16xf32>,
    return
  }
  func.func @transform_0(%arg0: i32) -> (i32, i32, i32, i32) {
    %c0_i32 = arith.constant 0 : i32
    %c0_i32_0 = arith.constant 0 : i32
    %c0_i32_1 = arith.constant 0 : i32
    %c0_i32_2 = arith.constant 0 : i32
    return %arg0, %c0_i32, %c0_i32_0, %c0_i32_1 : i32, i32, i32, i32
  }
  func.func @transform_1(%arg0: i32) -> (i32, i32) {
    %c0_i32 = arith.constant 0 : i32
    %c0_i32_0 = arith.constant 0 : i32
    %c0_i32_1 = arith.constant 0 : i32
    return %c0_i32, %c0_i32_0 : i32, i32
  }
  func.func @transform_2(%arg0: i32) -> (i32, i32) {
    %c0_i32 = arith.constant 0 : i32
    %c0_i32_0 = arith.constant 0 : i32
    %c0_i32_1 = arith.constant 0 : i32
    return %c0_i32, %c0_i32_0 : i32, i32
  }
  func.func @transform_3(%arg0: i32) -> (i32, i32) {
    %c0_i32 = arith.constant 0 : i32
    %c0_i32_0 = arith.constant 0 : i32
    %c0_i32_1 = arith.constant 0 : i32
    return %c0_i32, %c0_i32_0 : i32, i32
  }
  func.func @transform_4(%arg0: i32) -> (i32, i32, i32, i32) {
    %c0_i32 = arith.constant 0 : i32
    %c0_i32_0 = arith.constant 0 : i32
    %c0_i32_1 = arith.constant 0 : i32
    %c0_i32_2 = arith.constant 0 : i32
    %c0_i32_3 = arith.constant 0 : i32
    return %c0_i32, %c0_i32_0, %c0_i32_1, %c0_i32_2 : i32, i32, i32, i32
  }
  func.func @transform_5(%arg0: i32) -> (i32, i32) {
    %c0_i32 = arith.constant 0 : i32
    %c0_i32_0 = arith.constant 0 : i32
    %c0_i32_1 = arith.constant 0 : i32
    return %c0_i32, %c0_i32_0 : i32, i32
  }
  func.func @transform_6(%arg0: i32) -> (i32, i32) {
    %c0_i32 = arith.constant 0 : i32
    %c0_i32_0 = arith.constant 0 : i32
    %c0_i32_1 = arith.constant 0 : i32
    return %c0_i32, %c0_i32_0 : i32, i32
  }
  func.func @transform_7(%arg0: i32) -> (i32, i32) {
    %c0_i32 = arith.constant 0 : i32
    %c0_i32_0 = arith.constant 0 : i32
    %c0_i32_1 = arith.constant 0 : i32
    return %c0_i32, %c0_i32_0 : i32, i32
  }
  func.func @transform_8(%arg0: i32) -> (i32, i32) {
    %c0_i32 = arith.constant 0 : i32
    %c0_i32_0 = arith.constant 0 : i32
    %c0_i32_1 = arith.constant 0 : i32
    return %c0_i32, %c0_i32_0 : i32, i32
  }
  func.func @transform_9(%arg0: i32) -> (i32, i32) {
    %c0_i32 = arith.constant 0 : i32
    %c0_i32_0 = arith.constant 0 : i32
    %c0_i32_1 = arith.constant 0 : i32
    return %c0_i32, %c0_i32_0 : i32, i32
  }
  func.func @transform_10(%arg0: i32) -> (i32, i32) {
    %c0_i32 = arith.constant 0 : i32
    %c0_i32_0 = arith.constant 0 : i32
    %c0_i32_1 = arith.constant 0 : i32
    return %c0_i32, %c0_i32_0 : i32, i32
  }
  func.func @transform_11(%arg0: i32) -> (i32, i32) {
    %c0_i32 = arith.constant 0 : i32
    %c0_i32_0 = arith.constant 0 : i32
    %c0_i32_1 = arith.constant 0 : i32
    return %c0_i32, %c0_i32_0 : i32, i32
  }
  func.func @transform_12(%arg0: i32) -> (i32, i32) {
    %c0_i32 = arith.constant 0 : i32
    %c0_i32_0 = arith.constant 0 : i32
    %c0_i32_1 = arith.constant 0 : i32
    return %c0_i32, %c0_i32_0 : i32, i32
  }
  func.func @transform_13(%arg0: i32) -> (i32, i32, i32, i32) {
    %c0_i32 = arith.constant 0 : i32
    %c0_i32_0 = arith.constant 0 : i32
    %c0_i32_1 = arith.constant 0 : i32
    %c0_i32_2 = arith.constant 0 : i32
    return %arg0, %c0_i32, %c0_i32_0, %c0_i32_1 : i32, i32, i32, i32
  }
}

</mosaic_0001>

<bundles_post_ra>
// kernel: tpu_custom_call.1
= control target key start
LH: loop header
LB: loop body
LE: loop exit
PB: predicated region body
PF: predicated region fallthrough
CT: control target
= control target key end

     0   :  { %s7153_s0 = inlined_call_operand.vmem [shape: f32[2,16,16,4], index: 0, kind: input, shape index: {}]   ;;  %s7154_s1 = inlined_call_operand.vmem [shape: bf16[4,4], index: 1, kind: input, shape index: {}]   ;;  %s7155_s2 = inlined_call_operand.vmem [shape: f32[1,4], index: 2, kind: input, shape index: {}]   ;;  %s7156_s3 = inlined_call_operand.vmem [shape: f32[1,4], index: 3, kind: input, shape index: {}]   ;;  %s7157_s4 = inlined_call_operand.vmem [shape: bf16[3,3,4,4], index: 4, kind: input, shape index: {}]   ;;  %s7158_s5 = inlined_call_operand.vmem [shape: f32[1,4], index: 5, kind: input, shape index: {}]   ;;  %s7159_s6 = inlined_call_operand.vmem [shape: f32[1,4], index: 6, kind: input, shape index: {}]   ;;  %s7160_s7 = inlined_call_operand.vmem [shape: bf16[4,16], index: 7, kind: input, shape index: {}]   ;;  %s7161_s8 = inlined_call_operand.vmem [shape: f32[1,16], index: 8, kind: input, shape index: {}]   ;;  %s7162_s9 = inlined_call_operand.vmem [shape: f32[1,16], index: 9, kind: input, shape index: {}]   ;;  %s7163_s10 = inlined_call_operand.vmem [shape: bf16[4,16], index: 10, kind: input, shape index: {}]   ;;  %s7164_s11 = inlined_call_operand.vmem [shape: f32[1,16], index: 11, kind: input, shape index: {}]   ;;  %s7165_s12 = inlined_call_operand.vmem [shape: f32[1,16], index: 12, kind: input, shape index: {}]   ;;  %s7166_s13 = inlined_call_operand.hbm [shape: f32[2,16,16,16], index: 13, kind: output, shape index: {}]  }
   0x1   :  { %7178 = sst [smem:[#allocation20_spill]] %s7153_s0 }
   0x2   :  { %7179 = sst [smem:[#allocation21_spill]] %s7154_s1 }
   0x3   :  { %7180 = sst [smem:[#allocation22_spill]] %s7155_s2 }
   0x4   :  { %18 = vsyncpa [#allocation4], 0 }
   0x5   :  { %20 = vsyncpa [#allocation4 + $0x1], 0  ;;  %s5358_s25 = smov 0   ;;  %s5360_s26 = smov 0  }
   0x6   :  { %s5362_s27 = smov 0   ;;  %s5364_s28 = smov 0  }
   0x7 LB: > { %s5379_s29 = sadd.s32 4294967295, %s5282_s28   ;;  %s4334_s30 = sadd.s32 4294967294, %s5282_s28   ;;  %s5282_s28 = sphi %s5364_s28, %s7241_s28   ;;  %s5278_s27 = sphi %s5362_s27, %s7240_s27   ;;  %s5274_s26 = sphi %s5360_s26, %s7239_s26   ;;  %s5270_s25 = sphi %s5358_s25, %s7238_s25  }
   0x8   : > { %s5383_s14 = sadd.s32 1, %s5282_s28   ;;  %s311_s15 = sadd.s32 1, %s5278_s27 }
   0x9   : > { %s308_s16 = ssub.s32 %s5282_s28, %s5383_s14  ;;  %p321_p0 = scmp.ne.s32.totalorder %s5278_s27, %s5274_s26 }
   0xa   : > { %p309_p1 = scmp.eq.s32.totalorder %s308_s16, 0  ;;  %p322_p2 = scmp.eq.s32.totalorder %s5379_s29, 1 }
   0xb   : > { %p327_p3 = scmp.ne.s32.totalorder %s5274_s26, %s5270_s25  ;;  %p328_p4 = scmp.eq.s32.totalorder %s4334_s30, 1 }
   0xc   : > { %s5394_s17 = scalar_select %p309_p1, %s5278_s27, %s311_s15  }
   0xd   : > { %p5396_p5 = por %p322_p2, %p321_p0  ;;  %p5400_p6 = por %p328_p4, %p327_p3 }
   0xe   : > { %p4337_p7 = scmp.ge.s32.totalorder %s5282_s28, 1  ;;  %p390_p8 = scmp.lt.s32.totalorder %s5282_s28, 3 }
  0x10   : > { %p391_p9 = pnand %p4337_p7, %p390_p8 }
  0x12   : > { %394 = sbr.rel (%p391_p9) target bundleno = 993 (0x3e1), region = 72 }
  0x17   : > { %s7183_s1 = sld [smem:[#allocation21_spill]]  ;;  %vm538_vm0 = vcmask 1041408   ;;  %p434_p10 = scmp.lt.s32.totalorder %s5379_s29, 1  ;;  %vm489_vm1 = vcmask 31744   ;;  %v5284_v50 = vmov 0.0   ;;  %vm816_vm2 = vcmask 24576  }
  0x18   : > { %s7184_s0 = sld [smem:[#allocation20_spill]]  ;;  %823 = vst.msk [vmem:[#allocation2 + $0x48] sm:$0xff] %vm489_vm1, %v5284_v50  ;;  %813 = vst.msk [vmem:[#allocation2] sm:$0xff] %vm489_vm1, %v5284_v50  ;;  %v4359_v51 = vld [vmem:[%s7157_s4 + $0x2] sm:$0x3]  ;;  %vm4225_vm3 = vcmask 130048  }
  0x19   : > { %s435_s22 = scalar_select %p434_p10, %s5379_s29, 1  ;;  %814 = vst.msk [vmem:[#allocation2 + $0x8] sm:$0xff] %vm489_vm1, %v5284_v50  ;;  %815 = vst.msk [vmem:[#allocation2 + $0x10] sm:$0xff] %vm489_vm1, %v5284_v50  ;;  %v967_v52 = vld [vmem:[%s7157_s4] sm:$0x3]  ;;  %5169 = vmatprep.subr.msk.bf16.mxu1 %vm538_vm0, %v4359_v51  ;;  %v1067_v53 = vsel %vm538_vm0, %v4359_v51, 0 }
  0x1a   : > { %818 = vst.msk [vmem:[#allocation2 + $0x20] sm:$0xff] %vm489_vm1, %v5284_v50  ;;  %819 = vst.msk [vmem:[#allocation2 + $0x28] sm:$0xff] %vm489_vm1, %v5284_v50  ;;  %v1279_v54 = vsel %vm538_vm0, %v967_v52, 0  ;;  %4795 = vmatpush3.bf16.msra.mxu1 %v1067_v53  ;;  %v4392_v61 = vld [vmem:[%s7157_s4 + $0x4] sm:$0x3]  ;;  %s7196_s2 = sld [smem:[#allocation22_spill]] }
  0x1b   : > { %s4554_s23 = sshll.u32 %s435_s22, 8  ;;  %820 = vst.msk [vmem:[#allocation2 + $0x30] sm:$0xff] %vm489_vm1, %v5284_v50  ;;  %822 = vst.msk [vmem:[#allocation2 + $0x40] sm:$0xff] %vm489_vm1, %v5284_v50  ;;  %5171 = vmatprep.subr.msk.bf16.mxu1 %vm538_vm0, %v4392_v61  ;;  %v5677_v62 = vld [vmem:[%s7157_s4 + $0x6] sm:$0x3]  ;;  %s4555_s20 = sshll.u32 %s5379_s29, 12 }
  0x1c   : > { %824 = vst.msk [vmem:[#allocation2 + $0x50] sm:$0xff] %vm489_vm1, %v5284_v50  ;;  %826 = vst.msk [vmem:[#allocation2 + $0x60] sm:$0xff] %vm489_vm1, %v5284_v50  ;;  %s7103_s30 = scalar_lea.hbm %s7166_s13, %s4555_s20  ;;  %s5285_s20 = smov [#allocation3]  }
  0x1d   : > { %v488_v0 = vld [vmem:[%s7183_s1] sm:$0x3]  ;;  %827 = vst.msk [vmem:[#allocation2 + $0x68] sm:$0xff] %vm489_vm1, %v5284_v50  ;;  %828 = vst.msk [vmem:[#allocation2 + $0x70] sm:$0xff] %vm489_vm1, %v5284_v50  ;;  %s5226_s22 = sshll.u32 %s5285_s20, 4  ;;  %s5227_s22 = int_to_ptr.vmem [resolvable:$false] %s5226_s22 }
  0x1e   : > { %5168 = vmatprep.subr.msk.bf16.mxu0 %vm538_vm0, %v488_v0  ;;  %v540_v1 = vsel %vm538_vm0, %v488_v0, 0  ;;  %s5416_s15 = scalar_lea.vmem %s7184_s0, %s4554_s23  ;;  %830 = vst.msk [vmem:[#allocation2 + $0x80] sm:$0xff] %vm489_vm1, %v5284_v50  ;;  %831 = vst.msk [vmem:[#allocation2 + $0x88] sm:$0xff] %vm489_vm1, %v5284_v50  ;;  %s431_s23 = sand.u32 1, %s5274_s26  }
  0x1f   : > { %4761 = vmatpush3.bf16.msra.mxu0 %v540_v1  ;;  %v440_v2 = vld [vmem:[%s5416_s15] sm:$0xff]  ;;  %v441_v3 = vld [vmem:[%s5416_s15 + $0x8] sm:$0xff]  ;;  %v442_v4 = vld [vmem:[%s5416_s15 + $0x10] sm:$0xff]  ;;  %832 = vst.msk [vmem:[#allocation2 + $0x90] sm:$0xff] %vm489_vm1, %v5284_v50  ;;  %s7113_s29 = scalar_lea.sflag [#allocation4], %s431_s23  ;;  %s5228_s24 = scalar_lea.vmem %s5227_s22, 8192 }
  0x20   : > { %v5421_v5 = vpack.c.bf16 %v441_v3, %v440_v2  ;;  %v443_v6 = vld [vmem:[%s5416_s15 + $0x18] sm:$0xff]  ;;  %v444_v7 = vld [vmem:[%s5416_s15 + $0x20] sm:$0xff]  ;;  %v445_v8 = vld [vmem:[%s5416_s15 + $0x28] sm:$0xff]  ;;  %834 = vst.msk [vmem:[#allocation2 + $0xa0] sm:$0xff] %vm489_vm1, %v5284_v50  ;;  %5170 = vmatprep.subr.msk.bf16.mxu0 %vm538_vm0, %v967_v52 }
  0x21   : > { %v5426_v9 = vpack.c.bf16 %v443_v6, %v442_v4  ;;  %v5428_v10 = vpack.c.bf16 %v445_v8, %v444_v7  ;;  %v446_v11 = vld [vmem:[%s5416_s15 + $0x30] sm:$0xff]  ;;  %v447_v12 = vld [vmem:[%s5416_s15 + $0x38] sm:$0xff]  ;;  %v448_v13 = vld [vmem:[%s5416_s15 + $0x40] sm:$0xff]  ;;  %835 = vst.msk [vmem:[#allocation2 + $0xa8] sm:$0xff] %vm489_vm1, %v5284_v50 }
  0x22   : > { %4762 = vmatprep.mubr.msk.bf16.mxu0 %vm489_vm1, %v5421_v5  ;;  %v449_v14 = vld [vmem:[%s5416_s15 + $0x48] sm:$0xff]  ;;  %v5440_v15 = vpack.c.bf16 %v447_v12, %v446_v11  ;;  %v450_v17 = vld [vmem:[%s5416_s15 + $0x50] sm:$0xff]  ;;  %v451_v18 = vld [vmem:[%s5416_s15 + $0x58] sm:$0xff]  ;;  %836 = vst.msk [vmem:[#allocation2 + $0xb0] sm:$0xff] %vm489_vm1, %v5284_v50 }
  0x23   : > { %4763 = vmatmul.mubr.msk.bf16.vlgmr.msra.gmra.mxu0 %vm489_vm1, %v5426_v9  ;;  %v5442_v16 = vpack.c.bf16 %v449_v14, %v448_v13  ;;  %v452_v19 = vld [vmem:[%s5416_s15 + $0x60] sm:$0xff]  ;;  %v453_v20 = vld [vmem:[%s5416_s15 + $0x68] sm:$0xff]  ;;  %v5452_v21 = vpack.c.bf16 %v451_v18, %v450_v17  ;;  %v454_v23 = vld [vmem:[%s5416_s15 + $0x70] sm:$0xff]  ;;  %838 = vst.msk [vmem:[#allocation2 + $0xc0] sm:$0xff] %vm489_vm1, %v5284_v50 }
  0x24   : > { %4766 = vmatprep.mubr.msk.bf16.mxu0 %vm489_vm1, %v5428_v10  ;;  %v5454_v22 = vpack.c.bf16 %v453_v20, %v452_v19  ;;  %v455_v24 = vld [vmem:[%s5416_s15 + $0x78] sm:$0xff]  ;;  %v456_v25 = vld [vmem:[%s5416_s15 + $0x80] sm:$0xff]  ;;  %v457_v26 = vld [vmem:[%s5416_s15 + $0x88] sm:$0xff]  ;;  %839 = vst.msk [vmem:[#allocation2 + $0xc8] sm:$0xff] %vm489_vm1, %v5284_v50  ;;  %4829 = vmatpush3.bf16.msra.mxu0 %v1279_v54 }
  0x25   : > { %7185 = vst [vmem:[#allocation6_spill] sm:$0xff] %v5452_v21  ;;  %v5464_v27 = vpack.c.bf16 %v455_v24, %v454_v23  ;;  %v5466_v28 = vpack.c.bf16 %v457_v26, %v456_v25  ;;  %v458_v29 = vld [vmem:[%s5416_s15 + $0x90] sm:$0xff]  ;;  %v459_v30 = vld [vmem:[%s5416_s15 + $0x98] sm:$0xff]  ;;  %v460_v31 = vld [vmem:[%s5416_s15 + $0xa0] sm:$0xff]  ;;  %5172 = vmatprep.subr.msk.bf16.mxu0 %vm538_vm0, %v5677_v62 }
  0x26   : > { %7186 = vst [vmem:[#allocation7_spill] sm:$0xff] %v5454_v22  ;;  %v461_v32 = vld [vmem:[%s5416_s15 + $0xa8] sm:$0xff]  ;;  %v5476_v33 = vpack.c.bf16 %v459_v30, %v458_v29  ;;  %v462_v35 = vld [vmem:[%s5416_s15 + $0xb0] sm:$0xff]  ;;  %v463_v36 = vld [vmem:[%s5416_s15 + $0xb8] sm:$0xff] }
  0x27   : > { %7187 = vst [vmem:[#allocation8_spill] sm:$0xff] %v5464_v27  ;;  %7188 = vst [vmem:[#allocation9_spill] sm:$0xff] %v5466_v28  ;;  %v5478_v34 = vpack.c.bf16 %v461_v32, %v460_v31  ;;  %v464_v37 = vld [vmem:[%s5416_s15 + $0xc0] sm:$0xff]  ;;  %v465_v38 = vld [vmem:[%s5416_s15 + $0xc8] sm:$0xff]  ;;  %v5488_v39 = vpack.c.bf16 %v463_v36, %v462_v35 }
  0x28   : > { %7189 = vst [vmem:[#allocation10_spill] sm:$0xff] %v5476_v33  ;;  %v5490_v40 = vpack.c.bf16 %v465_v38, %v464_v37  ;;  %v466_v41 = vld [vmem:[%s5416_s15 + $0xd0] sm:$0xff]  ;;  %v467_v42 = vld [vmem:[%s5416_s15 + $0xd8] sm:$0xff]  ;;  %v468_v43 = vld [vmem:[%s5416_s15 + $0xe0] sm:$0xff] }
  0x29   : > { %7190 = vst [vmem:[#allocation11_spill] sm:$0xff] %v5478_v34  ;;  %7191 = vst [vmem:[#allocation12_spill] sm:$0xff] %v5488_v39  ;;  %v469_v44 = vld [vmem:[%s5416_s15 + $0xe8] sm:$0xff]  ;;  %v5500_v45 = vpack.c.bf16 %v467_v42, %v466_v41  ;;  %v470_v47 = vld [vmem:[%s5416_s15 + $0xf0] sm:$0xff] }
  0x2a   : > { %7192 = vst [vmem:[#allocation13_spill] sm:$0xff] %v5490_v40  ;;  %v5502_v46 = vpack.c.bf16 %v469_v44, %v468_v43  ;;  %v471_v48 = vld [vmem:[%s5416_s15 + $0xf8] sm:$0xff]  ;;  %840 = vst.msk [vmem:[#allocation2 + $0xd0] sm:$0xff] %vm489_vm1, %v5284_v50  ;;  %v968_v55 = vld [vmem:[#allocation2 + $0x8] sm:$0xff]  ;;  %s4338_s15 = sshll.u32 %s431_s23, 8 }
  0x2b   : > { %4767 = vmatmul.mubr.msk.bf16.gmra.mxu0 %vm489_vm1, %v5440_v15  ;;  %7193 = vst [vmem:[#allocation14_spill] sm:$0xff] %v5500_v45  ;;  %v5510_v49 = vpack.c.bf16 %v471_v48, %v470_v47  ;;  %842 = vst.msk [vmem:[#allocation2 + $0xe0] sm:$0xff] %vm489_vm1, %v5284_v50  ;;  %v969_v56 = vld [vmem:[#allocation2 + $0x10] sm:$0xff]  ;;  %v919_v57 = vld [vmem:[#allocation2 + $0x7] sm:$0xff]  ;;  %s6900_s16 = scalar_lea.vmem [#allocation3], %s4338_s15 }
  0x2c   : > { %4770 = vmatprep.mubr.msk.bf16.mxu0 %vm489_vm1, %v5442_v16  ;;  %7194 = vst [vmem:[#allocation15_spill] sm:$0xff] %v5502_v46  ;;  %843 = vst.msk [vmem:[#allocation2 + $0xe8] sm:$0xff] %vm489_vm1, %v5284_v50  ;;  %v1000_v58 = vpack.c.bf16 %v969_v56, %v968_v55  ;;  %v920_v59 = vld [vmem:[#allocation2 + $0xf] sm:$0xff]  ;;  %v5684_v63 = vld [vmem:[%s7196_s2] ss:$0 sm:$0xff]  ;;  %s4272_s21 = sshll.u32 %s6900_s16, 4  ;;  %s7105_s21 = int_to_ptr.vmem [resolvable:$true] %s4272_s21 }
  0x2d   : > { %7195 = vst [vmem:[#allocation16_spill] sm:$0xff] %v5510_v49  ;;  %844 = vst.msk [vmem:[#allocation2 + $0xf0] sm:$0xff] %vm489_vm1, %v5284_v50  ;;  %v951_v60 = vpack.c.bf16 %v920_v59, %v919_v57  ;;  %v5689_v1 = vld [vmem:[%s7156_s3] ss:$0 sm:$0xff]  ;;  %v1541_v59 = vsel %vm538_vm0, %v4392_v61, 0  ;;  %v1835_v61 = vsel %vm538_vm0, %v5677_v62, 0  ;;  %p5229_p0 = scmp.lt.s32.totalorder %s7105_s21, %s5227_s22 }
  0x2e   : > { %846 = vst.msk [vmem:[#allocation2 + $0x100] sm:$0xff] %vm489_vm1, %v5284_v50  ;;  %847 = vst.msk [vmem:[#allocation2 + $0x108] sm:$0xff] %vm489_vm1, %v5284_v50  ;;  %4796 = vmatprep.mubr.msk.bf16.mxu1 %vm489_vm1, %v1000_v58  ;;  %s5222_s15 = scalar_lea.vmem %s7105_s21, 4096 }
  0x2f   : > { %848 = vst.msk [vmem:[#allocation2 + $0x110] sm:$0xff] %vm489_vm1, %v5284_v50  ;;  %850 = vst.msk [vmem:[#allocation2 + $0x120] sm:$0xff] %vm489_vm1, %v5284_v50  ;;  %p5223_p11 = scmp.ne.s32.totalorder %s7105_s21, %s5222_s15  ;;  %p5230_p1 = scmp.lt.s32.totalorder %s5228_s24, %s5222_s15 }
  0x30   : > { %851 = vst.msk [vmem:[#allocation2 + $0x128] sm:$0xff] %vm489_vm1, %v5284_v50  ;;  %852 = vst.msk [vmem:[#allocation2 + $0x130] sm:$0xff] %vm489_vm1, %v5284_v50 }
  0x31   : > { %854 = vst.msk [vmem:[#allocation2 + $0x140] sm:$0xff] %vm489_vm1, %v5284_v50  ;;  %855 = vst.msk [vmem:[#allocation2 + $0x148] sm:$0xff] %vm489_vm1, %v5284_v50  ;;  %p5224_p12 = pnand %p5223_p11, %p5396_p5  ;;  %p5231_p2 = por %p5230_p1, %p5229_p0 }
  0x32   : > { %856 = vst.msk [vmem:[#allocation2 + $0x150] sm:$0xff] %vm489_vm1, %v5284_v50  ;;  %858 = vst.msk [vmem:[#allocation2 + $0x160] sm:$0xff] %vm489_vm1, %v5284_v50 }
  0x33   : > { %4771 = vmatmul.mubr.msk.bf16.gmra.mxu0 %vm489_vm1, %v5452_v21  ;;  %859 = vst.msk [vmem:[#allocation2 + $0x168] sm:$0xff] %vm489_vm1, %v5284_v50  ;;  %860 = vst.msk [vmem:[#allocation2 + $0x170] sm:$0xff] %vm489_vm1, %v5284_v50  ;;  %p5225_p13 = pneg %p5224_p12 }
  0x34   : > { %4774 = vmatprep.mubr.msk.bf16.mxu0 %vm489_vm1, %v5454_v22  ;;  %862 = vst.msk [vmem:[#allocation2 + $0x180] sm:$0xff] %vm489_vm1, %v5284_v50  ;;  %863 = vst.msk [vmem:[#allocation2 + $0x188] sm:$0xff] %vm489_vm1, %v5284_v50 }
  0x35   : > { %864 = vst.msk [vmem:[#allocation2 + $0x190] sm:$0xff] %vm489_vm1, %v5284_v50  ;;  %866 = vst.msk [vmem:[#allocation2 + $0x1a0] sm:$0xff] %vm489_vm1, %v5284_v50  ;;  %p5232_p3 = pnand %p5231_p2, %p5225_p13 }
  0x36   : > { %867 = vst.msk [vmem:[#allocation2 + $0x1a8] sm:$0xff] %vm489_vm1, %v5284_v50  ;;  %868 = vst.msk [vmem:[#allocation2 + $0x1b0] sm:$0xff] %vm489_vm1, %v5284_v50 }
  0x37   : > { %870 = vst.msk [vmem:[#allocation2 + $0x1c0] sm:$0xff] %vm489_vm1, %v5284_v50  ;;  %871 = vst.msk [vmem:[#allocation2 + $0x1c8] sm:$0xff] %vm489_vm1, %v5284_v50 }
  0x38   : > { %872 = vst.msk [vmem:[#allocation2 + $0x1d0] sm:$0xff] %vm489_vm1, %v5284_v50  ;;  %874 = vst.msk [vmem:[#allocation2 + $0x1e0] sm:$0xff] %vm489_vm1, %v5284_v50 }
  0x39   : > { %875 = vst.msk [vmem:[#allocation2 + $0x1e8] sm:$0xff] %vm489_vm1, %v5284_v50  ;;  %876 = vst.msk [vmem:[#allocation2 + $0x1f0] sm:$0xff] %vm489_vm1, %v5284_v50 }
  0x3a   : > { %878 = vst.msk [vmem:[#allocation2 + $0x200] sm:$0xff] %vm489_vm1, %v5284_v50  ;;  %879 = vst.msk [vmem:[#allocation2 + $0x208] sm:$0xff] %vm489_vm1, %v5284_v50 }
  0x3b   : > { %4775 = vmatmul.mubr.msk.bf16.gmra.mxu0 %vm489_vm1, %v5464_v27  ;;  %880 = vst.msk [vmem:[#allocation2 + $0x210] sm:$0xff] %vm489_vm1, %v5284_v50  ;;  %882 = vst.msk [vmem:[#allocation2 + $0x220] sm:$0xff] %vm489_vm1, %v5284_v50 }
  0x3c   : > { %4778 = vmatprep.mubr.msk.bf16.mxu0 %vm489_vm1, %v5466_v28  ;;  %883 = vst.msk [vmem:[#allocation2 + $0x228] sm:$0xff] %vm489_vm1, %v5284_v50  ;;  %884 = vst.msk [vmem:[#allocation2 + $0x230] sm:$0xff] %vm489_vm1, %v5284_v50 }
  0x3d   : > { %817 = vst.msk [vmem:[#allocation2 + $0x18] sm:$0x1] %vm816_vm2, %v5284_v50  ;;  %821 = vst.msk [vmem:[#allocation2 + $0x38] sm:$0x1] %vm816_vm2, %v5284_v50 }
  0x3e   : > { %825 = vst.msk [vmem:[#allocation2 + $0x58] sm:$0x1] %vm816_vm2, %v5284_v50  ;;  %829 = vst.msk [vmem:[#allocation2 + $0x78] sm:$0x1] %vm816_vm2, %v5284_v50 }
  0x3f   : > { %833 = vst.msk [vmem:[#allocation2 + $0x98] sm:$0x1] %vm816_vm2, %v5284_v50  ;;  %837 = vst.msk [vmem:[#allocation2 + $0xb8] sm:$0x1] %vm816_vm2, %v5284_v50 }
  0x40   : > { %841 = vst.msk [vmem:[#allocation2 + $0xd8] sm:$0x1] %vm816_vm2, %v5284_v50  ;;  %845 = vst.msk [vmem:[#allocation2 + $0xf8] sm:$0x1] %vm816_vm2, %v5284_v50 }
  0x41   : > { %849 = vst.msk [vmem:[#allocation2 + $0x118] sm:$0x1] %vm816_vm2, %v5284_v50  ;;  %853 = vst.msk [vmem:[#allocation2 + $0x138] sm:$0x1] %vm816_vm2, %v5284_v50 }
  0x42   : > { %857 = vst.msk [vmem:[#allocation2 + $0x158] sm:$0x1] %vm816_vm2, %v5284_v50  ;;  %861 = vst.msk [vmem:[#allocation2 + $0x178] sm:$0x1] %vm816_vm2, %v5284_v50 }
  0x43   : > { %4779 = vmatmul.mubr.msk.bf16.gmra.mxu0 %vm489_vm1, %v5476_v33  ;;  %865 = vst.msk [vmem:[#allocation2 + $0x198] sm:$0x1] %vm816_vm2, %v5284_v50  ;;  %869 = vst.msk [vmem:[#allocation2 + $0x1b8] sm:$0x1] %vm816_vm2, %v5284_v50 }
  0x44   : > { %4782 = vmatprep.mubr.msk.bf16.mxu0 %vm489_vm1, %v5478_v34  ;;  %873 = vst.msk [vmem:[#allocation2 + $0x1d8] sm:$0x1] %vm816_vm2, %v5284_v50  ;;  %877 = vst.msk [vmem:[#allocation2 + $0x1f8] sm:$0x1] %vm816_vm2, %v5284_v50 }
  0x45   : > { %881 = vst.msk [vmem:[#allocation2 + $0x218] sm:$0x1] %vm816_vm2, %v5284_v50  ;;  %885 = vst.msk [vmem:[#allocation2 + $0x238] sm:$0x1] %vm816_vm2, %v5284_v50 }
  0x4b   : > { %4783 = vmatmul.mubr.msk.bf16.gmra.mxu0 %vm489_vm1, %v5488_v39 }
  0x4c   : > { %4786 = vmatprep.mubr.msk.bf16.mxu0 %vm489_vm1, %v5490_v40 }
  0x53   : > { %4787 = vmatmul.mubr.msk.bf16.gmra.mxu0 %vm489_vm1, %v5500_v45 }
  0x54   : > { %4790 = vmatprep.mubr.msk.bf16.mxu0 %vm489_vm1, %v5502_v46 }
  0x5b   : > { %4791 = vmatmul.mubr.msk.bf16.gmra.mxu0 %vm489_vm1, %v5510_v49 }
  0x5c   : > { %4830 = vmatprep.mubr.msk.bf16.mxu0 %vm489_vm1, %v951_v60 }
  0xe3   : > { %v4764_v0 = vpop.f32.mrf.mxu0 }
  0xe4   : > { %v712_v2 = vmul.f32 %v4764_v0, %v5684_v63 }
  0xe5   : > { %v576_v3 = vpop.f32.mrf.mxu0 }
  0xe6   : > { %v751_v4 = vadd.f32 %v5689_v1, %v712_v2  ;;  %v710_v6 = vmul.f32 %v5684_v63, %v576_v3 }
  0xe7   : > { %v4765_v7 = vpop.f32.mrf.mxu0 }
  0xe8   : > { %v783_v8 = vmax.f32 %v751_v4, 0.0  ;;  %v749_v11 = vadd.f32 %v5689_v1, %v710_v6  ;;  %v713_v12 = vmul.f32 %v4765_v7, %v5684_v63 }
  0xe9   : > { %v579_v13 = vpop.f32.mrf.mxu0 }
  0xea   : > { %889 = vst.msk [vmem:[#allocation2 + $0x48] sm:$0xff] %vm489_vm1, %v783_v8  ;;  %v781_v14 = vmax.f32 %v749_v11, 0.0  ;;  %v752_v17 = vadd.f32 %v5689_v1, %v713_v12  ;;  %v711_v18 = vmul.f32 %v5684_v63, %v579_v13 }
  0xeb   : > { %v4768_v19 = vpop.f32.mrf.mxu0 }
  0xec   : > { %887 = vst.msk [vmem:[#allocation2 + $0x28] sm:$0xff] %vm489_vm1, %v781_v14  ;;  %v784_v20 = vmax.f32 %v752_v17, 0.0  ;;  %v750_v23 = vadd.f32 %v5689_v1, %v711_v18  ;;  %v716_v24 = vmul.f32 %v4768_v19, %v5684_v63 }
  0xed   : > { %v592_v25 = vpop.f32.mrf.mxu0 }
  0xee   : > { %890 = vst.msk [vmem:[#allocation2 + $0x50] sm:$0xff] %vm489_vm1, %v784_v20  ;;  %v782_v26 = vmax.f32 %v750_v23, 0.0  ;;  %v755_v29 = vadd.f32 %v5689_v1, %v716_v24  ;;  %v714_v30 = vmul.f32 %v5684_v63, %v592_v25  ;;  %v5739_v20 = vld [vmem:[%s7157_s4 + $0x8] sm:$0x3]  ;;  %v5746_v23 = vld [vmem:[%s7157_s4 + $0xa] sm:$0x3] }
  0xef   : > { %v4769_v31 = vpop.f32.mrf.mxu0 }
  0xf0   : > { %888 = vst.msk [vmem:[#allocation2 + $0x30] sm:$0xff] %vm489_vm1, %v782_v26  ;;  %v787_v32 = vmax.f32 %v755_v29, 0.0  ;;  %v753_v35 = vadd.f32 %v5689_v1, %v714_v30  ;;  %v717_v36 = vmul.f32 %v4769_v31, %v5684_v63 }
  0xf1   : > { %v595_v37 = vpop.f32.mrf.mxu0  ;;  %v972_v7 = vld [vmem:[#allocation2 + $0x48] sm:$0xff] }
  0xf2   : > { %893 = vst.msk [vmem:[#allocation2 + $0x88] sm:$0xff] %vm489_vm1, %v787_v32  ;;  %v785_v38 = vmax.f32 %v753_v35, 0.0  ;;  %v756_v41 = vadd.f32 %v5689_v1, %v717_v36  ;;  %v715_v42 = vmul.f32 %v5684_v63, %v595_v37  ;;  %v923_v13 = vld [vmem:[#allocation2 + $0x47] sm:$0xff] }
  0xf3   : > { %v4772_v43 = vpop.f32.mrf.mxu0  ;;  %v970_v54 = vld [vmem:[#allocation2 + $0x28] sm:$0xff] }
  0xf4   : > { %891 = vst.msk [vmem:[#allocation2 + $0x68] sm:$0xff] %vm489_vm1, %v785_v38  ;;  %v788_v44 = vmax.f32 %v756_v41, 0.0  ;;  %v754_v47 = vadd.f32 %v5689_v1, %v715_v42  ;;  %v720_v48 = vmul.f32 %v4772_v43, %v5684_v63  ;;  %v921_v6 = vld [vmem:[#allocation2 + $0x27] sm:$0xff] }
  0xf5   : > { %v608_v50 = vpop.f32.mrf.mxu0  ;;  %v973_v55 = vld [vmem:[#allocation2 + $0x50] sm:$0xff] }
  0xf6   : > { %894 = vst.msk [vmem:[#allocation2 + $0x90] sm:$0xff] %vm489_vm1, %v788_v44  ;;  %v786_v51 = vmax.f32 %v754_v47, 0.0  ;;  %v759_v52 = vadd.f32 %v5689_v1, %v720_v48  ;;  %v718_v53 = vmul.f32 %v5684_v63, %v608_v50  ;;  %v924_v60 = vld [vmem:[#allocation2 + $0x4f] sm:$0xff]  ;;  %v5725_v12 = vpack.c.bf16 %v973_v55, %v972_v7 }
  0xf7   : > { %v4773_v56 = vpop.f32.mrf.mxu0  ;;  %v971_v57 = vld [vmem:[#allocation2 + $0x30] sm:$0xff]  ;;  %v5734_v19 = vpack.c.bf16 %v924_v60, %v923_v13 }
  0xf8   : > { %v922_v58 = vld [vmem:[#allocation2 + $0x2f] sm:$0xff]  ;;  %892 = vst.msk [vmem:[#allocation2 + $0x70] sm:$0xff] %vm489_vm1, %v786_v51  ;;  %v791_v0 = vmax.f32 %v759_v52, 0.0  ;;  %v757_v2 = vadd.f32 %v5689_v1, %v718_v53  ;;  %v721_v3 = vmul.f32 %v4773_v56, %v5684_v63  ;;  %v5721_v4 = vpack.c.bf16 %v971_v57, %v970_v54 }
  0xf9   : > { %v611_v8 = vpop.f32.mrf.mxu0  ;;  %v5723_v11 = vpack.c.bf16 %v922_v58, %v921_v6  ;;  %v976_v51 = vld [vmem:[#allocation2 + $0x88] sm:$0xff] }
  0xfa   : > { %897 = vst.msk [vmem:[#allocation2 + $0xc8] sm:$0xff] %vm489_vm1, %v791_v0  ;;  %v789_v14 = vmax.f32 %v757_v2, 0.0  ;;  %v760_v17 = vadd.f32 %v5689_v1, %v721_v3  ;;  %v719_v18 = vmul.f32 %v5684_v63, %v611_v8  ;;  %4797 = vmatmul.mubr.msk.bf16.vlgmr.msra.gmra.mxu1 %vm489_vm1, %v5721_v4  ;;  %v927_v55 = vld [vmem:[#allocation2 + $0x87] sm:$0xff] }
  0xfb   : > { %4831 = vmatmul.mubr.msk.bf16.vlgmr.msra.gmra.mxu0 %vm489_vm1, %v5723_v11  ;;  %4863 = vmatpush3.bf16.msra.mxu1 %v1541_v59  ;;  %v4776_v62 = vpop.f32.mrf.mxu0  ;;  %v974_v35 = vld [vmem:[#allocation2 + $0x68] sm:$0xff] }
  0xfc   : > { %895 = vst.msk [vmem:[#allocation2 + $0xa8] sm:$0xff] %vm489_vm1, %v789_v14  ;;  %v792_v24 = vmax.f32 %v760_v17, 0.0  ;;  %v758_v25 = vadd.f32 %v5689_v1, %v719_v18  ;;  %v724_v26 = vmul.f32 %v4776_v62, %v5684_v63  ;;  %4800 = vmatprep.mubr.msk.bf16.mxu1 %vm489_vm1, %v5725_v12  ;;  %4834 = vmatprep.mubr.msk.bf16.mxu0 %vm489_vm1, %v5734_v19  ;;  %v925_v50 = vld [vmem:[#allocation2 + $0x67] sm:$0xff] }
  0xfd   : > { %v624_v29 = vpop.f32.mrf.mxu0  ;;  %4897 = vmatpush3.bf16.msra.mxu0 %v1835_v61  ;;  %5173 = vmatprep.subr.msk.bf16.mxu1 %vm538_vm0, %v5739_v20  ;;  %v977_v36 = vld [vmem:[#allocation2 + $0x90] sm:$0xff] }
  0xfe   : > { %898 = vst.msk [vmem:[#allocation2 + $0xd0] sm:$0xff] %vm489_vm1, %v792_v24  ;;  %v790_v30 = vmax.f32 %v758_v25, 0.0  ;;  %v763_v31 = vadd.f32 %v5689_v1, %v724_v26  ;;  %v722_v32 = vmul.f32 %v5684_v63, %v624_v29  ;;  %5174 = vmatprep.subr.msk.bf16.mxu0 %vm538_vm0, %v5746_v23  ;;  %v928_v42 = vld [vmem:[#allocation2 + $0x8f] sm:$0xff]  ;;  %v5769_v54 = vpack.c.bf16 %v977_v36, %v976_v51 }
  0xff   : > { %v4777_v37 = vpop.f32.mrf.mxu0  ;;  %v975_v38 = vld [vmem:[#allocation2 + $0x70] sm:$0xff]  ;;  %v5776_v59 = vpack.c.bf16 %v928_v42, %v927_v55 }
 0x100   : > { %v926_v41 = vld [vmem:[#allocation2 + $0x6f] sm:$0xff]  ;;  %896 = vst.msk [vmem:[#allocation2 + $0xb0] sm:$0xff] %vm489_vm1, %v790_v30  ;;  %v795_v43 = vmax.f32 %v763_v31, 0.0  ;;  %v761_v44 = vadd.f32 %v5689_v1, %v722_v32  ;;  %v725_v47 = vmul.f32 %v4777_v37, %v5684_v63  ;;  %v5765_v48 = vpack.c.bf16 %v975_v38, %v974_v35 }
 0x101   : > { %v627_v52 = vpop.f32.mrf.mxu0  ;;  %v5767_v53 = vpack.c.bf16 %v926_v41, %v925_v50  ;;  %v980_v32 = vld [vmem:[#allocation2 + $0xc8] sm:$0xff] }
 0x102   : > { %901 = vst.msk [vmem:[#allocation2 + $0x108] sm:$0xff] %vm489_vm1, %v795_v43  ;;  %v793_v56 = vmax.f32 %v761_v44, 0.0  ;;  %v764_v57 = vadd.f32 %v5689_v1, %v725_v47  ;;  %v723_v58 = vmul.f32 %v5684_v63, %v627_v52  ;;  %4801 = vmatmul.mubr.msk.bf16.gmra.mxu1 %vm489_vm1, %v5765_v48  ;;  %v931_v38 = vld [vmem:[#allocation2 + $0xc7] sm:$0xff] }
 0x103   : > { %4835 = vmatmul.mubr.msk.bf16.gmra.mxu0 %vm489_vm1, %v5767_v53  ;;  %v4780_v60 = vpop.f32.mrf.mxu0  ;;  %4804 = vmatprep.mubr.msk.bf16.mxu1 %vm489_vm1, %v5769_v54  ;;  %v978_v61 = vld [vmem:[#allocation2 + $0xa8] sm:$0xff] }
 0x104   : > { %899 = vst.msk [vmem:[#allocation2 + $0xe8] sm:$0xff] %vm489_vm1, %v793_v56  ;;  %v796_v0 = vmax.f32 %v764_v57, 0.0  ;;  %v762_v2 = vadd.f32 %v5689_v1, %v723_v58  ;;  %v728_v3 = vmul.f32 %v4780_v60, %v5684_v63  ;;  %4838 = vmatprep.mubr.msk.bf16.mxu0 %vm489_vm1, %v5776_v59  ;;  %v929_v31 = vld [vmem:[#allocation2 + $0xa7] sm:$0xff] }
 0x105   : > { %v640_v6 = vpop.f32.mrf.mxu0  ;;  %v981_v14 = vld [vmem:[#allocation2 + $0xd0] sm:$0xff] }
 0x106   : > { %902 = vst.msk [vmem:[#allocation2 + $0x110] sm:$0xff] %vm489_vm1, %v796_v0  ;;  %v794_v7 = vmax.f32 %v762_v2, 0.0  ;;  %v767_v8 = vadd.f32 %v5689_v1, %v728_v3  ;;  %v726_v13 = vmul.f32 %v5684_v63, %v640_v6  ;;  %v932_v24 = vld [vmem:[#allocation2 + $0xcf] sm:$0xff]  ;;  %v5797_v37 = vpack.c.bf16 %v981_v14, %v980_v32 }
 0x107   : > { %v4781_v17 = vpop.f32.mrf.mxu0  ;;  %v979_v18 = vld [vmem:[#allocation2 + $0xb0] sm:$0xff]  ;;  %v5804_v44 = vpack.c.bf16 %v932_v24, %v931_v38 }
 0x108   : > { %v930_v62 = vld [vmem:[#allocation2 + $0xaf] sm:$0xff]  ;;  %900 = vst.msk [vmem:[#allocation2 + $0xf0] sm:$0xff] %vm489_vm1, %v794_v7  ;;  %v799_v25 = vmax.f32 %v767_v8, 0.0  ;;  %v765_v26 = vadd.f32 %v5689_v1, %v726_v13  ;;  %v729_v29 = vmul.f32 %v4781_v17, %v5684_v63  ;;  %v5793_v30 = vpack.c.bf16 %v979_v18, %v978_v61 }
 0x109   : > { %v643_v35 = vpop.f32.mrf.mxu0  ;;  %v5795_v36 = vpack.c.bf16 %v930_v62, %v929_v31  ;;  %v984_v18 = vld [vmem:[#allocation2 + $0x108] sm:$0xff] }
 0x10a   : > { %905 = vst.msk [vmem:[#allocation2 + $0x148] sm:$0xff] %vm489_vm1, %v799_v25  ;;  %v797_v41 = vmax.f32 %v765_v26, 0.0  ;;  %v768_v42 = vadd.f32 %v5689_v1, %v729_v29  ;;  %v727_v43 = vmul.f32 %v5684_v63, %v643_v35  ;;  %4805 = vmatmul.mubr.msk.bf16.gmra.mxu1 %vm489_vm1, %v5793_v30  ;;  %v935_v26 = vld [vmem:[#allocation2 + $0x107] sm:$0xff] }
 0x10b   : > { %4839 = vmatmul.mubr.msk.bf16.gmra.mxu0 %vm489_vm1, %v5795_v36  ;;  %v4784_v47 = vpop.f32.mrf.mxu0  ;;  %4808 = vmatprep.mubr.msk.bf16.mxu1 %vm489_vm1, %v5797_v37  ;;  %v982_v60 = vld [vmem:[#allocation2 + $0xe8] sm:$0xff] }
 0x10c   : > { %903 = vst.msk [vmem:[#allocation2 + $0x128] sm:$0xff] %vm489_vm1, %v797_v41  ;;  %v800_v50 = vmax.f32 %v768_v42, 0.0  ;;  %v766_v51 = vadd.f32 %v5689_v1, %v727_v43  ;;  %v732_v52 = vmul.f32 %v4784_v47, %v5684_v63  ;;  %4842 = vmatprep.mubr.msk.bf16.mxu0 %vm489_vm1, %v5804_v44  ;;  %v933_v17 = vld [vmem:[#allocation2 + $0xe7] sm:$0xff] }
 0x10d   : > { %v656_v55 = vpop.f32.mrf.mxu0  ;;  %v985_v0 = vld [vmem:[#allocation2 + $0x110] sm:$0xff] }
 0x10e   : > { %906 = vst.msk [vmem:[#allocation2 + $0x150] sm:$0xff] %vm489_vm1, %v800_v50  ;;  %v798_v56 = vmax.f32 %v766_v51, 0.0  ;;  %v771_v57 = vadd.f32 %v5689_v1, %v732_v52  ;;  %v730_v58 = vmul.f32 %v5684_v63, %v656_v55  ;;  %v936_v7 = vld [vmem:[#allocation2 + $0x10f] sm:$0xff]  ;;  %v5825_v25 = vpack.c.bf16 %v985_v0, %v984_v18 }
 0x10f   : > { %v4785_v2 = vpop.f32.mrf.mxu0  ;;  %v983_v3 = vld [vmem:[#allocation2 + $0xf0] sm:$0xff]  ;;  %v5832_v35 = vpack.c.bf16 %v936_v7, %v935_v26 }
 0x110   : > { %v934_v6 = vld [vmem:[#allocation2 + $0xef] sm:$0xff]  ;;  %904 = vst.msk [vmem:[#allocation2 + $0x130] sm:$0xff] %vm489_vm1, %v798_v56  ;;  %v803_v8 = vmax.f32 %v771_v57, 0.0  ;;  %v769_v13 = vadd.f32 %v5689_v1, %v730_v58  ;;  %v733_v61 = vmul.f32 %v4785_v2, %v5684_v63  ;;  %v5821_v14 = vpack.c.bf16 %v983_v3, %v982_v60 }
 0x111   : > { %v659_v62 = vpop.f32.mrf.mxu0  ;;  %v5823_v24 = vpack.c.bf16 %v934_v6, %v933_v17 }
 0x112   : > { %909 = vst.msk [vmem:[#allocation2 + $0x188] sm:$0xff] %vm489_vm1, %v803_v8  ;;  %v801_v29 = vmax.f32 %v769_v13, 0.0  ;;  %v772_v31 = vadd.f32 %v5689_v1, %v733_v61  ;;  %v731_v32 = vmul.f32 %v5684_v63, %v659_v62  ;;  %4809 = vmatmul.mubr.msk.bf16.gmra.mxu1 %vm489_vm1, %v5821_v14  ;;  %v988_v13 = vld [vmem:[#allocation2 + $0x148] sm:$0xff] }
 0x113   : > { %4843 = vmatmul.mubr.msk.bf16.gmra.mxu0 %vm489_vm1, %v5823_v24  ;;  %v4788_v38 = vpop.f32.mrf.mxu0  ;;  %4812 = vmatprep.mubr.msk.bf16.mxu1 %vm489_vm1, %v5825_v25  ;;  %v986_v55 = vld [vmem:[#allocation2 + $0x128] sm:$0xff] }
 0x114   : > { %907 = vst.msk [vmem:[#allocation2 + $0x168] sm:$0xff] %vm489_vm1, %v801_v29  ;;  %v804_v41 = vmax.f32 %v772_v31, 0.0  ;;  %v770_v42 = vadd.f32 %v5689_v1, %v731_v32  ;;  %v736_v43 = vmul.f32 %v4788_v38, %v5684_v63  ;;  %4846 = vmatprep.mubr.msk.bf16.mxu0 %vm489_vm1, %v5832_v35  ;;  %v937_v8 = vld [vmem:[#allocation2 + $0x127] sm:$0xff] }
 0x115   : > { %v672_v47 = vpop.f32.mrf.mxu0  ;;  %v989_v56 = vld [vmem:[#allocation2 + $0x150] sm:$0xff]  ;;  %v939_v62 = vld [vmem:[#allocation2 + $0x147] sm:$0xff] }
 0x116   : > { %910 = vst.msk [vmem:[#allocation2 + $0x190] sm:$0xff] %vm489_vm1, %v804_v41  ;;  %v802_v50 = vmax.f32 %v770_v42, 0.0  ;;  %v775_v51 = vadd.f32 %v5689_v1, %v736_v43  ;;  %v734_v52 = vmul.f32 %v5684_v63, %v672_v47  ;;  %v940_v0 = vld [vmem:[#allocation2 + $0x14f] sm:$0xff]  ;;  %v5853_v18 = vpack.c.bf16 %v989_v56, %v988_v13 }
 0x117   : > { %v4789_v57 = vpop.f32.mrf.mxu0  ;;  %v987_v58 = vld [vmem:[#allocation2 + $0x130] sm:$0xff]  ;;  %v5860_v32 = vpack.c.bf16 %v940_v0, %v939_v62 }
 0x118   : > { %v938_v60 = vld [vmem:[#allocation2 + $0x12f] sm:$0xff]  ;;  %908 = vst.msk [vmem:[#allocation2 + $0x170] sm:$0xff] %vm489_vm1, %v802_v50  ;;  %v807_v2 = vmax.f32 %v775_v51, 0.0  ;;  %v773_v3 = vadd.f32 %v5689_v1, %v734_v52  ;;  %v737_v6 = vmul.f32 %v4789_v57, %v5684_v63  ;;  %v5849_v7 = vpack.c.bf16 %v987_v58, %v986_v55 }
 0x119   : > { %v675_v61 = vpop.f32.mrf.mxu0  ;;  %v5851_v17 = vpack.c.bf16 %v938_v60, %v937_v8 }
 0x11a   : > { %913 = vst.msk [vmem:[#allocation2 + $0x1c8] sm:$0xff] %vm489_vm1, %v807_v2  ;;  %v805_v26 = vmax.f32 %v773_v3, 0.0  ;;  %v776_v29 = vadd.f32 %v5689_v1, %v737_v6  ;;  %v735_v31 = vmul.f32 %v5684_v63, %v675_v61  ;;  %4813 = vmatmul.mubr.msk.bf16.gmra.mxu1 %vm489_vm1, %v5849_v7  ;;  %v992_v61 = vld [vmem:[#allocation2 + $0x188] sm:$0xff] }
 0x11b   : > { %4847 = vmatmul.mubr.msk.bf16.gmra.mxu0 %vm489_vm1, %v5851_v17  ;;  %v4792_v38 = vpop.f32.mrf.mxu0  ;;  %4816 = vmatprep.mubr.msk.bf16.mxu1 %vm489_vm1, %v5853_v18  ;;  %v990_v55 = vld [vmem:[#allocation2 + $0x168] sm:$0xff] }
 0x11c   : > { %911 = vst.msk [vmem:[#allocation2 + $0x1a8] sm:$0xff] %vm489_vm1, %v805_v26  ;;  %v808_v41 = vmax.f32 %v776_v29, 0.0  ;;  %v774_v42 = vadd.f32 %v5689_v1, %v735_v31  ;;  %v740_v43 = vmul.f32 %v4792_v38, %v5684_v63  ;;  %4850 = vmatprep.mubr.msk.bf16.mxu0 %vm489_vm1, %v5860_v32  ;;  %v941_v13 = vld [vmem:[#allocation2 + $0x167] sm:$0xff] }
 0x11d   : > { %v688_v47 = vpop.f32.mrf.mxu0  ;;  %v993_v56 = vld [vmem:[#allocation2 + $0x190] sm:$0xff]  ;;  %v943_v31 = vld [vmem:[#allocation2 + $0x187] sm:$0xff] }
 0x11e   : > { %914 = vst.msk [vmem:[#allocation2 + $0x1d0] sm:$0xff] %vm489_vm1, %v808_v41  ;;  %v806_v50 = vmax.f32 %v774_v42, 0.0  ;;  %v779_v51 = vadd.f32 %v5689_v1, %v740_v43  ;;  %v738_v52 = vmul.f32 %v5684_v63, %v688_v47  ;;  %v944_v0 = vld [vmem:[#allocation2 + $0x18f] sm:$0xff]  ;;  %v5881_v29 = vpack.c.bf16 %v993_v56, %v992_v61 }
 0x11f   : > { %v4793_v57 = vpop.f32.mrf.mxu0  ;;  %v991_v58 = vld [vmem:[#allocation2 + $0x170] sm:$0xff]  ;;  %v5888_v43 = vpack.c.bf16 %v944_v0, %v943_v31 }
 0x120   : > { %v942_v60 = vld [vmem:[#allocation2 + $0x16f] sm:$0xff]  ;;  %912 = vst.msk [vmem:[#allocation2 + $0x1b0] sm:$0xff] %vm489_vm1, %v806_v50  ;;  %v811_v2 = vmax.f32 %v779_v51, 0.0  ;;  %v777_v3 = vadd.f32 %v5689_v1, %v738_v52  ;;  %v741_v6 = vmul.f32 %v4793_v57, %v5684_v63  ;;  %v5877_v8 = vpack.c.bf16 %v991_v58, %v990_v55 }
 0x121   : > { %v691_v62 = vpop.f32.mrf.mxu0  ;;  %v5879_v26 = vpack.c.bf16 %v942_v60, %v941_v13  ;;  %v1442_v13 = vld [vmem:[#allocation2 + $0x9] sm:$0xff]  ;;  %v1443_v61 = vld [vmem:[#allocation2 + $0x11] sm:$0xff] }
 0x122   : > { %917 = vst.msk [vmem:[#allocation2 + $0x208] sm:$0xff] %vm489_vm1, %v811_v2  ;;  %v809_v38 = vmax.f32 %v777_v3, 0.0  ;;  %v780_v41 = vadd.f32 %v5689_v1, %v741_v6  ;;  %v739_v42 = vmul.f32 %v5684_v63, %v691_v62  ;;  %4817 = vmatmul.mubr.msk.bf16.gmra.mxu1 %vm489_vm1, %v5877_v8  ;;  %v996_v2 = vld [vmem:[#allocation2 + $0x1c8] sm:$0xff]  ;;  %v1467_v49 = vld [vmem:[#allocation2 + $0x191] sm:$0xff] }
 0x123   : > { %4851 = vmatmul.mubr.msk.bf16.gmra.mxu0 %vm489_vm1, %v5879_v26  ;;  %4820 = vmatprep.mubr.msk.bf16.mxu1 %vm489_vm1, %v5881_v29  ;;  %v994_v51 = vld [vmem:[#allocation2 + $0x1a8] sm:$0xff] }
 0x124   : > { %915 = vst.msk [vmem:[#allocation2 + $0x1e8] sm:$0xff] %vm489_vm1, %v809_v38  ;;  %v812_v47 = vmax.f32 %v780_v41, 0.0  ;;  %v778_v50 = vadd.f32 %v5689_v1, %v739_v42  ;;  %4854 = vmatprep.mubr.msk.bf16.mxu0 %vm489_vm1, %v5888_v43  ;;  %v945_v52 = vld [vmem:[#allocation2 + $0x1a7] sm:$0xff]  ;;  %v1474_v42 = vpack.c.bf16 %v1443_v61, %v1442_v13  ;;  %v1451_v61 = vld [vmem:[#allocation2 + $0x91] sm:$0xff] }
 0x125   : > { %v997_v55 = vld [vmem:[#allocation2 + $0x1d0] sm:$0xff]  ;;  %v947_v3 = vld [vmem:[#allocation2 + $0x1c7] sm:$0xff] }
 0x126   : > { %918 = vst.msk [vmem:[#allocation2 + $0x210] sm:$0xff] %vm489_vm1, %v812_v47  ;;  %v810_v63 = vmax.f32 %v778_v50, 0.0  ;;  %v948_v58 = vld [vmem:[#allocation2 + $0x1cf] sm:$0xff]  ;;  %v5904_v1 = vpack.c.bf16 %v997_v55, %v996_v2  ;;  %v2423_v2 = vsel %vm538_vm0, %v5746_v23, 0 }
 0x127   : > { %v995_v56 = vld [vmem:[#allocation2 + $0x1b0] sm:$0xff]  ;;  %v5908_v6 = vpack.c.bf16 %v948_v58, %v947_v3 }
 0x128   : > { %v946_v57 = vld [vmem:[#allocation2 + $0x1af] sm:$0xff]  ;;  %916 = vst.msk [vmem:[#allocation2 + $0x1f0] sm:$0xff] %vm489_vm1, %v810_v63  ;;  %v5900_v60 = vpack.c.bf16 %v995_v56, %v994_v51 }
 0x129   : > { %v5902_v0 = vpack.c.bf16 %v946_v57, %v945_v52  ;;  %v1444_v63 = vld [vmem:[#allocation2 + $0x29] sm:$0xff]  ;;  %v1445_v51 = vld [vmem:[#allocation2 + $0x31] sm:$0xff]  ;;  %v2129_v57 = vsel %vm538_vm0, %v5739_v20, 0 }
 0x12a   : > { %4821 = vmatmul.mubr.msk.bf16.gmra.mxu1 %vm489_vm1, %v5900_v60  ;;  %v1446_v52 = vld [vmem:[#allocation2 + $0x49] sm:$0xff]  ;;  %v1447_v55 = vld [vmem:[#allocation2 + $0x51] sm:$0xff]  ;;  %v5927_v56 = vpack.c.bf16 %v1445_v51, %v1444_v63 }
 0x12b   : > { %4855 = vmatmul.mubr.msk.bf16.gmra.mxu0 %vm489_vm1, %v5902_v0  ;;  %4824 = vmatprep.mubr.msk.bf16.mxu1 %vm489_vm1, %v5904_v1  ;;  %v998_v62 = vld [vmem:[#allocation2 + $0x1e8] sm:$0xff]  ;;  %v5933_v58 = vpack.c.bf16 %v1447_v55, %v1446_v52  ;;  %v1449_v3 = vld [vmem:[#allocation2 + $0x71] sm:$0xff] }
 0x12c   : > { %4858 = vmatprep.mubr.msk.bf16.mxu0 %vm489_vm1, %v5908_v6  ;;  %v949_v38 = vld [vmem:[#allocation2 + $0x1e7] sm:$0xff]  ;;  %v1455_v63 = vld [vmem:[#allocation2 + $0xd1] sm:$0xff] }
 0x12d   : > { %v5947_v20 = vld [vmem:[%s7157_s4 + $0xe] sm:$0x3]  ;;  %v1471_v45 = vld [vmem:[#allocation2 + $0x1d1] sm:$0xff] }
 0x12e   : > { %v1448_v23 = vld [vmem:[#allocation2 + $0x69] sm:$0xff] }
 0x12f   : > { %v999_v31 = vld [vmem:[#allocation2 + $0x1f0] sm:$0xff]  ;;  %v1766_v34 = vld [vmem:[#allocation2 + $0x207] sm:$0xff] }
 0x130   : > { %v950_v41 = vld [vmem:[#allocation2 + $0x1ef] sm:$0xff]  ;;  %v5916_v47 = vpack.c.bf16 %v999_v31, %v998_v62  ;;  %v5957_v62 = vpack.c.bf16 %v1449_v3, %v1448_v23 }
 0x131   : > { %v5918_v50 = vpack.c.bf16 %v950_v41, %v949_v38  ;;  %v1450_v13 = vld [vmem:[#allocation2 + $0x89] sm:$0xff]  ;;  %v1453_v41 = vld [vmem:[#allocation2 + $0xb1] sm:$0xff] }
 0x132   : > { %4825 = vmatmul.mubr.msk.bf16.gmra.mxu1 %vm489_vm1, %v5916_v47  ;;  %v5959_v31 = vpack.c.bf16 %v1451_v61, %v1450_v13  ;;  %v1452_v38 = vld [vmem:[#allocation2 + $0xa9] sm:$0xff]  ;;  %v1459_v23 = vld [vmem:[#allocation2 + $0x111] sm:$0xff] }
 0x133   : > { %4859 = vmatmul.mubr.msk.bf16.gmra.mxu0 %vm489_vm1, %v5918_v50  ;;  %4864 = vmatprep.mubr.msk.bf16.mxu1 %vm489_vm1, %v1474_v42  ;;  %v1454_v42 = vld [vmem:[#allocation2 + $0xc9] sm:$0xff]  ;;  %v5969_v51 = vpack.c.bf16 %v1453_v41, %v1452_v38  ;;  %v1461_v38 = vld [vmem:[#allocation2 + $0x131] sm:$0xff] }
 0x134   : > { %4898 = vmatprep.mubr.msk.bf16.mxu0 %vm489_vm1, %v5723_v11  ;;  %v5940_v11 = vld [vmem:[%s7157_s4 + $0xc] sm:$0x3]  ;;  %v5971_v52 = vpack.c.bf16 %v1455_v63, %v1454_v42  ;;  %v1463_v42 = vld [vmem:[#allocation2 + $0x151] sm:$0xff] }
 0x135   : > { %v1456_v55 = vld [vmem:[#allocation2 + $0xe9] sm:$0xff] }
 0x136   : > { %v1460_v61 = vld [vmem:[#allocation2 + $0x129] sm:$0xff] }
 0x137   : > { %v1462_v41 = vld [vmem:[#allocation2 + $0x149] sm:$0xff]  ;;  %v5993_v63 = vpack.c.bf16 %v1461_v38, %v1460_v61 }
 0x138   : > { %v1470_v46 = vld [vmem:[#allocation2 + $0x1c9] sm:$0xff] }
 0x139   : > { %v1767_v40 = vld [vmem:[#allocation2 + $0x20f] sm:$0xff] }
 0x13a   : > { %4865 = vmatmul.mubr.msk.bf16.vlgmr.msra.gmra.mxu1 %vm489_vm1, %v5927_v56  ;;  %v6023_v33 = vpack.c.bf16 %v1767_v40, %v1766_v34  ;;  %v3012_v34 = vsel %vm538_vm0, %v5947_v20, 0  ;;  %v4494_v40 = vld [vmem:[%s7157_s4 + $0x10] sm:$0x3] }
 0x13b   : > { %4899 = vmatmul.mubr.msk.bf16.vlgmr.msra.gmra.mxu0 %vm489_vm1, %v5734_v19  ;;  %4931 = vmatpush3.bf16.msra.mxu1 %v2129_v57  ;;  %v1457_v57 = vld [vmem:[#allocation2 + $0xf1] sm:$0xff] }
 0x13c   : > { %4868 = vmatprep.mubr.msk.bf16.mxu1 %vm489_vm1, %v5933_v58  ;;  %4902 = vmatprep.mubr.msk.bf16.mxu0 %vm489_vm1, %v5767_v53  ;;  %v5981_v3 = vpack.c.bf16 %v1457_v57, %v1456_v55  ;;  %v5995_v55 = vpack.c.bf16 %v1463_v42, %v1462_v41  ;;  %v1464_v57 = vld [vmem:[#allocation2 + $0x169] sm:$0xff]  ;;  %v1469_v42 = vld [vmem:[#allocation2 + $0x1b1] sm:$0xff] }
 0x13d   : > { %4965 = vmatpush3.bf16.msra.mxu0 %v2423_v2  ;;  %5175 = vmatprep.subr.msk.bf16.mxu1 %vm538_vm0, %v5940_v11  ;;  %v1458_v2 = vld [vmem:[#allocation2 + $0x109] sm:$0xff] }
 0x13e   : > { %5176 = vmatprep.subr.msk.bf16.mxu0 %vm538_vm0, %v5947_v20  ;;  %v5983_v13 = vpack.c.bf16 %v1459_v23, %v1458_v2  ;;  %v1465_v2 = vld [vmem:[#allocation2 + $0x171] sm:$0xff]  ;;  %v1466_v23 = vld [vmem:[#allocation2 + $0x189] sm:$0xff] }
 0x13f   : > { %v6005_v61 = vpack.c.bf16 %v1465_v2, %v1464_v57  ;;  %v6007_v38 = vpack.c.bf16 %v1467_v49, %v1466_v23  ;;  %v1468_v41 = vld [vmem:[#allocation2 + $0x1a9] sm:$0xff]  ;;  %v1488_v2 = vpack.c.bf16 %v1471_v45, %v1470_v46  ;;  %v1473_v23 = vld [vmem:[#allocation2 + $0x1f1] sm:$0xff]  ;;  %v2718_v45 = vsel %vm538_vm0, %v5940_v11, 0 }
 0x140   : > { %v1487_v57 = vpack.c.bf16 %v1469_v42, %v1468_v41  ;;  %v1472_v49 = vld [vmem:[#allocation2 + $0x1e9] sm:$0xff] }
 0x141   : > { %v1489_v39 = vpack.c.bf16 %v1473_v23, %v1472_v49  ;;  %v2061_v46 = vld [vmem:[#allocation2 + $0x210] sm:$0xff]  ;;  %v2060_v11 = vld [vmem:[#allocation2 + $0x208] sm:$0xff] }
 0x142   : > { %4869 = vmatmul.mubr.msk.bf16.gmra.mxu1 %vm489_vm1, %v5957_v62  ;;  %v6093_v20 = vpack.c.bf16 %v2061_v46, %v2060_v11 }
 0x143   : > { %4903 = vmatmul.mubr.msk.bf16.gmra.mxu0 %vm489_vm1, %v5776_v59  ;;  %4872 = vmatprep.mubr.msk.bf16.mxu1 %vm489_vm1, %v5959_v31 }
 0x144   : > { %4906 = vmatprep.mubr.msk.bf16.mxu0 %vm489_vm1, %v5795_v36 }
 0x14a   : > { %4873 = vmatmul.mubr.msk.bf16.gmra.mxu1 %vm489_vm1, %v5969_v51 }
 0x14b   : > { %4907 = vmatmul.mubr.msk.bf16.gmra.mxu0 %vm489_vm1, %v5804_v44  ;;  %4876 = vmatprep.mubr.msk.bf16.mxu1 %vm489_vm1, %v5971_v52 }
 0x14c   : > { %4910 = vmatprep.mubr.msk.bf16.mxu0 %vm489_vm1, %v5823_v24 }
 0x152   : > { %4877 = vmatmul.mubr.msk.bf16.gmra.mxu1 %vm489_vm1, %v5981_v3 }
 0x153   : > { %4911 = vmatmul.mubr.msk.bf16.gmra.mxu0 %vm489_vm1, %v5832_v35  ;;  %4880 = vmatprep.mubr.msk.bf16.mxu1 %vm489_vm1, %v5983_v13 }
 0x154   : > { %4914 = vmatprep.mubr.msk.bf16.mxu0 %vm489_vm1, %v5851_v17 }
 0x15a   : > { %4881 = vmatmul.mubr.msk.bf16.gmra.mxu1 %vm489_vm1, %v5993_v63 }
 0x15b   : > { %4915 = vmatmul.mubr.msk.bf16.gmra.mxu0 %vm489_vm1, %v5860_v32  ;;  %4884 = vmatprep.mubr.msk.bf16.mxu1 %vm489_vm1, %v5995_v55 }
 0x15c   : > { %4918 = vmatprep.mubr.msk.bf16.mxu0 %vm489_vm1, %v5879_v26 }
 0x162   : > { %4885 = vmatmul.mubr.msk.bf16.gmra.mxu1 %vm489_vm1, %v6005_v61 }
 0x163   : > { %4919 = vmatmul.mubr.msk.bf16.gmra.mxu0 %vm489_vm1, %v5888_v43  ;;  %4888 = vmatprep.mubr.msk.bf16.mxu1 %vm489_vm1, %v6007_v38 }
 0x164   : > { %4922 = vmatprep.mubr.msk.bf16.mxu0 %vm489_vm1, %v5902_v0 }
 0x16a   : > { %4889 = vmatmul.mubr.msk.bf16.gmra.mxu1 %vm489_vm1, %v1487_v57 }
 0x16b   : > { %4923 = vmatmul.mubr.msk.bf16.gmra.mxu0 %vm489_vm1, %v5908_v6  ;;  %4892 = vmatprep.mubr.msk.bf16.mxu1 %vm489_vm1, %v1488_v2 }
 0x16c   : > { %4926 = vmatprep.mubr.msk.bf16.mxu0 %vm489_vm1, %v5918_v50 }
 0x172   : > { %4893 = vmatmul.mubr.msk.bf16.gmra.mxu1 %vm489_vm1, %v1489_v39 }
 0x173   : > { %4927 = vmatmul.mubr.msk.bf16.gmra.mxu0 %vm489_vm1, %v6023_v33  ;;  %4932 = vmatprep.mubr.msk.bf16.mxu1 %vm489_vm1, %v5721_v4  ;;  %v2354_v4 = vld [vmem:[#allocation2 + $0x209] sm:$0xff] }
 0x174   : > { %4966 = vmatprep.mubr.msk.bf16.mxu0 %vm489_vm1, %v5927_v56  ;;  %v2355_v56 = vld [vmem:[#allocation2 + $0x211] sm:$0xff] }
 0x175   : > { %v6095_v41 = vpack.c.bf16 %v2355_v56, %v2354_v4 }
 0x17a   : > { %4933 = vmatmul.mubr.msk.bf16.vlgmr.msra.gmra.mxu1 %vm489_vm1, %v5725_v12 }
 0x17b   : > { %4967 = vmatmul.mubr.msk.bf16.vlgmr.msra.gmra.mxu0 %vm489_vm1, %v5933_v58  ;;  %4999 = vmatpush3.bf16.msra.mxu1 %v2718_v45 }
 0x17c   : > { %4936 = vmatprep.mubr.msk.bf16.mxu1 %vm489_vm1, %v5765_v48  ;;  %4970 = vmatprep.mubr.msk.bf16.mxu0 %vm489_vm1, %v5957_v62 }
 0x17d   : > { %5033 = vmatpush3.bf16.msra.mxu0 %v3012_v34  ;;  %5177 = vmatprep.subr.msk.bf16.mxu1 %vm538_vm0, %v4494_v40 }
 0x182   : > { %4937 = vmatmul.mubr.msk.bf16.gmra.mxu1 %vm489_vm1, %v5769_v54 }
 0x183   : > { %4971 = vmatmul.mubr.msk.bf16.gmra.mxu0 %vm489_vm1, %v5959_v31  ;;  %4940 = vmatprep.mubr.msk.bf16.mxu1 %vm489_vm1, %v5793_v30 }
 0x184   : > { %4974 = vmatprep.mubr.msk.bf16.mxu0 %vm489_vm1, %v5969_v51 }
 0x18a   : > { %4941 = vmatmul.mubr.msk.bf16.gmra.mxu1 %vm489_vm1, %v5797_v37 }
 0x18b   : > { %4975 = vmatmul.mubr.msk.bf16.gmra.mxu0 %vm489_vm1, %v5971_v52  ;;  %4944 = vmatprep.mubr.msk.bf16.mxu1 %vm489_vm1, %v5821_v14 }
 0x18c   : > { %4978 = vmatprep.mubr.msk.bf16.mxu0 %vm489_vm1, %v5981_v3 }
 0x192   : > { %4945 = vmatmul.mubr.msk.bf16.gmra.mxu1 %vm489_vm1, %v5825_v25 }
 0x193   : > { %4979 = vmatmul.mubr.msk.bf16.gmra.mxu0 %vm489_vm1, %v5983_v13  ;;  %4948 = vmatprep.mubr.msk.bf16.mxu1 %vm489_vm1, %v5849_v7 }
 0x194   : > { %4982 = vmatprep.mubr.msk.bf16.mxu0 %vm489_vm1, %v5993_v63 }
 0x19a   : > { %4949 = vmatmul.mubr.msk.bf16.gmra.mxu1 %vm489_vm1, %v5853_v18 }
 0x19b   : > { %4983 = vmatmul.mubr.msk.bf16.gmra.mxu0 %vm489_vm1, %v5995_v55  ;;  %4952 = vmatprep.mubr.msk.bf16.mxu1 %vm489_vm1, %v5877_v8 }
 0x19c   : > { %4986 = vmatprep.mubr.msk.bf16.mxu0 %vm489_vm1, %v6005_v61 }
 0x1a2   : > { %4953 = vmatmul.mubr.msk.bf16.gmra.mxu1 %vm489_vm1, %v5881_v29 }
 0x1a3   : > { %4987 = vmatmul.mubr.msk.bf16.gmra.mxu0 %vm489_vm1, %v6007_v38  ;;  %4956 = vmatprep.mubr.msk.bf16.mxu1 %vm489_vm1, %v5900_v60 }
 0x1a4   : > { %4990 = vmatprep.mubr.msk.bf16.mxu0 %vm489_vm1, %v1487_v57 }
 0x1aa   : > { %4957 = vmatmul.mubr.msk.bf16.gmra.mxu1 %vm489_vm1, %v5904_v1 }
 0x1ab   : > { %4991 = vmatmul.mubr.msk.bf16.gmra.mxu0 %vm489_vm1, %v1488_v2  ;;  %4960 = vmatprep.mubr.msk.bf16.mxu1 %vm489_vm1, %v5916_v47 }
 0x1ac   : > { %4994 = vmatprep.mubr.msk.bf16.mxu0 %vm489_vm1, %v1489_v39  ;;  %v3306_v39 = vsel %vm538_vm0, %v4494_v40, 0 }
 0x1b2   : > { %4961 = vmatmul.mubr.msk.bf16.gmra.mxu1 %vm489_vm1, %v6093_v20 }
 0x1b3   : > { %4995 = vmatmul.mubr.msk.bf16.gmra.mxu0 %vm489_vm1, %v6095_v41  ;;  %5000 = vmatprep.mubr.msk.bf16.mxu1 %vm489_vm1, %v5734_v19 }
 0x1b4   : > { %5034 = vmatprep.mubr.msk.bf16.mxu0 %vm489_vm1, %v5725_v12 }
 0x1ba   : > { %v4798_v42 = vpop.f32.mrf.mxu1  ;;  %5001 = vmatmul.mubr.msk.bf16.vlgmr.msra.gmra.mxu1 %vm489_vm1, %v5767_v53 }
 0x1bb   : > { %v4832_v57 = vpop.f32.mrf.mxu0  ;;  %5035 = vmatmul.mubr.msk.bf16.vlgmr.msra.gmra.mxu0 %vm489_vm1, %v5765_v48  ;;  %5067 = vmatpush3.bf16.msra.mxu1 %v3306_v39 }
 0x1bc   : > { %v6110_v2 = vadd.f32 %v4832_v57, %v4798_v42  ;;  %5004 = vmatprep.mubr.msk.bf16.mxu1 %vm489_vm1, %v5776_v59  ;;  %5038 = vmatprep.mubr.msk.bf16.mxu0 %vm489_vm1, %v5769_v54  ;;  %v1103_v12 = vpop.f32.mrf.mxu1 }
 0x1bd   : > { %v1315_v19 = vpop.f32.mrf.mxu0 }
 0x1be   : > { %v6116_v49 = vadd.f32 %v1315_v19, %v1103_v12  ;;  %v4799_v23 = vpop.f32.mrf.mxu1 }
 0x1bf   : > { %v4833_v45 = vpop.f32.mrf.mxu0 }
 0x1c0   : > { %v6118_v53 = vadd.f32 %v4833_v45, %v4799_v23  ;;  %v1106_v34 = vpop.f32.mrf.mxu1 }
 0x1c1   : > { %v1318_v40 = vpop.f32.mrf.mxu0 }
 0x1c2   : > { %v6120_v48 = vadd.f32 %v1318_v40, %v1106_v34  ;;  %v4802_v46 = vpop.f32.mrf.mxu1  ;;  %5005 = vmatmul.mubr.msk.bf16.gmra.mxu1 %vm489_vm1, %v5795_v36 }
 0x1c3   : > { %v4836_v59 = vpop.f32.mrf.mxu0  ;;  %5039 = vmatmul.mubr.msk.bf16.gmra.mxu0 %vm489_vm1, %v5793_v30  ;;  %5008 = vmatprep.mubr.msk.bf16.mxu1 %vm489_vm1, %v5804_v44 }
 0x1c4   : > { %v6128_v54 = vadd.f32 %v4836_v59, %v4802_v46  ;;  %5042 = vmatprep.mubr.msk.bf16.mxu0 %vm489_vm1, %v5797_v37  ;;  %v1119_v4 = vpop.f32.mrf.mxu1 }
 0x1c5   : > { %v1331_v56 = vpop.f32.mrf.mxu0 }
 0x1c6   : > { %v6132_v11 = vadd.f32 %v1331_v56, %v1119_v4  ;;  %v4803_v39 = vpop.f32.mrf.mxu1 }
 0x1c7   : > { %v4837_v42 = vpop.f32.mrf.mxu0 }
 0x1c8   : > { %v6134_v57 = vadd.f32 %v4837_v42, %v4803_v39  ;;  %v1122_v36 = vpop.f32.mrf.mxu1 }
 0x1c9   : > { %v1334_v12 = vpop.f32.mrf.mxu0 }
 0x1ca   : > { %v6136_v19 = vadd.f32 %v1334_v12, %v1122_v36  ;;  %v4806_v30 = vpop.f32.mrf.mxu1  ;;  %5009 = vmatmul.mubr.msk.bf16.gmra.mxu1 %vm489_vm1, %v5823_v24 }
 0x1cb   : > { %v4840_v44 = vpop.f32.mrf.mxu0  ;;  %5043 = vmatmul.mubr.msk.bf16.gmra.mxu0 %vm489_vm1, %v5821_v14  ;;  %5012 = vmatprep.mubr.msk.bf16.mxu1 %vm489_vm1, %v5832_v35 }
 0x1cc   : > { %v6144_v37 = vadd.f32 %v4840_v44, %v4806_v30  ;;  %5046 = vmatprep.mubr.msk.bf16.mxu0 %vm489_vm1, %v5825_v25  ;;  %v1135_v23 = vpop.f32.mrf.mxu1 }
 0x1cd   : > { %v1347_v45 = vpop.f32.mrf.mxu0 }
 0x1ce   : > { %v6148_v34 = vadd.f32 %v1347_v45, %v1135_v23  ;;  %v4807_v40 = vpop.f32.mrf.mxu1 }
 0x1cf   : > { %v4841_v46 = vpop.f32.mrf.mxu0 }
 0x1d0   : > { %v6150_v59 = vadd.f32 %v4841_v46, %v4807_v40  ;;  %v1138_v24 = vpop.f32.mrf.mxu1 }
 0x1d1   : > { %v1350_v4 = vpop.f32.mrf.mxu0 }
 0x1d2   : > { %v6152_v56 = vadd.f32 %v1350_v4, %v1138_v24  ;;  %v4810_v14 = vpop.f32.mrf.mxu1  ;;  %5013 = vmatmul.mubr.msk.bf16.gmra.mxu1 %vm489_vm1, %v5851_v17 }
 0x1d3   : > { %v4844_v35 = vpop.f32.mrf.mxu0  ;;  %5047 = vmatmul.mubr.msk.bf16.gmra.mxu0 %vm489_vm1, %v5849_v7  ;;  %5016 = vmatprep.mubr.msk.bf16.mxu1 %vm489_vm1, %v5860_v32 }
 0x1d4   : > { %v6160_v25 = vadd.f32 %v4844_v35, %v4810_v14  ;;  %5050 = vmatprep.mubr.msk.bf16.mxu0 %vm489_vm1, %v5853_v18  ;;  %v1151_v39 = vpop.f32.mrf.mxu1 }
 0x1d5   : > { %v1363_v42 = vpop.f32.mrf.mxu0 }
 0x1d6   : > { %v6164_v36 = vadd.f32 %v1363_v42, %v1151_v39  ;;  %v4811_v12 = vpop.f32.mrf.mxu1 }
 0x1d7   : > { %v4845_v30 = vpop.f32.mrf.mxu0 }
 0x1d8   : > { %v6166_v44 = vadd.f32 %v4845_v30, %v4811_v12  ;;  %v1154_v17 = vpop.f32.mrf.mxu1 }
 0x1d9   : > { %v1366_v23 = vpop.f32.mrf.mxu0 }
 0x1da   : > { %v6168_v45 = vadd.f32 %v1366_v23, %v1154_v17  ;;  %v4814_v7 = vpop.f32.mrf.mxu1  ;;  %5017 = vmatmul.mubr.msk.bf16.gmra.mxu1 %vm489_vm1, %v5879_v26 }
 0x1db   : > { %v4848_v32 = vpop.f32.mrf.mxu0  ;;  %5051 = vmatmul.mubr.msk.bf16.gmra.mxu0 %vm489_vm1, %v5877_v8  ;;  %5020 = vmatprep.mubr.msk.bf16.mxu1 %vm489_vm1, %v5888_v43 }
 0x1dc   : > { %v6176_v18 = vadd.f32 %v4848_v32, %v4814_v7  ;;  %5054 = vmatprep.mubr.msk.bf16.mxu0 %vm489_vm1, %v5881_v29  ;;  %v1167_v40 = vpop.f32.mrf.mxu1 }
 0x1dd   : > { %v1379_v46 = vpop.f32.mrf.mxu0 }
 0x1de   : > { %v6180_v24 = vadd.f32 %v1379_v46, %v1167_v40  ;;  %v4815_v4 = vpop.f32.mrf.mxu1  ;;  %v2650_v40 = vld [vmem:[#allocation2 + $0x22f] sm:$0xff] }
 0x1df   : > { %v4849_v14 = vpop.f32.mrf.mxu0 }
 0x1e0   : > { %v6182_v35 = vadd.f32 %v4849_v14, %v4815_v4  ;;  %v6184_v26 = vpop.f32.mrf.mxu1  ;;  %v2943_v14 = vld [vmem:[#allocation2 + $0x228] sm:$0xff] }
 0x1e1   : > { %v6186_v39 = vpop.f32.mrf.mxu0 }
 0x1e2   : > { %v4818_v8 = vpop.f32.mrf.mxu1  ;;  %5021 = vmatmul.mubr.msk.bf16.gmra.mxu1 %vm489_vm1, %v5902_v0 }
 0x1e3   : > { %v4852_v43 = vpop.f32.mrf.mxu0  ;;  %5055 = vmatmul.mubr.msk.bf16.gmra.mxu0 %vm489_vm1, %v5900_v60  ;;  %5024 = vmatprep.mubr.msk.bf16.mxu1 %vm489_vm1, %v5908_v6 }
 0x1e4   : > { %v6194_v29 = vadd.f32 %v4852_v43, %v4818_v8  ;;  %5058 = vmatprep.mubr.msk.bf16.mxu0 %vm489_vm1, %v5904_v1  ;;  %v1183_v42 = vpop.f32.mrf.mxu1  ;;  %v2649_v1 = vld [vmem:[#allocation2 + $0x227] sm:$0xff]  ;;  %v2944_v8 = vld [vmem:[#allocation2 + $0x230] sm:$0xff] }
 0x1e5   : > { %v1395_v12 = vpop.f32.mrf.mxu0 }
 0x1e6   : > { %v6198_v30 = vadd.f32 %v1395_v12, %v1183_v42  ;;  %v4819_v17 = vpop.f32.mrf.mxu1  ;;  %v2666_v12 = vpack.c.bf16 %v2650_v40, %v2649_v1 }
 0x1e7   : > { %v4853_v23 = vpop.f32.mrf.mxu0 }
 0x1e8   : > { %v6200_v7 = vadd.f32 %v4853_v23, %v4819_v17  ;;  %v6202_v0 = vpop.f32.mrf.mxu1 }
 0x1e9   : > { %v6204_v32 = vpop.f32.mrf.mxu0 }
 0x1ea   : > { %v4822_v60 = vpop.f32.mrf.mxu1  ;;  %5025 = vmatmul.mubr.msk.bf16.gmra.mxu1 %vm489_vm1, %v5918_v50 }
 0x1eb   : > { %v4856_v6 = vpop.f32.mrf.mxu0  ;;  %5059 = vmatmul.mubr.msk.bf16.gmra.mxu0 %vm489_vm1, %v5916_v47  ;;  %5028 = vmatprep.mubr.msk.bf16.mxu1 %vm489_vm1, %v6023_v33  ;;  %v2960_v47 = vpack.c.bf16 %v2944_v8, %v2943_v14 }
 0x1ec   : > { %v6212_v46 = vadd.f32 %v4856_v6, %v4822_v60  ;;  %5062 = vmatprep.mubr.msk.bf16.mxu0 %vm489_vm1, %v6093_v20  ;;  %v1199_v4 = vpop.f32.mrf.mxu1 }
 0x1ed   : > { %v1411_v43 = vpop.f32.mrf.mxu0 }
 0x1ee   : > { %v6216_v42 = vadd.f32 %v1411_v43, %v1199_v4  ;;  %v4823_v50 = vpop.f32.mrf.mxu1 }
 0x1ef   : > { %v4857_v17 = vpop.f32.mrf.mxu0 }
 0x1f0   : > { %v6218_v23 = vadd.f32 %v4857_v17, %v4823_v50  ;;  %v6220_v33 = vpop.f32.mrf.mxu1 }
 0x1f1   : > { %v6222_v28 = vpop.f32.mrf.mxu0 }
 0x1f2   : > { %v4826_v60 = vpop.f32.mrf.mxu1  ;;  %5029 = vmatmul.mubr.msk.bf16.gmra.mxu1 %vm489_vm1, %v2666_v12 }
 0x1f3   : > { %v4860_v20 = vpop.f32.mrf.mxu0  ;;  %5068 = vmatprep.mubr.msk.bf16.mxu1 %vm489_vm1, %v5933_v58  ;;  %5063 = vmatmul.mubr.msk.bf16.gmra.mxu0 %vm489_vm1, %v2960_v47 }
 0x1f4   : > { %v6228_v6 = vadd.f32 %v4860_v20, %v4826_v60  ;;  %v1215_v1 = vpop.f32.mrf.mxu1 }
 0x1f5   : > { %v1427_v40 = vpop.f32.mrf.mxu0 }
 0x1f6   : > { %v6230_v4 = vadd.f32 %v1427_v40, %v1215_v1  ;;  %v4827_v14 = vpop.f32.mrf.mxu1 }
 0x1f7   : > { %v4861_v8 = vpop.f32.mrf.mxu0 }
 0x1f8   : > { %v6232_v43 = vadd.f32 %v4861_v8, %v4827_v14  ;;  %v6234_v50 = vpop.f32.mrf.mxu1 }
 0x1f9   : > { %v6236_v17 = vpop.f32.mrf.mxu0 }
 0x1fa   : > { %v4866_v12 = vpop.f32.mrf.mxu1  ;;  %5069 = vmatmul.mubr.msk.bf16.vlgmr.msra.gmra.mxu1 %vm489_vm1, %v5957_v62 }
 0x1fb   : > { %v1706_v58 = vadd.f32 %v4866_v12, %v6110_v2  ;;  %v4900_v47 = vpop.f32.mrf.mxu0  ;;  %5072 = vmatprep.mubr.msk.bf16.mxu1 %vm489_vm1, %v5959_v31 }
 0x1fc   : > { %v1577_v60 = vpop.f32.mrf.mxu1 }
 0x1fd   : > { %v6243_v20 = vadd.f32 %v4900_v47, %v1706_v58  ;;  %v1704_v1 = vadd.f32 %v1577_v60, %v6116_v49  ;;  %v1871_v40 = vpop.f32.mrf.mxu0 }
 0x1fe   : > { %v4867_v14 = vpop.f32.mrf.mxu1 }
 0x1ff   : > { %v6246_v8 = vadd.f32 %v1871_v40, %v1704_v1  ;;  %v1707_v27 = vadd.f32 %v4867_v14, %v6118_v53  ;;  %v4901_v22 = vpop.f32.mrf.mxu0 }
 0x200   : > { %v1580_v21 = vpop.f32.mrf.mxu1 }
 0x201   : > { %v6249_v62 = vadd.f32 %v4901_v22, %v1707_v27  ;;  %v6252_v2 = vadd.f32 %v1580_v21, %v6120_v48  ;;  %v6254_v12 = vpop.f32.mrf.mxu0 }
 0x202   : > { %v4870_v31 = vpop.f32.mrf.mxu1  ;;  %5073 = vmatmul.mubr.msk.bf16.gmra.mxu1 %vm489_vm1, %v5969_v51 }
 0x203   : > { %v1710_v49 = vadd.f32 %v4870_v31, %v6128_v54  ;;  %v4904_v58 = vpop.f32.mrf.mxu0  ;;  %5076 = vmatprep.mubr.msk.bf16.mxu1 %vm489_vm1, %v5971_v52 }
 0x204   : > { %v1593_v53 = vpop.f32.mrf.mxu1 }
 0x205   : > { %v6261_v47 = vadd.f32 %v4904_v58, %v1710_v49  ;;  %v1708_v22 = vadd.f32 %v1593_v53, %v6132_v11  ;;  %v1887_v27 = vpop.f32.mrf.mxu0 }
 0x206   : > { %v4871_v21 = vpop.f32.mrf.mxu1 }
 0x207   : > { %v6264_v48 = vadd.f32 %v1887_v27, %v1708_v22  ;;  %v1711_v60 = vadd.f32 %v4871_v21, %v6134_v57  ;;  %v4905_v1 = vpop.f32.mrf.mxu0 }
 0x208   : > { %v1596_v40 = vpop.f32.mrf.mxu1 }
 0x209   : > { %v6267_v51 = vadd.f32 %v4905_v1, %v1711_v60  ;;  %v6270_v54 = vadd.f32 %v1596_v40, %v6136_v19  ;;  %v6272_v14 = vpop.f32.mrf.mxu0  ;;  %v3627_v19 = vld [vmem:[%s7160_s7] sm:$0x3] }
 0x20a   : > { %v4874_v52 = vpop.f32.mrf.mxu1  ;;  %5077 = vmatmul.mubr.msk.bf16.gmra.mxu1 %vm489_vm1, %v5981_v3  ;;  %v3918_v3 = vld [vmem:[%s7163_s10] sm:$0x3]  ;;  %5178 = vmatprep.subr.msk.bf16.mxu0 %vm538_vm0, %v3627_v19 }
 0x20b   : > { %v1714_v11 = vadd.f32 %v4874_v52, %v6144_v37  ;;  %v4908_v31 = vpop.f32.mrf.mxu0  ;;  %5080 = vmatprep.mubr.msk.bf16.mxu1 %vm489_vm1, %v5983_v13  ;;  %5179 = vmatprep.subr.msk.bf16.mxu1 %vm538_vm0, %v3918_v3  ;;  %v3920_v21 = vsel %vm538_vm0, %v3918_v3, 0 }
 0x20c   : > { %v1609_v57 = vpop.f32.mrf.mxu1  ;;  %5135 = vmatpush3.bf16.msra.mxu1 %v3920_v21 }
 0x20d   : > { %v6279_v49 = vadd.f32 %v4908_v31, %v1714_v11  ;;  %v1712_v58 = vadd.f32 %v1609_v57, %v6148_v34  ;;  %v1903_v53 = vpop.f32.mrf.mxu0  ;;  %v3677_v34 = vsel %vm538_vm0, %v3627_v19, 0 }
 0x20e   : > { %v4875_v22 = vpop.f32.mrf.mxu1  ;;  %5101 = vmatpush3.bf16.msra.mxu0 %v3677_v34 }
 0x20f   : > { %v6290_v13 = vadd.f32 %v1903_v53, %v1712_v58  ;;  %v1715_v37 = vadd.f32 %v4875_v22, %v6150_v59  ;;  %v4909_v27 = vpop.f32.mrf.mxu0 }
 0x210   : > { %v1612_v60 = vpop.f32.mrf.mxu1 }
 0x211   : > { %v6295_v1 = vadd.f32 %v4909_v27, %v1715_v37  ;;  %v6298_v40 = vadd.f32 %v1612_v60, %v6152_v56  ;;  %v6300_v52 = vpop.f32.mrf.mxu0 }
 0x212   : > { %v4878_v11 = vpop.f32.mrf.mxu1  ;;  %5081 = vmatmul.mubr.msk.bf16.gmra.mxu1 %vm489_vm1, %v5993_v63 }
 0x213   : > { %v1718_v59 = vadd.f32 %v4878_v11, %v6160_v25  ;;  %v4912_v31 = vpop.f32.mrf.mxu0  ;;  %5084 = vmatprep.mubr.msk.bf16.mxu1 %vm489_vm1, %v5995_v55 }
 0x214   : > { %v1625_v57 = vpop.f32.mrf.mxu1 }
 0x215   : > { %v6307_v58 = vadd.f32 %v4912_v31, %v1718_v59  ;;  %v1716_v53 = vadd.f32 %v1625_v57, %v6164_v36  ;;  %v1919_v19 = vpop.f32.mrf.mxu0  ;;  %v3230_v31 = vld [vmem:[#allocation2 + $0x1b1] sm:$0xff] }
 0x216   : > { %v4879_v56 = vpop.f32.mrf.mxu1 }
 0x217   : > { %v6310_v3 = vadd.f32 %v1919_v19, %v1716_v53  ;;  %v1719_v22 = vadd.f32 %v4879_v56, %v6166_v44  ;;  %v4913_v37 = vpop.f32.mrf.mxu0  ;;  %v3231_v53 = vld [vmem:[#allocation2 + $0x1c9] sm:$0xff]  ;;  %v3232_v19 = vld [vmem:[#allocation2 + $0x1d1] sm:$0xff] }
 0x218   : > { %v1628_v27 = vpop.f32.mrf.mxu1 }
 0x219   : > { %v6313_v63 = vadd.f32 %v4913_v37, %v1719_v22  ;;  %v6316_v25 = vadd.f32 %v1628_v27, %v6168_v45  ;;  %v6318_v34 = vpop.f32.mrf.mxu0  ;;  %v3229_v45 = vld [vmem:[#allocation2 + $0x1a9] sm:$0xff] }
 0x21a   : > { %v4882_v55 = vpop.f32.mrf.mxu1  ;;  %5085 = vmatmul.mubr.msk.bf16.gmra.mxu1 %vm489_vm1, %v6005_v61  ;;  %v1383_v61 = vadd.f32 %v6186_v39, %v6184_v26  ;;  %v3250_v37 = vpack.c.bf16 %v3230_v31, %v3229_v45  ;;  %v3233_v45 = vld [vmem:[#allocation2 + $0x1e9] sm:$0xff]  ;;  %v3234_v31 = vld [vmem:[#allocation2 + $0x1f1] sm:$0xff] }
 0x21b   : > { %v1722_v36 = vadd.f32 %v4882_v55, %v6176_v18  ;;  %v4916_v21 = vpop.f32.mrf.mxu0  ;;  %5088 = vmatprep.mubr.msk.bf16.mxu1 %vm489_vm1, %v6007_v38 }
 0x21c   : > { %v1641_v44 = vpop.f32.mrf.mxu1 }
 0x21d   : > { %v6325_v60 = vadd.f32 %v4916_v21, %v1722_v36  ;;  %v1720_v11 = vadd.f32 %v1641_v44, %v6180_v24  ;;  %v1935_v59 = vpop.f32.mrf.mxu0  ;;  %v3251_v36 = vpack.c.bf16 %v3232_v19, %v3231_v53  ;;  %v1399_v53 = vadd.f32 %v6204_v32, %v6202_v0  ;;  %v3237_v0 = vld [vmem:[#allocation2 + $0x229] sm:$0xff] }
 0x21e   : > { %v4883_v57 = vpop.f32.mrf.mxu1 }
 0x21f   : > { %7197 = vst [vmem:[#allocation17_spill] sm:$0xff] %v6325_v60  ;;  %v6330_v56 = vadd.f32 %v1935_v59, %v1720_v11  ;;  %v1723_v18 = vadd.f32 %v4883_v57, %v6182_v35  ;;  %v4917_v22 = vpop.f32.mrf.mxu0 }
 0x220   : > { %v1644_v38 = vpop.f32.mrf.mxu1 }
 0x221   : > { %v6333_v27 = vadd.f32 %v4917_v22, %v1723_v18  ;;  %v1721_v55 = vadd.f32 %v1644_v38, %v1383_v61  ;;  %v1938_v24 = vpop.f32.mrf.mxu0  ;;  %v3252_v22 = vpack.c.bf16 %v3234_v31, %v3233_v45  ;;  %v1415_v45 = vadd.f32 %v6222_v28, %v6220_v33 }
 0x222   : > { %v4886_v21 = vpop.f32.mrf.mxu1  ;;  %5089 = vmatmul.mubr.msk.bf16.gmra.mxu1 %vm489_vm1, %v3250_v37 }
 0x223   : > { %v6336_v44 = vadd.f32 %v1938_v24, %v1721_v55  ;;  %v1726_v60 = vadd.f32 %v4886_v21, %v6194_v29  ;;  %v4920_v26 = vpop.f32.mrf.mxu0  ;;  %5092 = vmatprep.mubr.msk.bf16.mxu1 %vm489_vm1, %v3251_v36 }
 0x224   : > { %v1657_v39 = vpop.f32.mrf.mxu1 }
 0x225   : > { %v6340_v35 = vadd.f32 %v4920_v26, %v1726_v60  ;;  %v1724_v11 = vadd.f32 %v1657_v39, %v6198_v30  ;;  %v1951_v59 = vpop.f32.mrf.mxu0 }
 0x226   : > { %v4887_v57 = vpop.f32.mrf.mxu1 }
 0x227   : > { %v6345_v19 = vadd.f32 %v1951_v59, %v1724_v11  ;;  %v1727_v61 = vadd.f32 %v4887_v57, %v6200_v7  ;;  %v4921_v29 = vpop.f32.mrf.mxu0  ;;  %v3238_v7 = vld [vmem:[#allocation2 + $0x231] sm:$0xff] }
 0x228   : > { %v1660_v18 = vpop.f32.mrf.mxu1  ;;  %v3254_v59 = vpack.c.bf16 %v3238_v7, %v3237_v0 }
 0x229   : > { %v6348_v38 = vadd.f32 %v4921_v29, %v1727_v61  ;;  %v1725_v60 = vadd.f32 %v1660_v18, %v1399_v53  ;;  %v1954_v37 = vpop.f32.mrf.mxu0 }
 0x22a   : > { %v4890_v55 = vpop.f32.mrf.mxu1  ;;  %5093 = vmatmul.mubr.msk.bf16.gmra.mxu1 %vm489_vm1, %v3252_v22 }
 0x22b   : > { %v6351_v30 = vadd.f32 %v1954_v37, %v1725_v60  ;;  %v1730_v24 = vadd.f32 %v4890_v55, %v6212_v46  ;;  %v4924_v36 = vpop.f32.mrf.mxu0  ;;  %5096 = vmatprep.mubr.msk.bf16.mxu1 %vm489_vm1, %v6095_v41 }
 0x22c   : > { %v1673_v32 = vpop.f32.mrf.mxu1 }
 0x22d   : > { %v6356_v21 = vadd.f32 %v4924_v36, %v1730_v24  ;;  %v1728_v26 = vadd.f32 %v1673_v32, %v6216_v42  ;;  %v1967_v39 = vpop.f32.mrf.mxu0  ;;  %v1431_v24 = vadd.f32 %v6236_v17, %v6234_v50 }
 0x22e   : > { %v4891_v11 = vpop.f32.mrf.mxu1 }
 0x22f   : > { %v6361_v31 = vadd.f32 %v1967_v39, %v1728_v26  ;;  %v1731_v46 = vadd.f32 %v4891_v11, %v6218_v23  ;;  %v4925_v57 = vpop.f32.mrf.mxu0 }
 0x230   : > { %v1676_v53 = vpop.f32.mrf.mxu1 }
 0x231   : > { %v6364_v41 = vadd.f32 %v4925_v57, %v1731_v46  ;;  %v1729_v61 = vadd.f32 %v1676_v53, %v1415_v45  ;;  %v1970_v29 = vpop.f32.mrf.mxu0  ;;  %v1999_v57 = vadd.f32 %v6254_v12, %v6252_v2 }
 0x232   : > { %v4894_v18 = vpop.f32.mrf.mxu1  ;;  %5097 = vmatmul.mubr.msk.bf16.gmra.mxu1 %vm489_vm1, %v3254_v59 }
 0x233   : > { %v6367_v42 = vadd.f32 %v1970_v29, %v1729_v61  ;;  %v1734_v22 = vadd.f32 %v4894_v18, %v6228_v6  ;;  %v4928_v60 = vpop.f32.mrf.mxu0  ;;  %5136 = vmatprep.mubr.msk.bf16.mxu1 %vm489_vm1, %v5421_v5 }
 0x234   : > { %v1689_v28 = vpop.f32.mrf.mxu1 }
 0x235   : > { %v6372_v33 = vadd.f32 %v4928_v60, %v1734_v22  ;;  %v1732_v23 = vadd.f32 %v1689_v28, %v6230_v4  ;;  %v1983_v37 = vpop.f32.mrf.mxu0 }
 0x236   : > { %v4895_v55 = vpop.f32.mrf.mxu1 }
 0x237   : > { %v6377_v36 = vadd.f32 %v1983_v37, %v1732_v23  ;;  %v1735_v0 = vadd.f32 %v4895_v55, %v6232_v43  ;;  %v4929_v7 = vpop.f32.mrf.mxu0  ;;  %v2003_v23 = vadd.f32 %v6272_v14, %v6270_v54  ;;  %v7199_v54 = vld [vmem:[#allocation7_spill] sm:$0xff] }
 0x238   : > { %v1692_v6 = vpop.f32.mrf.mxu1 }
 0x239   : > { %v6380_v32 = vadd.f32 %v4929_v7, %v1735_v0  ;;  %v1733_v26 = vadd.f32 %v1692_v6, %v1431_v24  ;;  %v1986_v5 = vpop.f32.mrf.mxu0  ;;  %v7198_v7 = vld [vmem:[#allocation6_spill] sm:$0xff] }
 0x23a   : > { %v4934_v39 = vpop.f32.mrf.mxu1  ;;  %5137 = vmatmul.mubr.msk.bf16.vlgmr.msra.gmra.mxu1 %vm489_vm1, %v5426_v9 }
 0x23b   : > { %v6384_v4 = vadd.f32 %v1986_v5, %v1733_v26  ;;  %v2294_v11 = vadd.f32 %v4934_v39, %v6243_v20  ;;  %v4968_v59 = vpop.f32.mrf.mxu0  ;;  %5140 = vmatprep.mubr.msk.bf16.mxu1 %vm489_vm1, %v5428_v10 }
 0x23c   : > { %v2165_v50 = vpop.f32.mrf.mxu1 }
 0x23d   : > { %v6389_v43 = vadd.f32 %v4968_v59, %v2294_v11  ;;  %v2292_v17 = vadd.f32 %v2165_v50, %v6246_v8  ;;  %v2459_v45 = vpop.f32.mrf.mxu0  ;;  %v2007_v11 = vadd.f32 %v6300_v52, %v6298_v40  ;;  %v7201_v40 = vld [vmem:[#allocation9_spill] sm:$0xff] }
 0x23e   : > { %v4935_v46 = vpop.f32.mrf.mxu1 }
 0x23f   : > { %v6394_v53 = vadd.f32 %v2459_v45, %v2292_v17  ;;  %v6397_v9 = vadd.f32 %v4935_v46, %v6249_v62  ;;  %v6399_v20 = vpop.f32.mrf.mxu0 }
 0x240   : > { %v2168_v61 = vpop.f32.mrf.mxu1 }
 0x241   : > { %v6401_v29 = vadd.f32 %v2168_v61, %v1999_v57  ;;  %v6403_v10 = vpop.f32.mrf.mxu0 }
 0x242   : > { %v4938_v18 = vpop.f32.mrf.mxu1  ;;  %5141 = vmatmul.mubr.msk.bf16.gmra.mxu1 %vm489_vm1, %v5440_v15 }
 0x243   : > { %v2298_v8 = vadd.f32 %v4938_v18, %v6261_v47  ;;  %v4972_v22 = vpop.f32.mrf.mxu0  ;;  %5144 = vmatprep.mubr.msk.bf16.mxu1 %vm489_vm1, %v5442_v16  ;;  %v7200_v18 = vld [vmem:[#allocation8_spill] sm:$0xff] }
 0x244   : > { %v2181_v2 = vpop.f32.mrf.mxu1 }
 0x245   : > { %v6410_v62 = vadd.f32 %v4972_v22, %v2298_v8  ;;  %v2296_v12 = vadd.f32 %v2181_v2, %v6264_v48  ;;  %v2475_v60 = vpop.f32.mrf.mxu0 }
 0x246   : > { %v4939_v28 = vpop.f32.mrf.mxu1 }
 0x247   : > { %v6415_v37 = vadd.f32 %v2475_v60, %v2296_v12  ;;  %v6418_v15 = vadd.f32 %v4939_v28, %v6267_v51  ;;  %v6420_v47 = vpop.f32.mrf.mxu0  ;;  %v2011_v60 = vadd.f32 %v6318_v34, %v6316_v25  ;;  %v7204_v25 = vld [vmem:[#allocation11_spill] sm:$0xff] }
 0x248   : > { %v2184_v55 = vpop.f32.mrf.mxu1 }
 0x249   : > { %v6422_v24 = vadd.f32 %v2184_v55, %v2003_v23  ;;  %v6424_v16 = vpop.f32.mrf.mxu0 }
 0x24a   : > { %v4942_v0 = vpop.f32.mrf.mxu1  ;;  %5145 = vmatmul.mubr.msk.bf16.gmra.mxu1 %vm489_vm1, %v7198_v7 }
 0x24b   : > { %v2302_v48 = vadd.f32 %v4942_v0, %v6279_v49  ;;  %v4976_v6 = vpop.f32.mrf.mxu0  ;;  %5148 = vmatprep.mubr.msk.bf16.mxu1 %vm489_vm1, %v7199_v54  ;;  %v7202_v54 = vld [vmem:[#allocation10_spill] sm:$0xff] }
 0x24c   : > { %v2197_v14 = vpop.f32.mrf.mxu1 }
 0x24d   : > { %v6431_v51 = vadd.f32 %v4976_v6, %v2302_v48  ;;  %v2300_v26 = vadd.f32 %v2197_v14, %v6290_v13  ;;  %v2491_v5 = vpop.f32.mrf.mxu0 }
 0x24e   : > { %v4943_v39 = vpop.f32.mrf.mxu1 }
 0x24f   : > { %v6436_v59 = vadd.f32 %v2491_v5, %v2300_v26  ;;  %v2303_v50 = vadd.f32 %v4943_v39, %v6295_v1  ;;  %v4977_v17 = vpop.f32.mrf.mxu0 }
 0x250   : > { %v2200_v49 = vpop.f32.mrf.mxu1 }
 0x251   : > { %v6439_v45 = vadd.f32 %v4977_v17, %v2303_v50  ;;  %v6441_v46 = vadd.f32 %v2200_v49, %v2007_v11  ;;  %v6443_v57 = vpop.f32.mrf.mxu0 }
 0x252   : > { %v4946_v61 = vpop.f32.mrf.mxu1  ;;  %5149 = vmatmul.mubr.msk.bf16.gmra.mxu1 %vm489_vm1, %v7200_v18 }
 0x253   : > { %v2306_v13 = vadd.f32 %v4946_v61, %v6307_v58  ;;  %v4980_v8 = vpop.f32.mrf.mxu0  ;;  %5152 = vmatprep.mubr.msk.bf16.mxu1 %vm489_vm1, %v7201_v40 }
 0x254   : > { %v2213_v52 = vpop.f32.mrf.mxu1 }
 0x255   : > { %v6450_v1 = vadd.f32 %v4980_v8, %v2306_v13  ;;  %v2304_v22 = vadd.f32 %v2213_v52, %v6310_v3  ;;  %v2507_v2 = vpop.f32.mrf.mxu0  ;;  %v7203_v3 = vld [vmem:[#allocation17_spill] sm:$0xff]  ;;  %v7205_v52 = vld [vmem:[#allocation12_spill] sm:$0xff] }
 0x256   : > { %v4947_v12 = vpop.f32.mrf.mxu1 }
 0x257   : > { %v6455_v28 = vadd.f32 %v2507_v2, %v2304_v22  ;;  %v2307_v23 = vadd.f32 %v4947_v12, %v6313_v63  ;;  %v4981_v55 = vpop.f32.mrf.mxu0  ;;  %v7206_v2 = vld [vmem:[#allocation13_spill] sm:$0xff] }
 0x258   : > { %v2216_v58 = vpop.f32.mrf.mxu1 }
 0x259   : > { %v6458_v0 = vadd.f32 %v4981_v55, %v2307_v23  ;;  %v6460_v7 = vadd.f32 %v2216_v58, %v2011_v60  ;;  %v6462_v48 = vpop.f32.mrf.mxu0 }
 0x25a   : > { %v4950_v6 = vpop.f32.mrf.mxu1  ;;  %5153 = vmatmul.mubr.msk.bf16.gmra.mxu1 %vm489_vm1, %v7202_v54 }
 0x25b   : > { %v2310_v14 = vadd.f32 %v4950_v6, %v7203_v3  ;;  %v4984_v26 = vpop.f32.mrf.mxu0  ;;  %5156 = vmatprep.mubr.msk.bf16.mxu1 %vm489_vm1, %v7204_v25  ;;  %v7209_v25 = vld [vmem:[#allocation14_spill] sm:$0xff] }
 0x25c   : > { %v2229_v34 = vpop.f32.mrf.mxu1 }
 0x25d   : > { %v6469_v63 = vadd.f32 %v4984_v26, %v2310_v14  ;;  %v2308_v5 = vadd.f32 %v2229_v34, %v6330_v56  ;;  %v2523_v39 = vpop.f32.mrf.mxu0 }
 0x25e   : > { %v4951_v11 = vpop.f32.mrf.mxu1 }
 0x25f   : > { %v6472_v50 = vadd.f32 %v2523_v39, %v2308_v5  ;;  %v2311_v17 = vadd.f32 %v4951_v11, %v6333_v27  ;;  %v4985_v49 = vpop.f32.mrf.mxu0  ;;  %v7210_v5 = vld [vmem:[#allocation15_spill] sm:$0xff] }
 0x260   : > { %v2232_v61 = vpop.f32.mrf.mxu1 }
 0x261   : > { %v6475_v18 = vadd.f32 %v4985_v49, %v2311_v17  ;;  %v6478_v13 = vadd.f32 %v2232_v61, %v6336_v44  ;;  %v6480_v8 = vpop.f32.mrf.mxu0 }
 0x262   : > { %v4954_v40 = vpop.f32.mrf.mxu1  ;;  %5157 = vmatmul.mubr.msk.bf16.gmra.mxu1 %vm489_vm1, %v7205_v52 }
 0x263   : > { %v2314_v56 = vadd.f32 %v4954_v40, %v6340_v35  ;;  %v4988_v22 = vpop.f32.mrf.mxu0  ;;  %5160 = vmatprep.mubr.msk.bf16.mxu1 %vm489_vm1, %v7206_v2 }
 0x264   : > { %v2245_v27 = vpop.f32.mrf.mxu1 }
 0x265   : > { %v6487_v12 = vadd.f32 %v4988_v22, %v2314_v56  ;;  %v2312_v60 = vadd.f32 %v2245_v27, %v6345_v19  ;;  %v2539_v23 = vpop.f32.mrf.mxu0  ;;  %v7213_v27 = vld [vmem:[#allocation16_spill] sm:$0xff] }
 0x266   : > { %v4955_v44 = vpop.f32.mrf.mxu1 }
 0x267   : > { %v6490_v55 = vadd.f32 %v2539_v23, %v2312_v60  ;;  %v2315_v58 = vadd.f32 %v4955_v44, %v6348_v38  ;;  %v4989_v6 = vpop.f32.mrf.mxu0 }
 0x268   : > { %v2248_v54 = vpop.f32.mrf.mxu1 }
 0x269   : > { %v6493_v3 = vadd.f32 %v4989_v6, %v2315_v58  ;;  %v6496_v35 = vadd.f32 %v2248_v54, %v6351_v30  ;;  %v6498_v14 = vpop.f32.mrf.mxu0 }
 0x26a   : > { %7208 = vst [vmem:[#allocation7_spill] sm:$0xff] %v6498_v14  ;;  %v4958_v26 = vpop.f32.mrf.mxu1  ;;  %5161 = vmatmul.mubr.msk.bf16.gmra.mxu1 %vm489_vm1, %v7209_v25 }
 0x26b   : > { %7207 = vst [vmem:[#allocation6_spill] sm:$0xff] %v6496_v35  ;;  %v2318_v19 = vadd.f32 %v4958_v26, %v6356_v21  ;;  %v4992_v34 = vpop.f32.mrf.mxu0  ;;  %5164 = vmatprep.mubr.msk.bf16.mxu1 %vm489_vm1, %v7210_v5 }
 0x26c   : > { %v2261_v38 = vpop.f32.mrf.mxu1 }
 0x26d   : > { %v6505_v39 = vadd.f32 %v4992_v34, %v2318_v19  ;;  %v2316_v11 = vadd.f32 %v2261_v38, %v6361_v31  ;;  %v2555_v17 = vpop.f32.mrf.mxu0 }
 0x26e   : > { %v4959_v30 = vpop.f32.mrf.mxu1 }
 0x26f   : > { %v6508_v49 = vadd.f32 %v2555_v17, %v2316_v11  ;;  %v2319_v61 = vadd.f32 %v4959_v30, %v6364_v41  ;;  %v4993_v40 = vpop.f32.mrf.mxu0 }
 0x270   : > { %v2264_v52 = vpop.f32.mrf.mxu1 }
 0x271   : > { %v6511_v56 = vadd.f32 %v4993_v40, %v2319_v61  ;;  %v6514_v21 = vadd.f32 %v2264_v52, %v6367_v42  ;;  %v6516_v22 = vpop.f32.mrf.mxu0 }
 0x272   : > { %7212 = vst [vmem:[#allocation9_spill] sm:$0xff] %v6516_v22  ;;  %v4962_v2 = vpop.f32.mrf.mxu1  ;;  %5165 = vmatmul.mubr.msk.bf16.gmra.mxu1 %vm489_vm1, %v7213_v27 }
 0x273   : > { %7211 = vst [vmem:[#allocation8_spill] sm:$0xff] %v6514_v21  ;;  %v2322_v31 = vadd.f32 %v4962_v2, %v6372_v33  ;;  %v4996_v60 = vpop.f32.mrf.mxu0 }
 0x274   : > { %v2277_v23 = vpop.f32.mrf.mxu1 }
 0x275   : > { %v6521_v44 = vadd.f32 %v4996_v60, %v2322_v31  ;;  %v2320_v41 = vadd.f32 %v2277_v23, %v6377_v36  ;;  %v2571_v58 = vpop.f32.mrf.mxu0 }
 0x276   : > { %v4963_v6 = vpop.f32.mrf.mxu1 }
 0x277   : > { %v6524_v54 = vadd.f32 %v2571_v58, %v2320_v41  ;;  %v2323_v42 = vadd.f32 %v4963_v6, %v6380_v32  ;;  %v4997_v26 = vpop.f32.mrf.mxu0 }
 0x278   : > { %v2280_v25 = vpop.f32.mrf.mxu1 }
 0x279   : > { %v6527_v19 = vadd.f32 %v4997_v26, %v2323_v42  ;;  %v6530_v34 = vadd.f32 %v2280_v25, %v6384_v4  ;;  %v6532_v33 = vpop.f32.mrf.mxu0 }
 0x27a   : > { %7215 = vst [vmem:[#allocation17_spill] sm:$0xff] %v6532_v33  ;;  %v5002_v5 = vpop.f32.mrf.mxu1 }
 0x27b   : > { %7214 = vst [vmem:[#allocation10_spill] sm:$0xff] %v6530_v34  ;;  %v6535_v38 = vadd.f32 %v5002_v5, %v6389_v43  ;;  %v6537_v36 = vpop.f32.mrf.mxu0 }
 0x27c   : > { %v2754_v11 = vpop.f32.mrf.mxu1 }
 0x27d   : > { %v6540_v17 = vadd.f32 %v2754_v11, %v6394_v53  ;;  %v6542_v32 = vpop.f32.mrf.mxu0 }
 0x27e   : > { %v6544_v30 = vpop.f32.mrf.mxu1 }
 0x27f   : > { %v6548_v4 = vpop.f32.mrf.mxu0 }
 0x280   : > { %v6546_v61 = vpop.f32.mrf.mxu1 }
 0x281   : > { %v6553_v2 = vpop.f32.mrf.mxu0 }
 0x282   : > { %v5006_v40 = vpop.f32.mrf.mxu1 }
 0x283   : > { %v6551_v52 = vadd.f32 %v5006_v40, %v6410_v62  ;;  %v6562_v60 = vpop.f32.mrf.mxu0 }
 0x284   : > { %v2770_v43 = vpop.f32.mrf.mxu1 }
 0x285   : > { %v6556_v27 = vadd.f32 %v2770_v43, %v6415_v37  ;;  %v6567_v6 = vpop.f32.mrf.mxu0 }
 0x286   : > { %v6558_v53 = vpop.f32.mrf.mxu1 }
 0x287   : > { %v6577_v25 = vpop.f32.mrf.mxu0 }
 0x288   : > { %v6560_v31 = vpop.f32.mrf.mxu1 }
 0x289   : > { %v6582_v40 = vpop.f32.mrf.mxu0 }
 0x28a   : > { %v5010_v23 = vpop.f32.mrf.mxu1 }
 0x28b   : > { %v6565_v41 = vadd.f32 %v5010_v23, %v6431_v51 }
 0x28c   : > { %v2786_v58 = vpop.f32.mrf.mxu1 }
 0x28d   : > { %v6570_v62 = vadd.f32 %v2786_v58, %v6436_v59  ;;  %v6592_v58 = vpop.f32.mrf.mxu0 }
 0x28e   : > { %v5011_v42 = vpop.f32.mrf.mxu1 }
 0x28f   : > { %v6573_v37 = vadd.f32 %v5011_v42, %v6439_v45 }
 0x290   : > { %v6575_v26 = vpop.f32.mrf.mxu1 }
 0x292   : > { %v5014_v5 = vpop.f32.mrf.mxu1 }
 0x293   : > { %v6580_v11 = vadd.f32 %v5014_v5, %v6450_v1  ;;  %v6597_v5 = vpop.f32.mrf.mxu0 }
 0x294   : > { %v2802_v51 = vpop.f32.mrf.mxu1 }
 0x295   : > { %v6585_v43 = vadd.f32 %v2802_v51, %v6455_v28 }
 0x296   : > { %v5015_v59 = vpop.f32.mrf.mxu1 }
 0x297   : > { %v6588_v23 = vadd.f32 %v5015_v59, %v6458_v0  ;;  %v6607_v59 = vpop.f32.mrf.mxu0 }
 0x298   : > { %v6590_v45 = vpop.f32.mrf.mxu1 }
 0x29a   : > { %v5018_v42 = vpop.f32.mrf.mxu1 }
 0x29b   : > { %v6595_v33 = vadd.f32 %v5018_v42, %v6469_v63  ;;  %v6612_v42 = vpop.f32.mrf.mxu0 }
 0x29c   : > { %v2818_v1 = vpop.f32.mrf.mxu1 }
 0x29d   : > { %v6600_v34 = vadd.f32 %v2818_v1, %v6472_v50 }
 0x29e   : > { %v5019_v28 = vpop.f32.mrf.mxu1 }
 0x29f   : > { %v6603_v51 = vadd.f32 %v5019_v28, %v6475_v18  ;;  %v6622_v28 = vpop.f32.mrf.mxu0 }
 0x2a0   : > { %v6605_v0 = vpop.f32.mrf.mxu1 }
 0x2a1   : > { %7216 = vst [vmem:[#allocation11_spill] sm:$0xff] %v6603_v51 }
 0x2a2   : > { %v5022_v22 = vpop.f32.mrf.mxu1 }
 0x2a3   : > { %v6610_v21 = vadd.f32 %v5022_v22, %v6487_v12  ;;  %v6627_v22 = vpop.f32.mrf.mxu0 }
 0x2a4   : > { %v2834_v63 = vpop.f32.mrf.mxu1 }
 0x2a5   : > { %7217 = vst [vmem:[#allocation12_spill] sm:$0xff] %v6610_v21  ;;  %v6615_v14 = vadd.f32 %v2834_v63, %v6490_v55 }
 0x2a6   : > { %v5023_v50 = vpop.f32.mrf.mxu1 }
 0x2a7   : > { %v6618_v1 = vadd.f32 %v5023_v50, %v6493_v3  ;;  %v6637_v50 = vpop.f32.mrf.mxu0 }
 0x2a8   : > { %v6620_v18 = vpop.f32.mrf.mxu1 }
 0x2a9   : > { %7218 = vst [vmem:[#allocation13_spill] sm:$0xff] %v6618_v1  ;;  %7219 = vst [vmem:[#allocation14_spill] sm:$0xff] %v6620_v18 }
 0x2aa   : > { %v5026_v35 = vpop.f32.mrf.mxu1 }
 0x2ab   : > { %v6625_v51 = vadd.f32 %v5026_v35, %v6505_v39  ;;  %v6642_v39 = vpop.f32.mrf.mxu0 }
 0x2ac   : > { %v2850_v12 = vpop.f32.mrf.mxu1 }
 0x2ad   : > { %7220 = vst [vmem:[#allocation15_spill] sm:$0xff] %v6625_v51  ;;  %v6630_v21 = vadd.f32 %v2850_v12, %v6508_v49  ;;  %v2589_v12 = vadd.f32 %v6399_v20, %v6397_v9  ;;  %v6664_v9 = vld [vmem:[%s7158_s5] ss:$0 sm:$0xff]  ;;  %v3175_v20 = vadd.f32 %v6542_v32, %v6540_v17 }
 0x2ae   : > { %v5027_v55 = vpop.f32.mrf.mxu1 }
 0x2af   : > { %v6633_v63 = vadd.f32 %v5027_v55, %v6511_v56 }
 0x2b0   : > { %v6635_v3 = vpop.f32.mrf.mxu1 }
 0x2b1   : > { %7221 = vst [vmem:[#allocation16_spill] sm:$0xff] %v6633_v63  ;;  %v2587_v63 = vadd.f32 %v6403_v10, %v6401_v29 }
 0x2b2   : > { %v5030_v1 = vpop.f32.mrf.mxu1 }
 0x2b3   : > { %v6640_v18 = vadd.f32 %v5030_v1, %v6521_v44  ;;  %v3177_v44 = vadd.f32 %v6537_v36, %v6535_v38  ;;  %v2884_v1 = vadd.f32 %v6544_v30, %v2589_v12 }
 0x2b4   : > { %v2866_v35 = vpop.f32.mrf.mxu1 }
 0x2b5   : > { %7222 = vst [vmem:[#allocation18_spill] sm:$0xff] %v6640_v18  ;;  %v6645_v51 = vadd.f32 %v2866_v35, %v6524_v54  ;;  %v6659_v18 = vpop.f32.mrf.mxu0  ;;  %v3178_v10 = vadd.f32 %v6548_v4, %v2884_v1  ;;  %v2591_v4 = vadd.f32 %v6424_v16, %v6422_v24 }
 0x2b6   : > { %v5031_v49 = vpop.f32.mrf.mxu1 }
 0x2b7   : > { %v6650_v56 = vadd.f32 %v5031_v49, %v6527_v19  ;;  %v2882_v19 = vadd.f32 %v6546_v61, %v2587_v63  ;;  %v6670_v38 = vpop.f32.mrf.mxu0  ;;  %v6676_v49 = vld [vmem:[%s7159_s6] ss:$0 sm:$0xff]  ;;  %v2593_v61 = vadd.f32 %v6420_v47, %v6418_v15  ;;  %v2886_v15 = vadd.f32 %v6560_v31, %v2591_v4 }
 0x2b8   : > { %v6652_v55 = vpop.f32.mrf.mxu1 }
 0x2b9   : > { %7223 = vst [vmem:[#allocation19_spill] sm:$0xff] %v6650_v56  ;;  %v3176_v56 = vadd.f32 %v6553_v2, %v2882_v19  ;;  %v6686_v1 = vpop.f32.mrf.mxu0  ;;  %v3179_v19 = vadd.f32 %v6567_v6, %v6556_v27  ;;  %v3180_v31 = vadd.f32 %v6582_v40, %v2886_v15 }
 0x2ba   : > { %v5070_v54 = vpop.f32.mrf.mxu1 }
 0x2bb   : > { %v3471_v35 = vadd.f32 %v5070_v54, %v3177_v44  ;;  %v3181_v44 = vadd.f32 %v6562_v60, %v6551_v52 }
 0x2bc   : > { %v3342_v29 = vpop.f32.mrf.mxu1 }
 0x2bd   : > { %v3510_v36 = vmul.f32 %v6664_v9, %v3471_v35  ;;  %v3469_v30 = vadd.f32 %v3342_v29, %v3175_v20  ;;  %v2888_v35 = vadd.f32 %v6558_v53, %v2593_v61 }
 0x2be   : > { %v5071_v12 = vpop.f32.mrf.mxu1 }
 0x2bf   : > { %v3508_v17 = vmul.f32 %v6664_v9, %v3469_v30  ;;  %v3472_v32 = vadd.f32 %v5071_v12, %v3178_v10  ;;  %v3549_v54 = vadd.f32 %v6676_v49, %v3510_v36  ;;  %v6697_v10 = vpop.f32.mrf.mxu0  ;;  %v3182_v53 = vadd.f32 %v6577_v25, %v2888_v35 }
 0x2c0   : > { %v3345_v63 = vpop.f32.mrf.mxu1  ;;  %v2595_v25 = vadd.f32 %v6443_v57, %v6441_v46  ;;  %v3186_v57 = vadd.f32 %v6607_v59, %v6573_v37 }
 0x2c1   : > { %v3511_v20 = vmul.f32 %v6664_v9, %v3472_v32  ;;  %v3470_v2 = vadd.f32 %v3345_v63, %v3176_v56  ;;  %v3547_v24 = vadd.f32 %v6676_v49, %v3508_v17  ;;  %v3581_v36 = vmax.f32 %v3549_v54, 0.0 }
 0x2c2   : > { %v5074_v47 = vpop.f32.mrf.mxu1  ;;  %v3185_v54 = vadd.f32 %v6592_v58, %v6565_v41  ;;  %v2890_v58 = vadd.f32 %v6575_v26, %v2595_v25 }
 0x2c3   : > { %v3550_v16 = vadd.f32 %v6676_v49, %v3511_v20  ;;  %v3509_v52 = vmul.f32 %v6664_v9, %v3470_v2  ;;  %v3475_v60 = vadd.f32 %v5074_v47, %v3181_v44  ;;  %v3579_v17 = vmax.f32 %v3547_v24, 0.0  ;;  %v6706_v20 = vpop.f32.mrf.mxu0 }
 0x2c4   : > { %v3358_v29 = vpop.f32.mrf.mxu1  ;;  %v3183_v47 = vadd.f32 %v6597_v5, %v6570_v62 }
 0x2c5   : > { %v3582_v56 = vmax.f32 %v3550_v16, 0.0  ;;  %v3548_v30 = vadd.f32 %v6676_v49, %v3509_v52  ;;  %v3473_v27 = vadd.f32 %v3358_v29, %v3179_v19  ;;  %v3514_v6 = vmul.f32 %v6664_v9, %v3475_v60  ;;  %v6722_v60 = vpop.f32.mrf.mxu0 }
 0x2c6   : > { %v5075_v12 = vpop.f32.mrf.mxu1 }
 0x2c7   : > { %v3612_v32 = vpack.c.bf16 %v3582_v56, %v3581_v36  ;;  %v3580_v61 = vmax.f32 %v3548_v30, 0.0  ;;  %v3512_v4 = vmul.f32 %v6664_v9, %v3473_v27  ;;  %v3476_v63 = vadd.f32 %v5075_v12, %v3182_v53 }
 0x2c8   : > { %v3361_v44 = vpop.f32.mrf.mxu1  ;;  %v3553_v40 = vadd.f32 %v6676_v49, %v3514_v6  ;;  %v3184_v6 = vadd.f32 %v6612_v42, %v2890_v58 }
 0x2c9   : > { %v3611_v2 = vpack.c.bf16 %v3580_v61, %v3579_v17  ;;  %v3474_v19 = vadd.f32 %v3361_v44, %v3180_v31  ;;  %v3515_v35 = vmul.f32 %v6664_v9, %v3476_v63  ;;  %v3551_v24 = vadd.f32 %v6676_v49, %v3512_v4 }
 0x2ca   : > { %v5078_v15 = vpop.f32.mrf.mxu1  ;;  %v3585_v36 = vmax.f32 %v3553_v40, 0.0  ;;  %v2599_v31 = vadd.f32 %v6462_v48, %v6460_v7  ;;  %v3189_v17 = vadd.f32 %v6622_v28, %v6580_v11  ;;  %v3187_v7 = vadd.f32 %v6627_v22, %v6585_v43 }
 0x2cb   : > { %v3513_v16 = vmul.f32 %v6664_v9, %v3474_v19  ;;  %v3479_v41 = vadd.f32 %v5078_v15, %v3185_v54  ;;  %5102 = vmatprep.mubr.msk.bf16.mxu0 %vm489_vm1, %v3611_v2  ;;  %v3554_v52 = vadd.f32 %v6676_v49, %v3515_v35  ;;  %v3583_v27 = vmax.f32 %v3551_v24, 0.0 }
 0x2cc   : > { %v3374_v46 = vpop.f32.mrf.mxu1  ;;  %5103 = vmatmul.mubr.msk.bf16.vlgmr.msra.gmra.mxu0 %vm489_vm1, %v3612_v32  ;;  %v6732_v32 = vpop.f32.mrf.mxu0  ;;  %v2894_v48 = vadd.f32 %v6590_v45, %v2599_v31  ;;  %v3190_v11 = vadd.f32 %v6637_v50, %v6588_v23 }
 0x2cd   : > { %v3552_v62 = vadd.f32 %v6676_v49, %v3513_v16  ;;  %v3518_v5 = vmul.f32 %v6664_v9, %v3479_v41  ;;  %v3477_v29 = vadd.f32 %v3374_v46, %v3183_v47  ;;  %v3586_v56 = vmax.f32 %v3554_v52, 0.0 }
 0x2ce   : > { %v5079_v30 = vpop.f32.mrf.mxu1  ;;  %v6746_v40 = vpop.f32.mrf.mxu0  ;;  %v3188_v24 = vadd.f32 %v6642_v39, %v2894_v48  ;;  %v2603_v41 = vadd.f32 %v6480_v8, %v6478_v13  ;;  %v7225_v48 = vld [vmem:[#allocation12_spill] sm:$0xff] }
 0x2cf   : > { %v3584_v26 = vmax.f32 %v3552_v62, 0.0  ;;  %v3480_v53 = vadd.f32 %v5079_v30, %v3186_v57  ;;  %v3614_v12 = vpack.c.bf16 %v3586_v56, %v3585_v36  ;;  %v3516_v37 = vmul.f32 %v6664_v9, %v3477_v29 }
 0x2d0   : > { %v3377_v59 = vpop.f32.mrf.mxu1  ;;  %v3557_v4 = vadd.f32 %v6676_v49, %v3518_v5  ;;  %v3193_v57 = vadd.f32 %v6659_v18, %v6595_v33  ;;  %v6756_v62 = vpop.f32.mrf.mxu0  ;;  %v3191_v36 = vadd.f32 %v6670_v38, %v6600_v34  ;;  %v2898_v56 = vadd.f32 %v6605_v0, %v2603_v41  ;;  %v7224_v0 = vld [vmem:[#allocation11_spill] sm:$0xff] }
 0x2d1   : > { %v3613_v61 = vpack.c.bf16 %v3584_v26, %v3583_v27  ;;  %v3519_v63 = vmul.f32 %v6664_v9, %v3480_v53  ;;  %v3478_v44 = vadd.f32 %v3377_v59, %v3184_v6  ;;  %v3555_v28 = vadd.f32 %v6676_v49, %v3516_v37 }
 0x2d2   : > { %v5082_v54 = vpop.f32.mrf.mxu1  ;;  %v3589_v43 = vmax.f32 %v3557_v4, 0.0  ;;  %v3144_v53 = vpop.f32.mrf.mxu0  ;;  %v3194_v38 = vadd.f32 %v6686_v1, %v7224_v0  ;;  %v3192_v37 = vadd.f32 %v6697_v10, %v2898_v56  ;;  %v7227_v1 = vld [vmem:[#allocation7_spill] sm:$0xff] }
 0x2d3   : > { %v3558_v42 = vadd.f32 %v6676_v49, %v3519_v63  ;;  %v3483_v2 = vadd.f32 %v5082_v54, %v3189_v17  ;;  %5106 = vmatprep.mubr.msk.bf16.mxu0 %vm489_vm1, %v3613_v61  ;;  %v3517_v19 = vmul.f32 %v6664_v9, %v3478_v44  ;;  %v3587_v58 = vmax.f32 %v3555_v28, 0.0 }
 0x2d4   : > { %v3390_v25 = vpop.f32.mrf.mxu1  ;;  %5107 = vmatmul.mubr.msk.bf16.gmra.mxu0 %vm489_vm1, %v3614_v12 }
 0x2d5   : > { %v3590_v22 = vmax.f32 %v3558_v42, 0.0  ;;  %v3522_v45 = vmul.f32 %v6664_v9, %v3483_v2  ;;  %v3481_v35 = vadd.f32 %v3390_v25, %v3187_v7  ;;  %v3556_v15 = vadd.f32 %v6676_v49, %v3517_v19  ;;  %v5061_v2 = vpop.f32.mrf.mxu0  ;;  %v7226_v19 = vld [vmem:[#allocation6_spill] sm:$0xff] }
 0x2d6   : > { %v5083_v47 = vpop.f32.mrf.mxu1  ;;  %v3197_v42 = vadd.f32 %v6706_v20, %v7225_v48  ;;  %v2607_v25 = vadd.f32 %v7227_v1, %v7226_v19  ;;  %v7228_v20 = vld [vmem:[#allocation14_spill] sm:$0xff] }
 0x2d7   : > { %v3616_v23 = vpack.c.bf16 %v3590_v22, %v3589_v43  ;;  %v3520_v50 = vmul.f32 %v6664_v9, %v3481_v35  ;;  %v3484_v16 = vadd.f32 %v5083_v47, %v3190_v11  ;;  %v3588_v52 = vmax.f32 %v3556_v15, 0.0 }
 0x2d8   : > { %v3393_v46 = vpop.f32.mrf.mxu1  ;;  %v3561_v5 = vadd.f32 %v6676_v49, %v3522_v45  ;;  %v3195_v45 = vadd.f32 %v6722_v60, %v6615_v14 }
 0x2d9   : > { %v3523_v29 = vmul.f32 %v6664_v9, %v3484_v16  ;;  %v3482_v39 = vadd.f32 %v3393_v46, %v3188_v24  ;;  %v3615_v30 = vpack.c.bf16 %v3588_v52, %v3587_v58  ;;  %v3559_v8 = vadd.f32 %v6676_v49, %v3520_v50  ;;  %v7229_v16 = vld [vmem:[#allocation13_spill] sm:$0xff]  ;;  %v3147_v58 = vpop.f32.mrf.mxu0 }
 0x2da   : > { %v5086_v13 = vpop.f32.mrf.mxu1  ;;  %v3593_v31 = vmax.f32 %v3561_v5, 0.0  ;;  %v2902_v24 = vadd.f32 %v7228_v20, %v2607_v25  ;;  %v3198_v41 = vadd.f32 %v6732_v32, %v7229_v16  ;;  %v7234_v25 = vld [vmem:[#allocation10_spill] sm:$0xff] }
 0x2db   : > { %v3562_v27 = vadd.f32 %v6676_v49, %v3523_v29  ;;  %v3521_v33 = vmul.f32 %v6664_v9, %v3482_v39  ;;  %v3487_v18 = vadd.f32 %v5086_v13, %v3193_v57  ;;  %5110 = vmatprep.mubr.msk.bf16.mxu0 %vm489_vm1, %v3615_v30  ;;  %v3591_v61 = vmax.f32 %v3559_v8, 0.0  ;;  %v5064_v29 = vpop.f32.mrf.mxu0  ;;  %v7230_v30 = vld [vmem:[#allocation8_spill] sm:$0xff]  ;;  %v7231_v13 = vld [vmem:[#allocation9_spill] sm:$0xff] }
 0x2dc   : > { %v3406_v26 = vpop.f32.mrf.mxu1  ;;  %5111 = vmatmul.mubr.msk.bf16.gmra.mxu0 %vm489_vm1, %v3616_v23  ;;  %v2611_v8 = vadd.f32 %v7231_v13, %v7230_v30  ;;  %v3196_v32 = vadd.f32 %v6746_v40, %v2902_v24 }
 0x2dd   : > { %v3594_v6 = vmax.f32 %v3562_v27, 0.0  ;;  %v3560_v12 = vadd.f32 %v6676_v49, %v3521_v33  ;;  %v3485_v34 = vadd.f32 %v3406_v26, %v3191_v36  ;;  %v3526_v59 = vmul.f32 %v6664_v9, %v3487_v18  ;;  %v7232_v26 = vld [vmem:[#allocation15_spill] sm:$0xff] }
 0x2de   : > { %v5087_v17 = vpop.f32.mrf.mxu1 }
 0x2df   : > { %v3618_v4 = vpack.c.bf16 %v3594_v6, %v3593_v31  ;;  %v3592_v63 = vmax.f32 %v3560_v12, 0.0  ;;  %v3524_v44 = vmul.f32 %v6664_v9, %v3485_v34  ;;  %v3488_v54 = vadd.f32 %v5087_v17, %v3194_v38  ;;  %v3160_v17 = vpop.f32.mrf.mxu0 }
 0x2e0   : > { %v3409_v7 = vpop.f32.mrf.mxu1  ;;  %v3565_v10 = vadd.f32 %v6676_v49, %v3526_v59  ;;  %v3201_v31 = vadd.f32 %v6756_v62, %v7232_v26  ;;  %v2906_v59 = vadd.f32 %v6635_v3, %v2611_v8 }
 0x2e1   : > { %v3617_v11 = vpack.c.bf16 %v3592_v63, %v3591_v61  ;;  %v3486_v28 = vadd.f32 %v3409_v7, %v3192_v37  ;;  %v3527_v43 = vmul.f32 %v6664_v9, %v3488_v54  ;;  %v3563_v35 = vadd.f32 %v6676_v49, %v3524_v44 }
 0x2e2   : > { %v5090_v22 = vpop.f32.mrf.mxu1  ;;  %v3597_v46 = vmax.f32 %v3565_v10, 0.0  ;;  %v3199_v37 = vadd.f32 %v3144_v53, %v6630_v21  ;;  %v7235_v10 = vld [vmem:[#allocation17_spill] sm:$0xff] }
 0x2e3   : > { %v3525_v15 = vmul.f32 %v6664_v9, %v3486_v28  ;;  %v3491_v47 = vadd.f32 %v5090_v22, %v3197_v42  ;;  %5114 = vmatprep.mubr.msk.bf16.mxu0 %vm489_vm1, %v3617_v11  ;;  %v3566_v23 = vadd.f32 %v6676_v49, %v3527_v43  ;;  %v3595_v39 = vmax.f32 %v3563_v35, 0.0  ;;  %v5065_v28 = vpop.f32.mrf.mxu0 }
 0x2e4   : > { %v3422_v50 = vpop.f32.mrf.mxu1  ;;  %5115 = vmatmul.mubr.msk.bf16.gmra.mxu0 %vm489_vm1, %v3618_v4  ;;  %v7233_v4 = vld [vmem:[#allocation16_spill] sm:$0xff]  ;;  %v3200_v11 = vadd.f32 %v3147_v58, %v2906_v59  ;;  %v2615_v43 = vadd.f32 %v7235_v10, %v7234_v25  ;;  %v6854_v10 = vld [vmem:[%s7164_s11] ss:$0 sm:$0xff] }
 0x2e5   : > { %v3564_v52 = vadd.f32 %v6676_v49, %v3525_v15  ;;  %v3530_v14 = vmul.f32 %v6664_v9, %v3491_v47  ;;  %v3489_v60 = vadd.f32 %v3422_v50, %v3195_v45  ;;  %v3598_v57 = vmax.f32 %v3566_v23, 0.0  ;;  %v7236_v15 = vld [vmem:[#allocation18_spill] sm:$0xff] }
 0x2e6   : > { %v5091_v5 = vpop.f32.mrf.mxu1  ;;  %v3202_v63 = vadd.f32 %v5061_v2, %v7233_v4  ;;  %v3205_v47 = vadd.f32 %v5064_v29, %v7236_v15  ;;  %v3203_v50 = vadd.f32 %v3160_v17, %v6645_v51  ;;  %v2910_v16 = vadd.f32 %v6652_v55, %v2615_v43  ;;  %v7237_v55 = vld [vmem:[#allocation19_spill] sm:$0xff] }
 0x2e7   : > { %v3596_v36 = vmax.f32 %v3564_v52, 0.0  ;;  %v3492_v56 = vadd.f32 %v5091_v5, %v3198_v41  ;;  %v3620_v27 = vpack.c.bf16 %v3598_v57, %v3597_v46  ;;  %v3528_v33 = vmul.f32 %v6664_v9, %v3489_v60  ;;  %v3163_v52 = vpop.f32.mrf.mxu0 }
 0x2e8   : > { %v3425_v18 = vpop.f32.mrf.mxu1  ;;  %v3569_v12 = vadd.f32 %v6676_v49, %v3530_v14  ;;  %v3204_v30 = vadd.f32 %v3163_v52, %v2910_v16 }
 0x2e9   : > { %v3619_v6 = vpack.c.bf16 %v3596_v36, %v3595_v39  ;;  %v3531_v34 = vmul.f32 %v6664_v9, %v3492_v56  ;;  %v3490_v0 = vadd.f32 %v3425_v18, %v3196_v32  ;;  %v3567_v62 = vadd.f32 %v6676_v49, %v3528_v33 }
 0x2ea   : > { %v5094_v38 = vpop.f32.mrf.mxu1  ;;  %v3601_v7 = vmax.f32 %v3569_v12, 0.0  ;;  %v3206_v56 = vadd.f32 %v5065_v28, %v7237_v55 }
 0x2eb   : > { %v3570_v40 = vadd.f32 %v6676_v49, %v3531_v34  ;;  %v3495_v61 = vadd.f32 %v5094_v38, %v3201_v31  ;;  %5118 = vmatprep.mubr.msk.bf16.mxu0 %vm489_vm1, %v3619_v6  ;;  %v3529_v44 = vmul.f32 %v6664_v9, %v3490_v0  ;;  %v3599_v22 = vmax.f32 %v3567_v62, 0.0 }
 0x2ec   : > { %v3438_v54 = vpop.f32.mrf.mxu1  ;;  %5119 = vmatmul.mubr.msk.bf16.gmra.mxu0 %vm489_vm1, %v3620_v27 }
 0x2ed   : > { %v3602_v48 = vmax.f32 %v3570_v40, 0.0  ;;  %v3534_v42 = vmul.f32 %v6664_v9, %v3495_v61  ;;  %v3493_v21 = vadd.f32 %v3438_v54, %v3199_v37  ;;  %v3568_v3 = vadd.f32 %v6676_v49, %v3529_v44 }
 0x2ee   : > { %v5095_v53 = vpop.f32.mrf.mxu1 }
 0x2ef   : > { %v3622_v19 = vpack.c.bf16 %v3602_v48, %v3601_v7  ;;  %v3532_v2 = vmul.f32 %v6664_v9, %v3493_v21  ;;  %v3496_v1 = vadd.f32 %v5095_v53, %v3202_v63  ;;  %v3600_v45 = vmax.f32 %v3568_v3, 0.0 }
 0x2f0   : > { %v3441_v35 = vpop.f32.mrf.mxu1  ;;  %v3573_v20 = vadd.f32 %v6676_v49, %v3534_v42 }
 0x2f1   : > { %v3535_v24 = vmul.f32 %v6664_v9, %v3496_v1  ;;  %v3494_v23 = vadd.f32 %v3441_v35, %v3200_v11  ;;  %v3621_v41 = vpack.c.bf16 %v3600_v45, %v3599_v22  ;;  %v3571_v14 = vadd.f32 %v6676_v49, %v3532_v2  ;;  %v6862_v45 = vld [vmem:[%s7165_s12] ss:$0 sm:$0xff] }
 0x2f2   : > { %v5098_v58 = vpop.f32.mrf.mxu1  ;;  %v3605_v29 = vmax.f32 %v3573_v20, 0.0  ;;  %v6867_v35 = vld [vmem:[%s7161_s8] ss:$0 sm:$0xff] }
 0x2f3   : > { %v3574_v60 = vadd.f32 %v6676_v49, %v3535_v24  ;;  %v3533_v46 = vmul.f32 %v6664_v9, %v3494_v23  ;;  %v3499_v57 = vadd.f32 %v5098_v58, %v3205_v47  ;;  %5122 = vmatprep.mubr.msk.bf16.mxu0 %vm489_vm1, %v3621_v41  ;;  %v3603_v32 = vmax.f32 %v3571_v14, 0.0  ;;  %v6875_v20 = vld [vmem:[%s7162_s9] ss:$0 sm:$0xff] }
 0x2f4   : > { %v3454_v5 = vpop.f32.mrf.mxu1  ;;  %5123 = vmatmul.mubr.msk.bf16.gmra.mxu0 %vm489_vm1, %v3622_v19 }
 0x2f5   : > { %v3606_v39 = vmax.f32 %v3574_v60, 0.0  ;;  %v3572_v36 = vadd.f32 %v6676_v49, %v3533_v46  ;;  %v3497_v51 = vadd.f32 %v3454_v5, %v3203_v50  ;;  %v3538_v13 = vmul.f32 %v6664_v9, %v3499_v57 }
 0x2f6   : > { %v5099_v8 = vpop.f32.mrf.mxu1 }
 0x2f7   : > { %v3624_v27 = vpack.c.bf16 %v3606_v39, %v3605_v29  ;;  %v3604_v33 = vmax.f32 %v3572_v36, 0.0  ;;  %v3536_v18 = vmul.f32 %v6664_v9, %v3497_v51  ;;  %v3500_v26 = vadd.f32 %v5099_v8, %v3206_v56 }
 0x2f8   : > { %v3457_v31 = vpop.f32.mrf.mxu1  ;;  %v3577_v34 = vadd.f32 %v6676_v49, %v3538_v13 }
 0x2f9   : > { %v3623_v6 = vpack.c.bf16 %v3604_v33, %v3603_v32  ;;  %v3498_v12 = vadd.f32 %v3457_v31, %v3204_v30  ;;  %v3539_v0 = vmul.f32 %v6664_v9, %v3500_v26  ;;  %v3575_v38 = vadd.f32 %v6676_v49, %v3536_v18 }
 0x2fa   : > { %v3609_v40 = vmax.f32 %v3577_v34, 0.0  ;;  %v5138_v54 = vpop.f32.mrf.mxu1 }
 0x2fb   : > { %v3537_v37 = vmul.f32 %v6664_v9, %v3498_v12  ;;  %5126 = vmatprep.mubr.msk.bf16.mxu0 %vm489_vm1, %v3623_v6  ;;  %v3578_v59 = vadd.f32 %v6676_v49, %v3539_v0  ;;  %v3607_v4 = vmax.f32 %v3575_v38, 0.0  ;;  %v4092_v22 = vmul.f32 %v5138_v54, %v6854_v10 }
 0x2fc   : > { %5127 = vmatmul.mubr.msk.bf16.gmra.mxu0 %vm489_vm1, %v3624_v27  ;;  %v3956_v9 = vpop.f32.mrf.mxu1 }
 0x2fd   : > { %v3576_v17 = vadd.f32 %v6676_v49, %v3537_v37  ;;  %v3610_v61 = vmax.f32 %v3578_v59, 0.0  ;;  %v4131_v24 = vadd.f32 %v6862_v45, %v4092_v22  ;;  %v4090_v23 = vmul.f32 %v6854_v10, %v3956_v9 }
 0x2fe   : > { %v5139_v7 = vpop.f32.mrf.mxu1 }
 0x2ff   : > { %v3608_v63 = vmax.f32 %v3576_v17, 0.0  ;;  %v3626_v62 = vpack.c.bf16 %v3610_v61, %v3609_v40  ;;  %v4093_v16 = vmul.f32 %v5139_v7, %v6854_v10  ;;  %v4129_v5 = vadd.f32 %v6862_v45, %v4090_v23 }
 0x300   : > { %v3959_v48 = vpop.f32.mrf.mxu1 }
 0x301   : > { %v3625_v44 = vpack.c.bf16 %v3608_v63, %v3607_v4  ;;  %v4091_v60 = vmul.f32 %v6854_v10, %v3959_v48  ;;  %v4132_v51 = vadd.f32 %v6862_v45, %v4093_v16 }
 0x302   : > { %v5142_v42 = vpop.f32.mrf.mxu1 }
 0x303   : > { %5130 = vmatprep.mubr.msk.bf16.mxu0 %vm489_vm1, %v3625_v44  ;;  %v4096_v46 = vmul.f32 %v5142_v42, %v6854_v10  ;;  %v4130_v27 = vadd.f32 %v6862_v45, %v4091_v60 }
 0x304   : > { %5131 = vmatmul.mubr.msk.bf16.gmra.mxu0 %vm489_vm1, %v3626_v62  ;;  %v3972_v21 = vpop.f32.mrf.mxu1 }
 0x305   : > { %v4135_v33 = vadd.f32 %v6862_v45, %v4096_v46  ;;  %v4094_v18 = vmul.f32 %v6854_v10, %v3972_v21 }
 0x306   : > { %v5143_v49 = vpop.f32.mrf.mxu1 }
 0x307   : > { %v4097_v0 = vmul.f32 %v5143_v49, %v6854_v10  ;;  %v4133_v4 = vadd.f32 %v6862_v45, %v4094_v18 }
 0x308   : > { %v3975_v3 = vpop.f32.mrf.mxu1 }
 0x309   : > { %v4095_v63 = vmul.f32 %v6854_v10, %v3975_v3  ;;  %v4136_v48 = vadd.f32 %v6862_v45, %v4097_v0 }
 0x30a   : > { %v6837_v53 = vpop.f32.mrf.mxu1 }
 0x30b   : > { %v4100_v42 = vmul.f32 %v6837_v53, %v6854_v10  ;;  %v4134_v23 = vadd.f32 %v6862_v45, %v4095_v63 }
 0x30c   : > { %v6839_v11 = vpop.f32.mrf.mxu1 }
 0x30e   : > { %v6841_v28 = vpop.f32.mrf.mxu1 }
 0x310   : > { %v6843_v19 = vpop.f32.mrf.mxu1 }
 0x312   : > { %v6845_v2 = vpop.f32.mrf.mxu1 }
 0x314   : > { %v6847_v1 = vpop.f32.mrf.mxu1 }
 0x315   : > { %v4102_v0 = vmul.f32 %v6854_v10, %v6847_v1 }
 0x316   : > { %v6849_v25 = vpop.f32.mrf.mxu1 }
 0x317   : > { %v4105_v63 = vmul.f32 %v6849_v25, %v6854_v10 }
 0x318   : > { %v6856_v43 = vpop.f32.mrf.mxu1 }
 0x31a   : > { %v6869_v15 = vpop.f32.mrf.mxu1 }
 0x31c   : > { %v6881_v58 = vpop.f32.mrf.mxu1 }
 0x31e   : > { %v6893_v56 = vpop.f32.mrf.mxu1 }
 0x320   : > { %v6907_v37 = vpop.f32.mrf.mxu1 }
 0x322   : > { %v6922_v49 = vpop.f32.mrf.mxu1 }
 0x324   : > { %v6936_v46 = vpop.f32.mrf.mxu1 }
 0x38c   : > { %v5104_v47 = vpop.f32.mrf.mxu0 }
 0x38d   : > { %v3849_v50 = vmul.f32 %v5104_v47, %v6867_v35 }
 0x38e   : > { %v3713_v41 = vpop.f32.mrf.mxu0 }
 0x38f   : > { %v3888_v52 = vadd.f32 %v6875_v20, %v3849_v50  ;;  %v3847_v14 = vmul.f32 %v6867_v35, %v3713_v41 }
 0x390   : > { %v5105_v57 = vpop.f32.mrf.mxu0 }
 0x391   : > { %v4163_v29 = vadd.f32 %v4131_v24, %v3888_v52  ;;  %v3886_v39 = vadd.f32 %v6875_v20, %v3847_v14  ;;  %v3850_v36 = vmul.f32 %v5105_v57, %v6867_v35  ;;  %v4139_v52 = vadd.f32 %v6862_v45, %v4100_v42 }
 0x392   : > { %v3716_v55 = vpop.f32.mrf.mxu0  ;;  %v4098_v14 = vmul.f32 %v6854_v10, %v6839_v11  ;;  %v4108_v42 = vmul.f32 %v6869_v15, %v6854_v10 }
 0x393   : > { %v4195_v30 = vmax.f32 %v4163_v29, 0.0  ;;  %v4161_v13 = vadd.f32 %v4129_v5, %v3886_v39  ;;  %v3889_v8 = vadd.f32 %v6875_v20, %v3850_v36  ;;  %v3848_v32 = vmul.f32 %v6867_v35, %v3716_v55 }
 0x394   : > { %v5108_v26 = vpop.f32.mrf.mxu0  ;;  %v4101_v29 = vmul.f32 %v6841_v28, %v6854_v10  ;;  %v4099_v55 = vmul.f32 %v6854_v10, %v6843_v19 }
 0x395   : > { %4228 = vst.msk [vmem:[%s6900_s16 + $0x10] sm:$0xff] %vm4225_vm3, %v4195_v30  ;;  %v4193_v31 = vmax.f32 %v4161_v13, 0.0  ;;  %v4164_v6 = vadd.f32 %v4132_v51, %v3889_v8  ;;  %v3887_v12 = vadd.f32 %v6875_v20, %v3848_v32  ;;  %v3853_v34 = vmul.f32 %v5108_v26, %v6867_v35 }
 0x396   : > { %v3729_v38 = vpop.f32.mrf.mxu0  ;;  %v4104_v30 = vmul.f32 %v6845_v2, %v6854_v10  ;;  %v4137_v8 = vadd.f32 %v6862_v45, %v4098_v14  ;;  %v4140_v18 = vadd.f32 %v6862_v45, %v4101_v29  ;;  %v4106_v14 = vmul.f32 %v6854_v10, %v6881_v58 }
 0x397   : > { %4226 = vst.msk [vmem:[%s6900_s16] sm:$0xff] %vm4225_vm3, %v4193_v31  ;;  %v4196_v59 = vmax.f32 %v4164_v6, 0.0  ;;  %v4162_v17 = vadd.f32 %v4130_v27, %v3887_v12  ;;  %v3892_v40 = vadd.f32 %v6875_v20, %v3853_v34  ;;  %v3851_v61 = vmul.f32 %v6867_v35, %v3729_v38 }
 0x398   : > { %v5109_v62 = vpop.f32.mrf.mxu0  ;;  %v4138_v12 = vadd.f32 %v6862_v45, %v4099_v55  ;;  %v4143_v34 = vadd.f32 %v6862_v45, %v4104_v30 }
 0x399   : > { %4229 = vst.msk [vmem:[%s6900_s16 + $0x18] sm:$0xff] %vm4225_vm3, %v4196_v59  ;;  %v4194_v44 = vmax.f32 %v4162_v17, 0.0  ;;  %v4167_v54 = vadd.f32 %v4135_v33, %v3892_v40  ;;  %v3890_v9 = vadd.f32 %v6875_v20, %v3851_v61  ;;  %v3854_v7 = vmul.f32 %v5109_v62, %v6867_v35  ;;  %v6953_v33 = vpop.f32.mrf.mxu1 }
 0x39a   : > { %v3732_v21 = vpop.f32.mrf.mxu0 }
 0x39b   : > { %4227 = vst.msk [vmem:[%s6900_s16 + $0x8] sm:$0xff] %vm4225_vm3, %v4194_v44  ;;  %v4199_v3 = vmax.f32 %v4167_v54, 0.0  ;;  %v4165_v22 = vadd.f32 %v4133_v4, %v3890_v9  ;;  %v3893_v47 = vadd.f32 %v6875_v20, %v3854_v7  ;;  %v3852_v24 = vmul.f32 %v6867_v35, %v3732_v21  ;;  %v6968_v4 = vpop.f32.mrf.mxu1 }
 0x39c   : > { %v5112_v41 = vpop.f32.mrf.mxu0  ;;  %v4141_v7 = vadd.f32 %v6862_v45, %v4102_v0 }
 0x39d   : > { %4232 = vst.msk [vmem:[%s6900_s16 + $0x30] sm:$0xff] %vm4225_vm3, %v4199_v3  ;;  %v4197_v50 = vmax.f32 %v4165_v22, 0.0  ;;  %v4168_v16 = vadd.f32 %v4136_v48, %v3893_v47  ;;  %v3891_v53 = vadd.f32 %v6875_v20, %v3852_v24  ;;  %v3857_v60 = vmul.f32 %v5112_v41, %v6867_v35  ;;  %v5162_v24 = vpop.f32.mrf.mxu1 }
 0x39e   : > { %v3745_v39 = vpop.f32.mrf.mxu0  ;;  %v4103_v48 = vmul.f32 %v6854_v10, %v6856_v43 }
 0x39f   : > { %4230 = vst.msk [vmem:[%s6900_s16 + $0x20] sm:$0xff] %vm4225_vm3, %v4197_v50  ;;  %v4200_v57 = vmax.f32 %v4168_v16, 0.0  ;;  %v4166_v5 = vadd.f32 %v4134_v23, %v3891_v53  ;;  %v3896_v36 = vadd.f32 %v6875_v20, %v3857_v60  ;;  %v3855_v51 = vmul.f32 %v6867_v35, %v3745_v39 }
 0x3a0   : > { %v5113_v13 = vpop.f32.mrf.mxu0  ;;  %v4144_v23 = vadd.f32 %v6862_v45, %v4105_v63  ;;  %v4142_v41 = vadd.f32 %v6862_v45, %v4103_v48 }
 0x3a1   : > { %4233 = vst.msk [vmem:[%s6900_s16 + $0x38] sm:$0xff] %vm4225_vm3, %v4200_v57  ;;  %v4198_v11 = vmax.f32 %v4166_v5, 0.0  ;;  %v4171_v32 = vadd.f32 %v4139_v52, %v3896_v36  ;;  %v3894_v28 = vadd.f32 %v6875_v20, %v3855_v51  ;;  %v3858_v27 = vmul.f32 %v5113_v13, %v6867_v35  ;;  %v4052_v36 = vpop.f32.mrf.mxu1 }
 0x3a2   : > { %v3748_v26 = vpop.f32.mrf.mxu0  ;;  %v4147_v52 = vadd.f32 %v6862_v45, %v4108_v42  ;;  %v4109_v51 = vmul.f32 %v6893_v56, %v6854_v10 }
 0x3a3   : > { %4231 = vst.msk [vmem:[%s6900_s16 + $0x28] sm:$0xff] %vm4225_vm3, %v4198_v11  ;;  %v4203_v19 = vmax.f32 %v4171_v32, 0.0  ;;  %v4169_v31 = vadd.f32 %v4137_v8, %v3894_v28  ;;  %v3897_v2 = vadd.f32 %v6875_v20, %v3858_v27  ;;  %v3856_v6 = vmul.f32 %v6867_v35, %v3748_v26 }
 0x3a4   : > { %v5116_v38 = vpop.f32.mrf.mxu0  ;;  %v4145_v8 = vadd.f32 %v6862_v45, %v4106_v14  ;;  %v4107_v32 = vmul.f32 %v6854_v10, %v6907_v37  ;;  %v4112_v28 = vmul.f32 %v6922_v49, %v6854_v10  ;;  %v4114_v14 = vmul.f32 %v6854_v10, %v4052_v36 }
 0x3a5   : > { %4236 = vst.msk [vmem:[%s6900_s16 + $0x50] sm:$0xff] %vm4225_vm3, %v4203_v19  ;;  %v4201_v59 = vmax.f32 %v4169_v31, 0.0  ;;  %v4172_v17 = vadd.f32 %v4140_v18, %v3897_v2  ;;  %v3895_v40 = vadd.f32 %v6875_v20, %v3856_v6  ;;  %v3861_v61 = vmul.f32 %v5116_v38, %v6867_v35  ;;  %v5163_v31 = vpop.f32.mrf.mxu1 }
 0x3a6   : > { %v3761_v62 = vpop.f32.mrf.mxu0  ;;  %v4148_v2 = vadd.f32 %v6862_v45, %v4109_v51  ;;  %v4146_v0 = vadd.f32 %v6862_v45, %v4107_v32  ;;  %v4151_v38 = vadd.f32 %v6862_v45, %v4112_v28 }
 0x3a7   : > { %4234 = vst.msk [vmem:[%s6900_s16 + $0x40] sm:$0xff] %vm4225_vm3, %v4201_v59  ;;  %v4204_v44 = vmax.f32 %v4172_v17, 0.0  ;;  %v4170_v1 = vadd.f32 %v4138_v12, %v3895_v40  ;;  %v3900_v54 = vadd.f32 %v6875_v20, %v3861_v61  ;;  %v3859_v9 = vmul.f32 %v6867_v35, %v3761_v62 }
 0x3a8   : > { %v5117_v21 = vpop.f32.mrf.mxu0  ;;  %v4110_v59 = vmul.f32 %v6854_v10, %v6936_v46 }
 0x3a9   : > { %4237 = vst.msk [vmem:[%s6900_s16 + $0x58] sm:$0xff] %vm4225_vm3, %v4204_v44  ;;  %v4202_v25 = vmax.f32 %v4170_v1, 0.0  ;;  %v4175_v3 = vadd.f32 %v4143_v34, %v3900_v54  ;;  %v3898_v22 = vadd.f32 %v6875_v20, %v3859_v9  ;;  %v3862_v47 = vmul.f32 %v5117_v21, %v6867_v35  ;;  %v4055_v44 = vpop.f32.mrf.mxu1 }
 0x3aa   : > { %v3764_v50 = vpop.f32.mrf.mxu0  ;;  %v4113_v1 = vmul.f32 %v6953_v33, %v6854_v10  ;;  %v4149_v42 = vadd.f32 %v6862_v45, %v4110_v59  ;;  %v4111_v21 = vmul.f32 %v6854_v10, %v6968_v4  ;;  %v4115_v32 = vmul.f32 %v6854_v10, %v4055_v44 }
 0x3ab   : > { %4235 = vst.msk [vmem:[%s6900_s16 + $0x48] sm:$0xff] %vm4225_vm3, %v4202_v25  ;;  %v4207_v43 = vmax.f32 %v4175_v3, 0.0  ;;  %v4173_v16 = vadd.f32 %v4141_v7, %v3898_v22  ;;  %v3901_v15 = vadd.f32 %v6875_v20, %v3862_v47  ;;  %v3860_v53 = vmul.f32 %v6867_v35, %v3764_v50  ;;  %v5166_v50 = vpop.f32.mrf.mxu1 }
 0x3ac   : > { %v5120_v60 = vpop.f32.mrf.mxu0  ;;  %v4116_v25 = vmul.f32 %v5162_v24, %v6854_v10  ;;  %v4120_v28 = vmul.f32 %v5166_v50, %v6854_v10 }
 0x3ad   : > { %4240 = vst.msk [vmem:[%s6900_s16 + $0x70] sm:$0xff] %vm4225_vm3, %v4207_v43  ;;  %v4205_v57 = vmax.f32 %v4173_v16, 0.0  ;;  %v4176_v5 = vadd.f32 %v4144_v23, %v3901_v15  ;;  %v3899_v29 = vadd.f32 %v6875_v20, %v3860_v53  ;;  %v3865_v39 = vmul.f32 %v5120_v60, %v6867_v35  ;;  %v4068_v51 = vpop.f32.mrf.mxu1 }
 0x3ae   : > { %v3777_v11 = vpop.f32.mrf.mxu0  ;;  %v4152_v43 = vadd.f32 %v6862_v45, %v4113_v1  ;;  %v4118_v59 = vmul.f32 %v6854_v10, %v4068_v51 }
 0x3af   : > { %4238 = vst.msk [vmem:[%s6900_s16 + $0x60] sm:$0xff] %vm4225_vm3, %v4205_v57  ;;  %v4208_v55 = vmax.f32 %v4176_v5, 0.0  ;;  %v4174_v58 = vadd.f32 %v4142_v41, %v3899_v29  ;;  %v3904_v30 = vadd.f32 %v6875_v20, %v3865_v39  ;;  %v3863_v13 = vmul.f32 %v6867_v35, %v3777_v11 }
 0x3b0   : > { %v5121_v27 = vpop.f32.mrf.mxu0  ;;  %v4150_v41 = vadd.f32 %v6862_v45, %v4111_v21  ;;  %v4117_v11 = vmul.f32 %v5163_v31, %v6854_v10  ;;  %v5167_v31 = vpop.f32.mrf.mxu1 }
 0x3b1   : > { %4241 = vst.msk [vmem:[%s6900_s16 + $0x78] sm:$0xff] %vm4225_vm3, %v4208_v55  ;;  %v4206_v56 = vmax.f32 %v4174_v58, 0.0  ;;  %v4179_v18 = vadd.f32 %v4147_v52, %v3904_v30  ;;  %v3902_v26 = vadd.f32 %v6875_v20, %v3863_v13  ;;  %v3866_v19 = vmul.f32 %v5121_v27, %v6867_v35 }
 0x3b2   : > { %v3780_v6 = vpop.f32.mrf.mxu0  ;;  %v4155_v52 = vadd.f32 %v6862_v45, %v4116_v25  ;;  %v4071_v44 = vpop.f32.mrf.mxu1  ;;  %v4121_v1 = vmul.f32 %v5167_v31, %v6854_v10 }
 0x3b3   : > { %4239 = vst.msk [vmem:[%s6900_s16 + $0x68] sm:$0xff] %vm4225_vm3, %v4206_v56  ;;  %v4211_v37 = vmax.f32 %v4179_v18, 0.0  ;;  %v4177_v12 = vadd.f32 %v4145_v8, %v3902_v26  ;;  %v3905_v49 = vadd.f32 %v6875_v20, %v3866_v19  ;;  %v3864_v34 = vmul.f32 %v6867_v35, %v3780_v6 }
 0x3b4   : > { %v5124_v17 = vpop.f32.mrf.mxu0  ;;  %v4153_v8 = vadd.f32 %v6862_v45, %v4114_v14  ;;  %v4119_v21 = vmul.f32 %v6854_v10, %v4071_v44 }
 0x3b5   : > { %4244 = vst.msk [vmem:[%s6900_s16 + $0x90] sm:$0xff] %vm4225_vm3, %v4211_v37  ;;  %v4209_v40 = vmax.f32 %v4177_v12, 0.0  ;;  %v4180_v61 = vadd.f32 %v4148_v2, %v3905_v49  ;;  %v3903_v63 = vadd.f32 %v6875_v20, %v3864_v34  ;;  %v3869_v62 = vmul.f32 %v5124_v17, %v6867_v35 }
 0x3b6   : > { %v3793_v54 = vpop.f32.mrf.mxu0  ;;  %v4156_v2 = vadd.f32 %v6862_v45, %v4117_v11 }
 0x3b7   : > { %4242 = vst.msk [vmem:[%s6900_s16 + $0x80] sm:$0xff] %vm4225_vm3, %v4209_v40  ;;  %v4212_v9 = vmax.f32 %v4180_v61, 0.0  ;;  %v4178_v46 = vadd.f32 %v4146_v0, %v3903_v63  ;;  %v3908_v7 = vadd.f32 %v6875_v20, %v3869_v62  ;;  %v3867_v48 = vmul.f32 %v6867_v35, %v3793_v54 }
 0x3b8   : > { %v5125_v3 = vpop.f32.mrf.mxu0  ;;  %v4154_v0 = vadd.f32 %v6862_v45, %v4115_v32 }
 0x3b9   : > { %4245 = vst.msk [vmem:[%s6900_s16 + $0x98] sm:$0xff] %vm4225_vm3, %v4212_v9  ;;  %v4210_v33 = vmax.f32 %v4178_v46, 0.0  ;;  %v4183_v22 = vadd.f32 %v4151_v38, %v3908_v7  ;;  %v3906_v47 = vadd.f32 %v6875_v20, %v3867_v48  ;;  %v3870_v23 = vmul.f32 %v5125_v3, %v6867_v35 }
 0x3ba   : > { %v3796_v16 = vpop.f32.mrf.mxu0  ;;  %v4159_v38 = vadd.f32 %v6862_v45, %v4120_v28 }
 0x3bb   : > { %4243 = vst.msk [vmem:[%s6900_s16 + $0x88] sm:$0xff] %vm4225_vm3, %v4210_v33  ;;  %v4215_v15 = vmax.f32 %v4183_v22, 0.0  ;;  %v4181_v4 = vadd.f32 %v4149_v42, %v3906_v47  ;;  %v3909_v24 = vadd.f32 %v6875_v20, %v3870_v23  ;;  %v3868_v53 = vmul.f32 %v6867_v35, %v3796_v16 }
 0x3bc   : > { %v5128_v60 = vpop.f32.mrf.mxu0  ;;  %v4157_v42 = vadd.f32 %v6862_v45, %v4118_v59  ;;  %v4160_v23 = vadd.f32 %v6862_v45, %v4121_v1 }
 0x3bd   : > { %4248 = vst.msk [vmem:[%s6900_s16 + $0xb0] sm:$0xff] %vm4225_vm3, %v4215_v15  ;;  %v4213_v57 = vmax.f32 %v4181_v4, 0.0  ;;  %v4184_v5 = vadd.f32 %v4152_v43, %v3909_v24  ;;  %v3907_v29 = vadd.f32 %v6875_v20, %v3868_v53  ;;  %v3873_v39 = vmul.f32 %v5128_v60, %v6867_v35 }
 0x3be   : > { %v3809_v55 = vpop.f32.mrf.mxu0  ;;  %v4158_v4 = vadd.f32 %v6862_v45, %v4119_v21 }
 0x3bf   : > { %4246 = vst.msk [vmem:[%s6900_s16 + $0xa0] sm:$0xff] %vm4225_vm3, %v4213_v57  ;;  %v4216_v58 = vmax.f32 %v4184_v5, 0.0  ;;  %v4182_v30 = vadd.f32 %v4150_v41, %v3907_v29  ;;  %v3912_v36 = vadd.f32 %v6875_v20, %v3873_v39  ;;  %v3871_v13 = vmul.f32 %v6867_v35, %v3809_v55 }
 0x3c0   : > { %v5129_v27 = vpop.f32.mrf.mxu0 }
 0x3c1   : > { %4249 = vst.msk [vmem:[%s6900_s16 + $0xb8] sm:$0xff] %vm4225_vm3, %v4216_v58  ;;  %v4214_v56 = vmax.f32 %v4182_v30, 0.0  ;;  %v4187_v18 = vadd.f32 %v4155_v52, %v3912_v36  ;;  %v3910_v26 = vadd.f32 %v6875_v20, %v3871_v13  ;;  %v3874_v19 = vmul.f32 %v5129_v27, %v6867_v35 }
 0x3c2   : > { %v3812_v6 = vpop.f32.mrf.mxu0 }
 0x3c3   : > { %4247 = vst.msk [vmem:[%s6900_s16 + $0xa8] sm:$0xff] %vm4225_vm3, %v4214_v56  ;;  %v4219_v37 = vmax.f32 %v4187_v18, 0.0  ;;  %v4185_v12 = vadd.f32 %v4153_v8, %v3910_v26  ;;  %v3913_v49 = vadd.f32 %v6875_v20, %v3874_v19  ;;  %v3872_v34 = vmul.f32 %v6867_v35, %v3812_v6 }
 0x3c4   : > { %v5132_v17 = vpop.f32.mrf.mxu0 }
 0x3c5   : > { %4252 = vst.msk [vmem:[%s6900_s16 + $0xd0] sm:$0xff] %vm4225_vm3, %v4219_v37  ;;  %v4217_v40 = vmax.f32 %v4185_v12, 0.0  ;;  %v4188_v61 = vadd.f32 %v4156_v2, %v3913_v49  ;;  %v3911_v63 = vadd.f32 %v6875_v20, %v3872_v34  ;;  %v3877_v62 = vmul.f32 %v5132_v17, %v6867_v35 }
 0x3c6   : > { %v3825_v54 = vpop.f32.mrf.mxu0 }
 0x3c7   : > { %4250 = vst.msk [vmem:[%s6900_s16 + $0xc0] sm:$0xff] %vm4225_vm3, %v4217_v40  ;;  %v4220_v9 = vmax.f32 %v4188_v61, 0.0  ;;  %v4186_v46 = vadd.f32 %v4154_v0, %v3911_v63  ;;  %v3916_v7 = vadd.f32 %v6875_v20, %v3877_v62  ;;  %v3875_v48 = vmul.f32 %v6867_v35, %v3825_v54 }
 0x3c8   : > { %v5133_v25 = vpop.f32.mrf.mxu0 }
 0x3c9   : > { %4253 = vst.msk [vmem:[%s6900_s16 + $0xd8] sm:$0xff] %vm4225_vm3, %v4220_v9  ;;  %v4218_v3 = vmax.f32 %v4186_v46, 0.0  ;;  %v4191_v33 = vadd.f32 %v4159_v38, %v3916_v7  ;;  %v3914_v22 = vadd.f32 %v6875_v20, %v3875_v48  ;;  %v3878_v47 = vmul.f32 %v5133_v25, %v6867_v35 }
 0x3ca   : > { %v3828_v50 = vpop.f32.mrf.mxu0 }
 0x3cb   : > { %4251 = vst.msk [vmem:[%s6900_s16 + $0xc8] sm:$0xff] %vm4225_vm3, %v4218_v3  ;;  %v4223_v43 = vmax.f32 %v4191_v33, 0.0  ;;  %v4189_v10 = vadd.f32 %v4157_v42, %v3914_v22  ;;  %v3917_v16 = vadd.f32 %v6875_v20, %v3878_v47  ;;  %v3876_v15 = vmul.f32 %v6867_v35, %v3828_v50 }
 0x3cd   : > { %4256 = vst.msk [vmem:[%s6900_s16 + $0xf0] sm:$0xff] %vm4225_vm3, %v4223_v43  ;;  %v4221_v24 = vmax.f32 %v4189_v10, 0.0  ;;  %v4192_v53 = vadd.f32 %v4160_v23, %v3917_v16  ;;  %v3915_v41 = vadd.f32 %v6875_v20, %v3876_v15 }
 0x3cf   : > { %4254 = vst.msk [vmem:[%s6900_s16 + $0xe0] sm:$0xff] %vm4225_vm3, %v4221_v24  ;;  %v4224_v52 = vmax.f32 %v4192_v53, 0.0  ;;  %v4190_v14 = vadd.f32 %v4158_v4, %v3915_v41 }
 0x3d1   : > { %4257 = vst.msk [vmem:[%s6900_s16 + $0xf8] sm:$0xff] %vm4225_vm3, %v4224_v52  ;;  %v4222_v45 = vmax.f32 %v4190_v14, 0.0 }
 0x3d3   : > { %4255 = vst.msk [vmem:[%s6900_s16 + $0xe8] sm:$0xff] %vm4225_vm3, %v4222_v45 }
 0x3d4   : > { %5235 = shalt.err (!%p5232_p3)
}
 0x3d5   : > { %s5236_s23 = scalar_lea.hbm %s7103_s30, 4096  ;;  %s5240_s20 = scalar_lea.hbm %s7166_s13, 8192 }
 0x3d6   : > { %p5237_p4 = scmp.ne.s32.totalorder %s7103_s30, %s5236_s23  ;;  %p5241_p9 = scmp.lt.s32.totalorder %s7103_s30, %s7166_s13 }
 0x3d7   : > { %p5242_p10 = scmp.lt.s32.totalorder %s5240_s20, %s5236_s23 }
 0x3d8   : > { %p5238_p7 = pnand %p5237_p4, %p5396_p5 }
 0x3d9   : > { %p5243_p11 = por %p5242_p10, %p5241_p9 }
 0x3da   : > { %p5239_p8 = pneg %p5238_p7 }
 0x3dc   : > { %p5244_p12 = pnand %p5243_p11, %p5239_p8 }
 0x3de   : > { %5247 = shalt.err (!%p5244_p12)
}
 0x3df   : > { %s5286_s15 = smov 128   ;;  %s5287_s22 = smov 8  }
 0x3e0   : > { %5180 = dma.vmem_to_hbm [thread:$0]  (%p5396_p5), %s7105_s21, 4096, %s7103_s30, %s7113_s29, %s5286_s15, %s5286_s15, %s5287_s22  }
 0x3e1 PF: > { %p5186_p13 = scmp.ge.s32.totalorder %s5282_s28, 2  ;;  %s4287_s0 = sand.u32 1, %s5270_s25  }
 0x3e2   : > { %s4288_s1 = scalar_lea.sflag [#allocation4], %s4287_s0 }
 0x3e3   : > { %p5183_p0 = pnand %p5186_p13, %p5400_p6 }
 0x3e5   : > { %p5184_p1 = pneg %p5183_p0 }
 0x3e7   : > { %5265 = dma.done.wait (%p5184_p1), %s4288_s1, 4096  }
 0x3e8   : > { %5267 = vsyncadd (%p5184_p1), %s4288_s1, 4294963200  ;;  %p23_p2 = scmp.ge.s32.totalorder %s5383_s14, 4   ;;  %s7238_s25 = smov %s5274_s26 }
 0x3e9   : > { %s7239_s26 = smov %s5278_s27  ;;  %s7240_s27 = smov %s5394_s17 }
 0x3ea   : > { %s7241_s28 = smov %s5383_s14  ;;  %25 = sbr.rel (!%p23_p2) target bundleno = 7 (0x7), region = 117 }
 0x3ef   :  { %4293 = vsyncpa [#allocation4], 1 }
 0x3f0   :  { %4295 = vsyncpa [#allocation4 + $0x1], 1 }

</bundles_post_ra>
